<compile_context>
chip_gen: v6e
topology: v6e:2x2x1
jax: 0.10.0
libtpu: 0.0.40
codegen_flags: <defaults>
</compile_context>

<pallas_src>
import functools
import math

import jax
import jax.numpy as jnp
from jax.experimental import pallas as pl
from jax.experimental.pallas import tpu as pltpu


def _round_up(x, m):
    return ((x + m - 1) // m) * m


def _arcface_fwd_kernel(x_ref, wband_ref, convb_ref, w1_ref, b1_ref,
                        w2_ref, b2_ref, out_ref, acc_ref,
                        *, TB, TH, W, C, CF, inv_hw):
    """Grid step (b, h): conv3x3+ReLU on one halo'd spatial row-tile (3 banded
    bf16 matmuls, f32 accumulate), partial global-average-pool into a VMEM
    accumulator; on the last spatial tile run fc_1 -> ReLU -> (dropout=id) ->
    fc_2 (+folded BN) and emit embeddings."""
    h = pl.program_id(1)
    WC2 = (W + 2) * C

    @pl.when(h == 0)
    def _init():
        acc_ref[...] = jnp.zeros_like(acc_ref)

    # Conv3x3 as 3 banded matmuls (one per kernel row): the LHS is TH lane-dense
    # halo'd rows [(W+2)*C lanes, bf16], the RHS is the zero-banded weight
    # [(W+2)*C, W*CF].  No im2col gather / minor-dim concat -> no relayouts;
    # bf16 into the MXU with f32 accumulation.
    acc3 = None
    for di in range(3):
        rows = x_ref[:, di:di + TH, :].reshape(TB * TH, WC2)          # bf16
        part = jnp.dot(rows, wband_ref[di],
                       preferred_element_type=jnp.float32)            # [TB*TH, W*CF]
        acc3 = part if acc3 is None else acc3 + part
    conv = jnp.maximum(acc3 + convb_ref[...], 0.0)                     # + bias, ReLU

    # Partial global-average-pool: sum over this tile's rows (TH) ...
    row_sum = conv.reshape(TB, TH, W * CF).sum(axis=1)                 # [TB, W*CF] f32
    # ... and over the W lane-aligned CF-wide pixel blocks (static 128-aligned
    # slices + adds; avoids any lane-dim reshape).
    tile_sum = row_sum[:, 0:CF]
    for j in range(1, W):
        tile_sum = tile_sum + row_sum[:, j * CF:(j + 1) * CF]
    acc_ref[...] += tile_sum                                           # [TB, CF] f32

    @pl.when(h == pl.num_programs(1) - 1)
    def _finalize():
        feat = (acc_ref[...] * inv_hw).astype(jnp.bfloat16)            # pooled feats
        z1 = jnp.dot(feat, w1_ref[...], preferred_element_type=jnp.float32)
        z1 = jnp.maximum(z1 + b1_ref[...], 0.0)                        # fc_1 + ReLU
        # dropout: identity in eval mode.
        z2 = jnp.dot(z1.astype(jnp.bfloat16), w2_ref[...],
                     preferred_element_type=jnp.float32)               # fc_2 (+folded BN)
        out_ref[...] = z2 + b2_ref[...]                                # [TB, Ep] f32


@functools.partial(jax.jit, static_argnames=("embedding_size", "tile_h"))
def arcface_forward(x_nchw, params, embedding_size, *, tile_h=8):
    """ArcfaceModel.forward.  x_nchw: f32[B, C, H, W] (PyTorch layout)."""
    B, C, H, W = x_nchw.shape
    assert params["convw"].shape[:3] == (3, 3, C)
    CF = params["convw"].shape[3]         # backbone feature channels
    HID = params["w1"].shape[1]           # fc_1 hidden width
    Ep = params["w2"].shape[1]            # lane-padded embedding width
    TH = min(tile_h, H)
    assert H % TH == 0, "H must be a multiple of the spatial tile height"
    NH = H // TH
    WC2 = (W + 2) * C
    WCF = W * CF

    # Batch tile: as large as the batch allows (bigger MXU M for fc1/fc2 and for
    # the conv LHS, amortizes the ~0.35us per grid step), sublane-aligned to 8,
    # capped so the f32 [TB*TH, W*CF] conv temp stays small vs the VMEM budget.
    TB = min(64, _round_up(B, 8))
    Bp = _round_up(B, TB)

    # NCHW -> NHWC (bf16), 1-pixel halo, batch pad, per-row-tile slabs carrying
    # their own halo rows, last two dims folded to a lane-dense (W+2)*C axis.
    x = jnp.transpose(x_nchw, (0, 2, 3, 1))                            # [B,H,W,C]
    x = jnp.pad(x, ((0, Bp - B), (1, 1), (1, 1), (0, 0)))              # [Bp,H+2,W+2,C]
    x = x.astype(jnp.bfloat16)
    xtiles = jnp.stack([x[:, h * TH:h * TH + TH + 2] for h in range(NH)],
                       axis=1).reshape(Bp, NH, TH + 2, WC2)            # [Bp,NH,TH+2,WC2]

    # Banded conv weight: wband[di, (j+dj)*C+ci, j*CF+co] = w[di, dj, ci, co]
    # (zeros elsewhere).  Built wrapper-side (tiny); fetched once by the kernel.
    w_taps = params["convw"]                                           # (3,3,C,CF) bf16
    bands = []
    for di in range(3):
        blk = w_taps[di].reshape(3 * C, CF)                            # rows dj*C+ci
        cols = [jnp.pad(blk, ((j * C, WC2 - (j + 3) * C), (0, 0)))
                for j in range(W)]
        bands.append(jnp.concatenate(cols, axis=1))                    # (WC2, W*CF)
    wband = jnp.stack(bands, axis=0)                                   # (3, WC2, W*CF)
    convb_wide = jnp.tile(params["convb"], (1, W))                     # (1, W*CF) f32

    kernel = functools.partial(_arcface_fwd_kernel, TB=TB, TH=TH, W=W, C=C,
                               CF=CF, inv_hw=1.0 / float(H * W))
    grid = (Bp // TB, NH)   # (batch tiles: parallel, spatial tiles: arbitrary)
    # NOTE: the pool accumulator relies on the spatial axis h being innermost.

    out = pl.pallas_call(
        kernel,
        out_shape=jax.ShapeDtypeStruct((Bp, Ep), jnp.float32),
        grid=grid,
        in_specs=[
            # pipelined input row-tiles (bf16, halo included, NH dim squeezed)
            pl.BlockSpec((TB, None, TH + 2, WC2), lambda b, h: (b, h, 0, 0)),
            # weights / biases: full-array blocks with constant index maps
            # (fetched once; small enough that default double-buffering is fine)
            pl.BlockSpec((3, WC2, WCF), lambda b, h: (0, 0, 0)),
            pl.BlockSpec((1, WCF),      lambda b, h: (0, 0)),
            pl.BlockSpec((CF, HID),     lambda b, h: (0, 0)),
            pl.BlockSpec((1, HID),      lambda b, h: (0, 0)),
            pl.BlockSpec((HID, Ep),     lambda b, h: (0, 0)),
            pl.BlockSpec((1, Ep),       lambda b, h: (0, 0)),
        ],
        out_specs=pl.BlockSpec((TB, Ep), lambda b, h: (b, 0)),
        scratch_shapes=[pltpu.VMEM((TB, CF), jnp.float32)],   # pool accumulator
        compiler_params=pltpu.CompilerParams(
            dimension_semantics=("parallel", "arbitrary"),
            # above v5e's 16 MiB scoped default, well inside v7x's 64 MiB physical
            vmem_limit_bytes=32 * 1024 * 1024),
    )(xtiles, wband, convb_wide, params["w1"], params["b1"],
      params["w2"], params["b2"])

    return out[:B, :embedding_size]


def init_params(key, c_in=4, c_feat=128, embedding_size=32, hidden=1024,
                e_pad=128):
    """Deterministic synthetic parameters (PyTorch-equivalent init, eval mode)."""
    ks = jax.random.split(key, 6)

    # Backbone stand-in: Conv2d(c_in, c_feat, 3, padding=1).
    # PyTorch layout [C_out, C_in, 3, 3] -> tap-major [3, 3, C_in, C_out].
    fan_conv = 9 * c_in
    bc = 1.0 / math.sqrt(fan_conv)
    w_conv = jax.random.uniform(ks[0], (c_feat, c_in, 3, 3), jnp.float32, -bc, bc)
    convw = jnp.transpose(w_conv, (2, 3, 1, 0))                     # (3,3,C,CF)
    convb = jax.random.uniform(ks[1], (1, c_feat), jnp.float32, -bc, bc)

    # fc_1: Linear(c_feat, hidden), stored transposed [in, out].
    b1b = 1.0 / math.sqrt(c_feat)
    w1 = jax.random.uniform(ks[2], (c_feat, hidden), jnp.float32, -b1b, b1b)
    b1 = jax.random.uniform(ks[3], (1, hidden), jnp.float32, -b1b, b1b)

    # fc_2: Linear(hidden, embedding_size), stored transposed [in, out].
    b2b = 1.0 / math.sqrt(hidden)
    w2 = jax.random.uniform(ks[4], (hidden, embedding_size), jnp.float32, -b2b, b2b)
    b2 = jax.random.uniform(ks[5], (1, embedding_size), jnp.float32, -b2b, b2b)

    # BatchNorm1d(embedding_size), eval with default running stats
    # (gamma=1, beta=0, mean=0, var=1, eps=1e-5) folded into fc_2.
    gamma = jnp.ones((embedding_size,), jnp.float32)
    beta = jnp.zeros((embedding_size,), jnp.float32)
    r_mean = jnp.zeros((embedding_size,), jnp.float32)
    r_var = jnp.ones((embedding_size,), jnp.float32)
    scale = gamma / jnp.sqrt(r_var + 1e-5)
    shift = beta - r_mean * scale
    w2f = w2 * scale[None, :]
    b2f = b2 * scale[None, :] + shift[None, :]

    # Lane-pad the embedding dim to 128 for dense vector stores; sliced off later.
    pe = e_pad - embedding_size
    return dict(
        convw=convw.astype(jnp.bfloat16),
        convb=convb,
        w1=w1.astype(jnp.bfloat16),
        b1=b1,
        w2=jnp.pad(w2f, ((0, 0), (0, pe))).astype(jnp.bfloat16),
        b2=jnp.pad(b2f, ((0, 0), (0, pe))),
    )


def _reference(x_nchw, params, embedding_size):
    """Pure-JAX forward with the same bf16 cast points, for a sanity check."""
    B, C, H, W = x_nchw.shape
    xs = jnp.transpose(x_nchw, (0, 2, 3, 1))
    xp = jnp.pad(xs, ((0, 0), (1, 1), (1, 1), (0, 0))).astype(jnp.bfloat16)
    conv = 0.0
    for di in range(3):
        for dj in range(3):
            sl = xp[:, di:di + H, dj:dj + W, :].reshape(B * H * W, C)
            conv = conv + jnp.dot(sl, params["convw"][di, dj],
                                  preferred_element_type=jnp.float32)
    conv = jnp.maximum(conv + params["convb"], 0.0)
    feat = conv.reshape(B, H * W, -1).mean(axis=1).astype(jnp.bfloat16)
    z1 = jnp.dot(feat, params["w1"], preferred_element_type=jnp.float32)
    z1 = jnp.maximum(z1 + params["b1"], 0.0)
    z2 = jnp.dot(z1.astype(jnp.bfloat16), params["w2"],
                 preferred_element_type=jnp.float32) + params["b2"]
    return z2[:, :embedding_size]


if __name__ == "__main__":
    key = jax.random.PRNGKey(0)
    k_x, k_p = jax.random.split(key)

    B, C, H, W = 2, 4, 16, 16          # small NCHW input
    embedding_size = 32

    x = jax.random.normal(k_x, (B, C, H, W), jnp.float32)
    params = init_params(k_p, c_in=C, c_feat=128, embedding_size=embedding_size)

    out = arcface_forward(x, params, embedding_size=embedding_size)
    out = jax.block_until_ready(out)
    assert out.shape == (B, embedding_size) and out.dtype == jnp.float32

    ref = _reference(x, params, embedding_size)
    err = float(jnp.max(jnp.abs(out - ref)))
    assert err < 1e-2, f"max abs err vs reference: {err}"
    print("KERNEL_OK")
</pallas_src>

<mosaic_0001>
module attributes {stable_mosaic.version = 11 : i64} {
  func.func @_arcface_fwd_kernel(%arg0: i32, %arg1: i32, %arg2: memref<8x1x10x72xbf16, #tpu.memory_space<vmem>>, %arg3: memref<3x72x2048xbf16, #tpu.memory_space<vmem>>, %arg4: memref<1x2048xf32, #tpu.memory_space<vmem>>, %arg5: memref<128x1024xbf16, #tpu.memory_space<vmem>>, %arg6: memref<1x1024xf32, #tpu.memory_space<vmem>>, %arg7: memref<1024x128xbf16, #tpu.memory_space<vmem>>, %arg8: memref<1x128xf32, #tpu.memory_space<vmem>>, %arg9: memref<8x128xf32, #tpu.memory_space<vmem>>, %arg10: memref<8x128xf32, #tpu.memory_space<vmem>>) attributes {dimension_semantics = [#tpu.dimension_semantics<parallel>, #tpu.dimension_semantics<arbitrary>], iteration_bounds = array<i64: 1, 2>, scalar_prefetch = 0 : i64, scratch_operands = 1 : i64, tpu.core_type = #tpu.core_type<tc>, window_params = [{transform_indices = @transform_0, window_bounds = array<i64: 8, 1, 10, 72>}, {pipeline_mode = #tpu.pipeline_mode<synchronous>, transform_indices = @transform_1, window_bounds = array<i64: 3, 72, 2048>}, {pipeline_mode = #tpu.pipeline_mode<synchronous>, transform_indices = @transform_2, window_bounds = array<i64: 1, 2048>}, {pipeline_mode = #tpu.pipeline_mode<synchronous>, transform_indices = @transform_3, window_bounds = array<i64: 128, 1024>}, {pipeline_mode = #tpu.pipeline_mode<synchronous>, transform_indices = @transform_4, window_bounds = array<i64: 1, 1024>}, {pipeline_mode = #tpu.pipeline_mode<synchronous>, transform_indices = @transform_5, window_bounds = array<i64: 1024, 128>}, {pipeline_mode = #tpu.pipeline_mode<synchronous>, transform_indices = @transform_6, window_bounds = array<i64: 1, 128>}, {transform_indices = @transform_7, window_bounds = array<i64: 8, 128>}]} {
    %c0_i32 = arith.constant 0 : i32
    %0 = arith.cmpi eq, %arg1, %c0_i32 : i32
    %1 = arith.extui %0 : i1 to i32
    %c0_i32_0 = arith.constant 0 : i32
    %2 = arith.cmpi ne, %1, %c0_i32_0 : i32
    scf.if %2 {
      %cst_30 = arith.constant 0.000000e+00 : f32
      %67 = vector.broadcast %cst_30 : f32 to vector<8x128xf32>
      %c0_31 = arith.constant 0 : index
      %c0_32 = arith.constant 0 : index
      %68 = vector.load %arg10[%c0_31, %c0_32] : memref<8x128xf32, #tpu.memory_space<vmem>>, vector<8x128xf32>
      tpu.vector_store %arg10[%c0_31, %c0_32], %67 {strides = array<i32>} : memref<8x128xf32, #tpu.memory_space<vmem>>, vector<8x128xf32>,
    } else {
    }
    %c0 = arith.constant 0 : index
    %c0_1 = arith.constant 0 : index
    %c0_2 = arith.constant 0 : index
    %c0_3 = arith.constant 0 : index
    %3 = vector.load %arg2[%c0, %c0_1, %c0_2, %c0_3] : memref<8x1x10x72xbf16, #tpu.memory_space<vmem>>, vector<8x1x8x72xbf16>
    %4 = vector.shape_cast %3 : vector<8x1x8x72xbf16> to vector<8x8x72xbf16>
    %5 = vector.shape_cast %4 : vector<8x8x72xbf16> to vector<64x72xbf16>
    %c0_4 = arith.constant 0 : index
    %c0_5 = arith.constant 0 : index
    %c0_6 = arith.constant 0 : index
    %6 = vector.load %arg3[%c0_4, %c0_5, %c0_6] : memref<3x72x2048xbf16, #tpu.memory_space<vmem>>, vector<1x72x2048xbf16>
    %7 = vector.shape_cast %6 : vector<1x72x2048xbf16> to vector<72x2048xbf16>
    %cst = arith.constant dense<0.000000e+00> : vector<64x2048xf32>
    %8 = tpu.matmul %5, %7, %cst {dimension_numbers = #tpu.dot_dimension_numbers<[1], [0], [0], [1], [0, 0, 1, 1], [], []>} : vector<64x72xbf16>, vector<72x2048xbf16>, vector<64x2048xf32> -> vector<64x2048xf32>
    %c0_7 = arith.constant 0 : index
    %c0_8 = arith.constant 0 : index
    %c1 = arith.constant 1 : index
    %c0_9 = arith.constant 0 : index
    %9 = vector.load %arg2[%c0_7, %c0_8, %c1, %c0_9] : memref<8x1x10x72xbf16, #tpu.memory_space<vmem>>, vector<8x1x8x72xbf16>
    %10 = vector.shape_cast %9 : vector<8x1x8x72xbf16> to vector<8x8x72xbf16>
    %11 = vector.shape_cast %10 : vector<8x8x72xbf16> to vector<64x72xbf16>
    %c1_10 = arith.constant 1 : index
    %c0_11 = arith.constant 0 : index
    %c0_12 = arith.constant 0 : index
    %12 = vector.load %arg3[%c1_10, %c0_11, %c0_12] : memref<3x72x2048xbf16, #tpu.memory_space<vmem>>, vector<1x72x2048xbf16>
    %13 = vector.shape_cast %12 : vector<1x72x2048xbf16> to vector<72x2048xbf16>
    %cst_13 = arith.constant dense<0.000000e+00> : vector<64x2048xf32>
    %14 = tpu.matmul %11, %13, %cst_13 {dimension_numbers = #tpu.dot_dimension_numbers<[1], [0], [0], [1], [0, 0, 1, 1], [], []>} : vector<64x72xbf16>, vector<72x2048xbf16>, vector<64x2048xf32> -> vector<64x2048xf32>
    %15 = arith.addf %8, %14 : vector<64x2048xf32>
    %c0_14 = arith.constant 0 : index
    %c0_15 = arith.constant 0 : index
    %c2 = arith.constant 2 : index
    %c0_16 = arith.constant 0 : index
    %16 = vector.load %arg2[%c0_14, %c0_15, %c2, %c0_16] : memref<8x1x10x72xbf16, #tpu.memory_space<vmem>>, vector<8x1x8x72xbf16>
    %17 = vector.shape_cast %16 : vector<8x1x8x72xbf16> to vector<8x8x72xbf16>
    %18 = vector.shape_cast %17 : vector<8x8x72xbf16> to vector<64x72xbf16>
    %c2_17 = arith.constant 2 : index
    %c0_18 = arith.constant 0 : index
    %c0_19 = arith.constant 0 : index
    %19 = vector.load %arg3[%c2_17, %c0_18, %c0_19] : memref<3x72x2048xbf16, #tpu.memory_space<vmem>>, vector<1x72x2048xbf16>
    %20 = vector.shape_cast %19 : vector<1x72x2048xbf16> to vector<72x2048xbf16>
    %cst_20 = arith.constant dense<0.000000e+00> : vector<64x2048xf32>
    %21 = tpu.matmul %18, %20, %cst_20 {dimension_numbers = #tpu.dot_dimension_numbers<[1], [0], [0], [1], [0, 0, 1, 1], [], []>} : vector<64x72xbf16>, vector<72x2048xbf16>, vector<64x2048xf32> -> vector<64x2048xf32>
    %22 = arith.addf %15, %21 : vector<64x2048xf32>
    %c0_21 = arith.constant 0 : index
    %c0_22 = arith.constant 0 : index
    %23 = vector.load %arg4[%c0_21, %c0_22] : memref<1x2048xf32, #tpu.memory_space<vmem>>, vector<1x2048xf32>
    %24 = vector.broadcast %23 : vector<1x2048xf32> to vector<64x2048xf32>
    %25 = arith.addf %22, %24 : vector<64x2048xf32>
    %cst_23 = arith.constant 0.000000e+00 : f32
    %26 = vector.broadcast %cst_23 : f32 to vector<64x2048xf32>
    %27 = arith.maximumf %25, %26 : vector<64x2048xf32>
    %28 = vector.shape_cast %27 : vector<64x2048xf32> to vector<8x8x2048xf32>
    %cst_24 = arith.constant dense<0.000000e+00> : vector<8x2048xf32>
    %29 = vector.multi_reduction <add>, %28, %cst_24 [1] : vector<8x8x2048xf32> to vector<8x2048xf32>
    %30 = vector.extract_strided_slice %29 {offsets = [0, 0], sizes = [8, 128], strides = [1, 1]} : vector<8x2048xf32> to vector<8x128xf32>
    %31 = vector.extract_strided_slice %29 {offsets = [0, 128], sizes = [8, 128], strides = [1, 1]} : vector<8x2048xf32> to vector<8x128xf32>
    %32 = arith.addf %30, %31 : vector<8x128xf32>
    %33 = vector.extract_strided_slice %29 {offsets = [0, 256], sizes = [8, 128], strides = [1, 1]} : vector<8x2048xf32> to vector<8x128xf32>
    %34 = arith.addf %32, %33 : vector<8x128xf32>
    %35 = vector.extract_strided_slice %29 {offsets = [0, 384], sizes = [8, 128], strides = [1, 1]} : vector<8x2048xf32> to vector<8x128xf32>
    %36 = arith.addf %34, %35 : vector<8x128xf32>
    %37 = vector.extract_strided_slice %29 {offsets = [0, 512], sizes = [8, 128], strides = [1, 1]} : vector<8x2048xf32> to vector<8x128xf32>
    %38 = arith.addf %36, %37 : vector<8x128xf32>
    %39 = vector.extract_strided_slice %29 {offsets = [0, 640], sizes = [8, 128], strides = [1, 1]} : vector<8x2048xf32> to vector<8x128xf32>
    %40 = arith.addf %38, %39 : vector<8x128xf32>
    %41 = vector.extract_strided_slice %29 {offsets = [0, 768], sizes = [8, 128], strides = [1, 1]} : vector<8x2048xf32> to vector<8x128xf32>
    %42 = arith.addf %40, %41 : vector<8x128xf32>
    %43 = vector.extract_strided_slice %29 {offsets = [0, 896], sizes = [8, 128], strides = [1, 1]} : vector<8x2048xf32> to vector<8x128xf32>
    %44 = arith.addf %42, %43 : vector<8x128xf32>
    %45 = vector.extract_strided_slice %29 {offsets = [0, 1024], sizes = [8, 128], strides = [1, 1]} : vector<8x2048xf32> to vector<8x128xf32>
    %46 = arith.addf %44, %45 : vector<8x128xf32>
    %47 = vector.extract_strided_slice %29 {offsets = [0, 1152], sizes = [8, 128], strides = [1, 1]} : vector<8x2048xf32> to vector<8x128xf32>
    %48 = arith.addf %46, %47 : vector<8x128xf32>
    %49 = vector.extract_strided_slice %29 {offsets = [0, 1280], sizes = [8, 128], strides = [1, 1]} : vector<8x2048xf32> to vector<8x128xf32>
    %50 = arith.addf %48, %49 : vector<8x128xf32>
    %51 = vector.extract_strided_slice %29 {offsets = [0, 1408], sizes = [8, 128], strides = [1, 1]} : vector<8x2048xf32> to vector<8x128xf32>
    %52 = arith.addf %50, %51 : vector<8x128xf32>
    %53 = vector.extract_strided_slice %29 {offsets = [0, 1536], sizes = [8, 128], strides = [1, 1]} : vector<8x2048xf32> to vector<8x128xf32>
    %54 = arith.addf %52, %53 : vector<8x128xf32>
    %55 = vector.extract_strided_slice %29 {offsets = [0, 1664], sizes = [8, 128], strides = [1, 1]} : vector<8x2048xf32> to vector<8x128xf32>
    %56 = arith.addf %54, %55 : vector<8x128xf32>
    %57 = vector.extract_strided_slice %29 {offsets = [0, 1792], sizes = [8, 128], strides = [1, 1]} : vector<8x2048xf32> to vector<8x128xf32>
    %58 = arith.addf %56, %57 : vector<8x128xf32>
    %59 = vector.extract_strided_slice %29 {offsets = [0, 1920], sizes = [8, 128], strides = [1, 1]} : vector<8x2048xf32> to vector<8x128xf32>
    %60 = arith.addf %58, %59 : vector<8x128xf32>
    %c0_25 = arith.constant 0 : index
    %c0_26 = arith.constant 0 : index
    %61 = vector.load %arg10[%c0_25, %c0_26] : memref<8x128xf32, #tpu.memory_space<vmem>>, vector<8x128xf32>
    %62 = arith.addf %61, %60 : vector<8x128xf32>
    %c0_27 = arith.constant 0 : index
    %c0_28 = arith.constant 0 : index
    %63 = vector.load %arg10[%c0_27, %c0_28] : memref<8x128xf32, #tpu.memory_space<vmem>>, vector<8x128xf32>
    tpu.vector_store %arg10[%c0_27, %c0_28], %62 {strides = array<i32>} : memref<8x128xf32, #tpu.memory_space<vmem>>, vector<8x128xf32>,
    %c1_i32 = arith.constant 1 : i32
    %64 = arith.cmpi eq, %arg1, %c1_i32 : i32
    %65 = arith.extui %64 : i1 to i32
    %c0_i32_29 = arith.constant 0 : i32
    %66 = arith.cmpi ne, %65, %c0_i32_29 : i32
    scf.if %66 {
      %c0_30 = arith.constant 0 : index
      %c0_31 = arith.constant 0 : index
      %67 = vector.load %arg10[%c0_30, %c0_31] : memref<8x128xf32, #tpu.memory_space<vmem>>, vector<8x128xf32>
      %cst_32 = arith.constant 3.906250e-03 : f32
      %68 = vector.broadcast %cst_32 : f32 to vector<8x128xf32>
      %69 = arith.mulf %67, %68 : vector<8x128xf32>
      %70 = arith.truncf %69 : vector<8x128xf32> to vector<8x128xbf16>
      %c0_33 = arith.constant 0 : index
      %c0_34 = arith.constant 0 : index
      %71 = vector.load %arg5[%c0_33, %c0_34] : memref<128x1024xbf16, #tpu.memory_space<vmem>>, vector<128x1024xbf16>
      %cst_35 = arith.constant dense<0.000000e+00> : vector<8x1024xf32>
      %72 = tpu.matmul %70, %71, %cst_35 {dimension_numbers = #tpu.dot_dimension_numbers<[1], [0], [0], [1], [0, 0, 1, 1], [], []>} : vector<8x128xbf16>, vector<128x1024xbf16>, vector<8x1024xf32> -> vector<8x1024xf32>
      %c0_36 = arith.constant 0 : index
      %c0_37 = arith.constant 0 : index
      %73 = vector.load %arg6[%c0_36, %c0_37] : memref<1x1024xf32, #tpu.memory_space<vmem>>, vector<1x1024xf32>
      %74 = vector.broadcast %73 : vector<1x1024xf32> to vector<8x1024xf32>
      %75 = arith.addf %72, %74 : vector<8x1024xf32>
      %cst_38 = arith.constant 0.000000e+00 : f32
      %76 = vector.broadcast %cst_38 : f32 to vector<8x1024xf32>
      %77 = arith.maximumf %75, %76 : vector<8x1024xf32>
      %78 = arith.truncf %77 : vector<8x1024xf32> to vector<8x1024xbf16>
      %c0_39 = arith.constant 0 : index
      %c0_40 = arith.constant 0 : index
      %79 = vector.load %arg7[%c0_39, %c0_40] : memref<1024x128xbf16, #tpu.memory_space<vmem>>, vector<1024x128xbf16>
      %cst_41 = arith.constant dense<0.000000e+00> : vector<8x128xf32>
      %80 = tpu.matmul %78, %79, %cst_41 {dimension_numbers = #tpu.dot_dimension_numbers<[1], [0], [0], [1], [0, 0, 1, 1], [], []>} : vector<8x1024xbf16>, vector<1024x128xbf16>, vector<8x128xf32> -> vector<8x128xf32>
      %c0_42 = arith.constant 0 : index
      %c0_43 = arith.constant 0 : index
      %81 = vector.load %arg8[%c0_42, %c0_43] : memref<1x128xf32, #tpu.memory_space<vmem>>, vector<1x128xf32>
      %82 = vector.broadcast %81 : vector<1x128xf32> to vector<8x128xf32>
      %83 = arith.addf %80, %82 : vector<8x128xf32>
      %c0_44 = arith.constant 0 : index
      %c0_45 = arith.constant 0 : index
      %84 = vector.load %arg9[%c0_44, %c0_45] : memref<8x128xf32, #tpu.memory_space<vmem>>, vector<8x128xf32>
      tpu.vector_store %arg9[%c0_44, %c0_45], %83 {strides = array<i32>} : memref<8x128xf32, #tpu.memory_space<vmem>>, vector<8x128xf32>,
    } else {
    }
    return
  }
  func.func @transform_0(%arg0: i32, %arg1: i32) -> (i32, i32, i32, i32) {
    %c0_i32 = arith.constant 0 : i32
    %c0_i32_0 = arith.constant 0 : i32
    %c0_i32_1 = arith.constant 0 : i32
    return %arg0, %arg1, %c0_i32, %c0_i32_0 : i32, i32, i32, i32
  }
  func.func @transform_1(%arg0: i32, %arg1: i32) -> (i32, i32, i32) {
    %c0_i32 = arith.constant 0 : i32
    %c0_i32_0 = arith.constant 0 : i32
    %c0_i32_1 = arith.constant 0 : i32
    %c0_i32_2 = arith.constant 0 : i32
    return %c0_i32, %c0_i32_0, %c0_i32_1 : i32, i32, i32
  }
  func.func @transform_2(%arg0: i32, %arg1: i32) -> (i32, i32) {
    %c0_i32 = arith.constant 0 : i32
    %c0_i32_0 = arith.constant 0 : i32
    %c0_i32_1 = arith.constant 0 : i32
    return %c0_i32, %c0_i32_0 : i32, i32
  }
  func.func @transform_3(%arg0: i32, %arg1: i32) -> (i32, i32) {
    %c0_i32 = arith.constant 0 : i32
    %c0_i32_0 = arith.constant 0 : i32
    %c0_i32_1 = arith.constant 0 : i32
    return %c0_i32, %c0_i32_0 : i32, i32
  }
  func.func @transform_4(%arg0: i32, %arg1: i32) -> (i32, i32) {
    %c0_i32 = arith.constant 0 : i32
    %c0_i32_0 = arith.constant 0 : i32
    %c0_i32_1 = arith.constant 0 : i32
    return %c0_i32, %c0_i32_0 : i32, i32
  }
  func.func @transform_5(%arg0: i32, %arg1: i32) -> (i32, i32) {
    %c0_i32 = arith.constant 0 : i32
    %c0_i32_0 = arith.constant 0 : i32
    %c0_i32_1 = arith.constant 0 : i32
    return %c0_i32, %c0_i32_0 : i32, i32
  }
  func.func @transform_6(%arg0: i32, %arg1: i32) -> (i32, i32) {
    %c0_i32 = arith.constant 0 : i32
    %c0_i32_0 = arith.constant 0 : i32
    %c0_i32_1 = arith.constant 0 : i32
    return %c0_i32, %c0_i32_0 : i32, i32
  }
  func.func @transform_7(%arg0: i32, %arg1: i32) -> (i32, i32) {
    %c0_i32 = arith.constant 0 : i32
    %c0_i32_0 = arith.constant 0 : i32
    return %arg0, %c0_i32 : i32, i32
  }
}

</mosaic_0001>

<bundles_post_ra>
// kernel: squeeze.3
= control target key start
LH: loop header
LB: loop body
LE: loop exit
PB: predicated region body
PF: predicated region fallthrough
CT: control target
= control target key end

     0   :  { %s105_s0 = inlined_call_operand.vmem [shape: bf16[1,3,4,128], index: 0, kind: input, shape index: {}]   ;;  %s106_s1 = inlined_call_operand.vmem [shape: bf16[12,128], index: 1, kind: output, shape index: {}]  }
   0x1   :  { %v78_v0 = vld [vmem:[%s105_s0 + $0x2] sm:$0xf]   ;;  %v46_v1 = vld [vmem:[%s105_s0] sm:$0x3] }
   0x2   :  { %v18_v2 = vunpack.c.l.bf16 %v78_v0  ;;  %v47_v3 = vunpack.c.l.bf16 %v46_v1 }
   0x4   :  { %21 = vst [vmem:[#allocation1 + $0x10] ss:$-16 sps:$4 sm:$0xff] %v18_v2   ;;  %49 = vst [vmem:[#allocation1 + $0x8] sm:$0xf] %v47_v3 }
   0xb   :  { %v50_v4 = vld [vmem:[#allocation1 + $0x8] sm:$0xf]   ;;  %v53_v5 = vld [vmem:[#allocation1 + $0x10] sm:$0xf]   ;;  %v57_v6 = vld [vmem:[#allocation1] sm:$0xf]  }
   0xc   :  { %51 = vst [vmem:[#allocation0] sm:$0xf] %v50_v4   ;;  %55 = vst [vmem:[#allocation0 + $0x4] sm:$0xf] %v53_v5  }
   0xd   :  { %59 = vst [vmem:[#allocation0 + $0x8] sm:$0xf] %v57_v6  }
  0x13   :  { %v65_v7 = vld [vmem:[#allocation0] sm:$0xff] }
  0x14   :  { %v71_v8 = vld [vmem:[#allocation0 + $0x8] sm:$0xff] }
  0x15   :  { %v84_v9 = vpack.c.bf16 %v71_v8, %v65_v7 }
  0x17   :  { %85 = vst [vmem:[%s106_s1] sm:$0xff] %v84_v9  }

// kernel: arcface_forward.1
= control target key start
LH: loop header
LB: loop body
LE: loop exit
PB: predicated region body
PF: predicated region fallthrough
CT: control target
= control target key end

     0   :  { %s7619_s24 = smov 0   ;;  %s7621_s25 = smov 0   ;;  %s10723_s0 = inlined_call_operand.vmem [shape: bf16[8,2,10,72], index: 0, kind: input, shape index: {}]   ;;  %s10724_s1 = inlined_call_operand.vmem [shape: bf16[3,72,2048], index: 1, kind: input, shape index: {}]   ;;  %s10725_s2 = inlined_call_operand.vmem [shape: f32[1,2048], index: 2, kind: input, shape index: {}]   ;;  %s10726_s3 = inlined_call_operand.vmem [shape: bf16[128,1024], index: 3, kind: input, shape index: {}]   ;;  %s10727_s4 = inlined_call_operand.vmem [shape: f32[1,1024], index: 4, kind: input, shape index: {}]   ;;  %s10728_s5 = inlined_call_operand.vmem [shape: bf16[1024,128], index: 5, kind: input, shape index: {}]   ;;  %s10729_s6 = inlined_call_operand.vmem [shape: f32[1,128], index: 6, kind: input, shape index: {}]   ;;  %s10730_s7 = inlined_call_operand.vmem [shape: f32[8,128], index: 7, kind: output, shape index: {}]  }
   0x1   :  { %s7623_s26 = smov 0   ;;  %s7625_s27 = smov 0  }
   0x2   :  { %s7627_s28 = smov 0  }
   0x3 LB: > { %s26_s29 = sadd.s32 1, %s7570_s27  ;;  %p45_p1 = scmp.ne.s32.totalorder %s7562_s25, %s7558_s24  ;;  %s7574_s28 = sphi %s7627_s28, %s17_s28   ;;  %s7570_s27 = sphi %s7625_s27, %s11325_s27   ;;  %s7566_s26 = sphi %s7623_s26, %s11324_s26   ;;  %s7562_s25 = sphi %s7621_s25, %s11323_s25   ;;  %s7558_s24 = sphi %s7619_s24, %s11322_s24  }
   0x4   : > { %p27_p0 = scmp.ge.s32.totalorder %s26_s29, 2  ;;  %p46_p2 = scmp.eq.s32.totalorder %s7574_s28, 0 }
   0x5   : > { %s38_s8 = sadd.s32 1, %s7562_s25  ;;  %p6616_p5 = scmp.ge.s32.totalorder %s7574_s28, 2 }
   0x6   : > { %s11327_s29 = smov (%p27_p0, %s26_s29), 0  ;;  %p47_p3 = por %p46_p2, %p45_p1 }
   0x7   : > { %s34_s30 = ssub.s32 %s7570_s27, %s11327_s29  ;;  %241 = sbr.rel (%p6616_p5) target bundleno = 20 (0x14), region = 40 }
   0x8   : > { %p36_p4 = scmp.eq.s32.totalorder %s34_s30, 0 }
   0xa   : > { %s7654_s9 = scalar_select %p36_p4, %s7562_s25, %s38_s8  }
   0xc   : > { %244 = sbr.rel (!%p47_p3) target bundleno = 20 (0x14), region = 44  ;;  %s246_s10 = sand.u32 (%p47_p3), 1, %s7562_s25  }
   0xd   : > { %s7280_s11 = sshll.u32 (%p47_p3), %s7570_s27, 3  ;;  %s6617_s12 = sshll.u32 (%p47_p3), %s246_s10, 6 }
   0xe   : > { %s254_s15 = scalar_lea.vmem (%p47_p3), %s10723_s0, %s7280_s11  ;;  %s248_s16 = scalar_lea.vmem (%p47_p3), [#allocation3], %s6617_s12 }
   0xf   : > { %v271_v0 = vld [vmem:[%s254_s15] sm:$0xff] (%p47_p3)   ;;  %v275_v1 = vld [vmem:[%s254_s15 + $0x10] sm:$0xff] (%p47_p3)  }
  0x10   : > { %v279_v2 = vld [vmem:[%s254_s15 + $0x20] sm:$0xff] (%p47_p3)   ;;  %272 = vst [vmem:[%s248_s16] sm:$0xff] (%p47_p3), %v271_v0   ;;  %276 = vst [vmem:[%s248_s16 + $0x8] sm:$0xff] (%p47_p3), %v275_v1   ;;  %v283_v3 = vld [vmem:[%s254_s15 + $0x30] sm:$0xff] (%p47_p3)  }
  0x11   : > { %280 = vst [vmem:[%s248_s16 + $0x10] sm:$0xff] %v279_v2   ;;  %v287_v4 = vld [vmem:[%s254_s15 + $0x40] sm:$0xff]   ;;  %v291_v5 = vld [vmem:[%s254_s15 + $0x50] sm:$0xff]   ;;  %284 = vst [vmem:[%s248_s16 + $0x18] sm:$0xff] %v283_v3  }
  0x12   : > { %288 = vst [vmem:[%s248_s16 + $0x20] sm:$0xff] %v287_v4   ;;  %292 = vst [vmem:[%s248_s16 + $0x28] sm:$0xff] %v291_v5   ;;  %v295_v6 = vld [vmem:[%s254_s15 + $0x60] sm:$0xff]   ;;  %v299_v7 = vld [vmem:[%s254_s15 + $0x70] sm:$0xff]  }
  0x13   : > { %296 = vst [vmem:[%s248_s16 + $0x30] sm:$0xff] %v295_v6   ;;  %300 = vst [vmem:[%s248_s16 + $0x38] sm:$0xff] %v299_v7  }
  0x14 PF: > { %p6620_p6 = scmp.ge.s32.totalorder %s7574_s28, 1  ;;  %p357_p7 = scmp.lt.s32.totalorder %s7574_s28, 3 }
  0x16   : > { %p358_p8 = pnand %p6620_p6, %p357_p7 }
  0x18   : > { %361 = sbr.rel (%p358_p8) target bundleno = 1350 (0x546), region = 85 }
  0x1d   : > { %s364_s17 = sand.u32 1, %s7558_s24   ;;  %p6622_p9 = scmp.ne.s32.totalorder %s7566_s26, 0 }
  0x1e   : > { %s6621_s18 = sshll.u32 %s364_s17, 6 }
  0x1f   : > { %s7665_s19 = scalar_lea.vmem [#allocation3], %s6621_s18  ;;  %403 = sbr.rel (%p6622_p9) target bundleno = 38 (0x26), region = 93 }
  0x24   : > { %v7576_v8 = vmov 0.0  }
  0x25   : > { %404 = vst [vmem:[#allocation2] sm:$0xff] %v7576_v8 }
  0x26 PF: > { %v6687_v9 = vld [vmem:[%s10724_s1 + $0x440] sm:$0xff]  ;;  %vm1066_vm0 = vcmask 1043456   ;;  %v6688_v10 = vld [vmem:[%s10724_s1 + $0x448] sm:$0xff]  ;;  %v10731_v19 = vmov 0   ;;  %vm493_vm1 = vsmask.f32 3328 }
  0x27   : > { %v6671_v11 = vld [vmem:[%s10724_s1 + $0x3c0] sm:$0xff]  ;;  %v6764_v12 = vcombine.high %v6687_v9, %v6687_v9  ;;  %v6766_v13 = vcombine.high %v6688_v10, %v6688_v10  ;;  %v6763_v14 = vcombine.low %v6687_v9, %v6687_v9  ;;  %v6765_v15 = vcombine.low %v6688_v10, %v6688_v10  ;;  %v6672_v17 = vld [vmem:[%s10724_s1 + $0x3c8] sm:$0xff]  ;;  %1147 = vmatprep.mubr.bf16.mxu0 %v10731_v19  ;;  %v7728_v38 = vld [vmem:[%s7665_s19 + $0x8] sm:$0xf]  ;;  %p7147_p10 = scmp.ne.s32.totalorder %s7566_s26, 1 }
  0x28   : > { %v6679_v16 = vld [vmem:[%s10724_s1 + $0x400] sm:$0xff]  ;;  %v6680_v18 = vld [vmem:[%s10724_s1 + $0x408] sm:$0xff]  ;;  %1220 = vmatprep.mubr.bf16.mxu1 %v10731_v19  ;;  %v486_v42 = vld [vmem:[%s7665_s19 + $0xc] sm:$0x1]  ;;  %v511_v45 = vshrl.u32 %v7728_v38, 16  ;;  %v514_v51 = vshll.u32 %v7728_v38, 16 }
  0x29   : > { %v6748_v20 = vcombine.high %v6671_v11, %v6679_v16  ;;  %v6750_v21 = vcombine.high %v6672_v17, %v6680_v18  ;;  %v6655_v22 = vld [vmem:[%s10724_s1 + $0x340] sm:$0xff]  ;;  %v6656_v24 = vld [vmem:[%s10724_s1 + $0x348] sm:$0xff]  ;;  %6779 = vmatprep.subr.msk.bf16.mxu0 %vm1066_vm0, %v6764_v12  ;;  %6784 = vmatprep.subr.msk.bf16.mxu1 %vm1066_vm0, %v6766_v13  ;;  %v1068_v25 = vsel %vm1066_vm0, %v6763_v14, 0  ;;  %v1074_v26 = vsel %vm1066_vm0, %v6765_v15, 0  ;;  %v7765_v60 = vld [vmem:[%s7665_s19 + $0x10] sm:$0xf] }
  0x2a   : > { %v6663_v23 = vld [vmem:[%s10724_s1 + $0x380] sm:$0xff]  ;;  %v6664_v27 = vld [vmem:[%s10724_s1 + $0x388] sm:$0xff]  ;;  %1122 = vmatpush1.bf16.msra.mxu0 %v1068_v25  ;;  %1195 = vmatpush1.bf16.msra.mxu1 %v1074_v26  ;;  %v6747_v28 = vcombine.low %v6671_v11, %v6679_v16  ;;  %v6749_v29 = vcombine.low %v6672_v17, %v6680_v18  ;;  %v520_v52 = vshll.u32 %v486_v42, 16  ;;  %v513_v56 = vrot.slane %v511_v45, 4  ;;  %v487_v2 = vld [vmem:[%s7665_s19 + $0x14] sm:$0x1] }
  0x2b   : > { %v7707_v30 = vld [vmem:[%s10724_s1 + $0x2c0] sm:$0xff]  ;;  %1123 = vmatprep.subr.bf16.mxu0 %v6748_v20  ;;  %1196 = vmatprep.subr.bf16.mxu1 %v6750_v21  ;;  %v6732_v31 = vcombine.high %v6655_v22, %v6663_v23  ;;  %v6734_v32 = vcombine.high %v6656_v24, %v6664_v27  ;;  %v7717_v34 = vld [vmem:[%s10724_s1 + $0x2c8] sm:$0xff]  ;;  %v6731_v36 = vcombine.low %v6655_v22, %v6663_v23  ;;  %vm494_vm2 = vsmask.f32 7440  ;;  %v6689_v6 = vld [vmem:[%s10724_s1 + $0x450] sm:$0xff] }
  0x2c   : > { %v7712_v33 = vld [vmem:[%s10724_s1 + $0x300] sm:$0xff]  ;;  %v7722_v35 = vld [vmem:[%s10724_s1 + $0x308] sm:$0xff]  ;;  %v6733_v40 = vcombine.low %v6656_v24, %v6664_v27  ;;  %v516_v59 = vrot.slane %v514_v51, 5  ;;  %v522_v5 = vrot.slane %v520_v52, 5  ;;  %v525_v8 = vshrl.u32 %v7765_v60, 16  ;;  %vm7786_vm3 = vmor %vm493_vm1, %vm494_vm2 }
  0x2d   : > { %v7725_v37 = vld [vmem:[%s7665_s19] sm:$0xf]  ;;  %v485_v39 = vld [vmem:[%s7665_s19 + $0x4] sm:$0x1]  ;;  %v7734_v41 = vld [vmem:[%s10724_s1 + $0x240] sm:$0xff]  ;;  %v6716_v46 = vcombine.high %v7707_v30, %v7712_v33  ;;  %v6718_v53 = vcombine.high %v7717_v34, %v7722_v35  ;;  %v6715_v57 = vcombine.low %v7707_v30, %v7712_v33  ;;  %v6717_v58 = vcombine.low %v7717_v34, %v7722_v35 }
  0x2e   : > { %v497_v43 = vshrl.u32 %v7725_v37, 16  ;;  %v500_v44 = vshll.u32 %v7725_v37, 16  ;;  %1124 = vmatpush1.bf16.msra.mxu0 %v6747_v28  ;;  %1197 = vmatpush1.bf16.msra.mxu1 %v6749_v29  ;;  %v7745_v47 = vld [vmem:[%s10724_s1 + $0x280] sm:$0xff]  ;;  %v7750_v48 = vld [vmem:[%s10724_s1 + $0x248] sm:$0xff]  ;;  %v506_v50 = vshll.u32 %v485_v39, 16  ;;  %v517_v4 = vor.u32 %v516_v59, %v513_v56  ;;  %v6690_v15 = vld [vmem:[%s10724_s1 + $0x458] sm:$0xff] }
  0x2f   : > { %v7755_v49 = vld [vmem:[%s10724_s1 + $0x288] sm:$0xff]  ;;  %1125 = vmatprep.subr.bf16.mxu0 %v6732_v31  ;;  %1198 = vmatprep.subr.bf16.mxu1 %v6734_v32  ;;  %v6700_v61 = vcombine.high %v7734_v41, %v7745_v47  ;;  %v6699_v63 = vcombine.low %v7734_v41, %v7745_v47  ;;  %v7774_v1 = vld [vmem:[%s7665_s19 + $0x18] sm:$0xf]  ;;  %v488_v7 = vld [vmem:[%s7665_s19 + $0x1c] sm:$0x1]  ;;  %v528_v12 = vshll.u32 %v7765_v60, 16  ;;  %v6768_v20 = vcombine.high %v6689_v6, %v6689_v6 }
  0x30   : > { %v499_v54 = vrot.slane %v497_v43, 4  ;;  %v502_v55 = vrot.slane %v500_v44, 5  ;;  %v6702_v62 = vcombine.high %v7750_v48, %v7755_v49  ;;  %v508_v3 = vrot.slane %v506_v50, 5  ;;  %v7799_v22 = vld [vmem:[%s10724_s1 + $0x3d0] sm:$0xff]  ;;  %v7807_v26 = vld [vmem:[%s7665_s19 + $0x20] sm:$0xf] }
  0x31   : > { %v6701_v9 = vcombine.low %v7750_v48, %v7755_v49  ;;  %v534_v13 = vshll.u32 %v487_v2, 16  ;;  %v518_v14 = vrot.slane %v517_v4, 4  ;;  %v527_v16 = vrot.slane %v525_v8, 4  ;;  %v7804_v23 = vld [vmem:[%s10724_s1 + $0x410] sm:$0xff]  ;;  %v489_v41 = vld [vmem:[%s7665_s19 + $0x24] sm:$0x1] }
  0x32   : > { %v503_v0 = vor.u32 %v502_v55, %v499_v54  ;;  %1126 = vmatpush1.bf16.msra.mxu0 %v6731_v36  ;;  %1199 = vmatpush1.bf16.msra.mxu1 %v6733_v40  ;;  %v539_v17 = vshrl.u32 %v7774_v1, 16  ;;  %v542_v18 = vshll.u32 %v7774_v1, 16  ;;  %v6767_v21 = vcombine.low %v6689_v6, %v6689_v6  ;;  %v7814_v31 = vld [vmem:[%s7665_s19 + $0x28] sm:$0xf]  ;;  %v6674_v40 = vld [vmem:[%s10724_s1 + $0x3d8] sm:$0xff] }
  0x33   : > { %1127 = vmatprep.subr.bf16.mxu0 %v6716_v46  ;;  %1200 = vmatprep.subr.bf16.mxu1 %v6718_v53  ;;  %v530_v24 = vrot.slane %v528_v12, 5  ;;  %v548_v25 = vshll.u32 %v488_v7, 16  ;;  %v523_v28 = vsel %vm7786_vm3, %v518_v14, %v522_v5  ;;  %vm1053_vm4 = vcmask 588800   ;;  %v6682_v45 = vld [vmem:[%s10724_s1 + $0x418] sm:$0xff]  ;;  %v490_v46 = vld [vmem:[%s7665_s19 + $0x2c] sm:$0x1] }
  0x34   : > { %v504_v11 = vrot.slane %v503_v0, 4  ;;  %v541_v29 = vrot.slane %v539_v17, 4  ;;  %v544_v30 = vrot.slane %v542_v18, 5  ;;  %v6770_v32 = vcombine.high %v6690_v15, %v6690_v15  ;;  %v7833_v53 = vld [vmem:[%s7665_s19 + $0x30] sm:$0xf]  ;;  %v7842_v56 = vld [vmem:[%s10724_s1 + $0x350] sm:$0xff] }
  0x35   : > { %v6769_v33 = vcombine.low %v6690_v15, %v6690_v15  ;;  %v531_v34 = vor.u32 %v530_v24, %v527_v16  ;;  %v6751_v35 = vcombine.low %v7799_v22, %v7804_v23  ;;  %v536_v36 = vrot.slane %v534_v13, 5  ;;  %v6658_v2 = vld [vmem:[%s10724_s1 + $0x358] sm:$0xff]  ;;  %v7856_v4 = vld [vmem:[%s7665_s19 + $0x38] sm:$0xf] }
  0x36   : > { %1128 = vmatpush1.bf16.msra.mxu0 %v6715_v57  ;;  %1201 = vmatpush1.bf16.msra.mxu1 %v6717_v58  ;;  %v509_v27 = vsel %vm7786_vm3, %v504_v11, %v508_v3  ;;  %v545_v39 = vor.u32 %v544_v30, %v541_v29  ;;  %v553_v42 = vshrl.u32 %v7807_v26, 16  ;;  %v550_v44 = vrot.slane %v548_v25, 5  ;;  %v6665_v57 = vld [vmem:[%s10724_s1 + $0x390] sm:$0xff]  ;;  %v6666_v3 = vld [vmem:[%s10724_s1 + $0x398] sm:$0xff] }
  0x37   : > { %1129 = vmatprep.subr.bf16.mxu0 %v6700_v61  ;;  %1202 = vmatprep.subr.bf16.mxu1 %v6702_v62  ;;  %v7823_v43 = vcombine.low %v509_v27, %v523_v28  ;;  %v556_v47 = vshll.u32 %v7807_v26, 16  ;;  %v567_v48 = vshrl.u32 %v7814_v31, 16  ;;  %v532_v49 = vrot.slane %v531_v34, 4  ;;  %v6649_v28 = vld [vmem:[%s10724_s1 + $0x310] sm:$0xff]  ;;  %v6642_v30 = vld [vmem:[%s10724_s1 + $0x2d8] sm:$0xff] }
  0x38   : > { %v546_v50 = vrot.slane %v545_v39, 4  ;;  %v555_v51 = vrot.slane %v553_v42, 4  ;;  %v570_v52 = vshll.u32 %v7814_v31, 16  ;;  %v1080_v54 = vsel %vm1066_vm0, %v6767_v21, 0  ;;  %v491_v34 = vld [vmem:[%s7665_s19 + $0x34] sm:$0x1] }
  0x39   : > { %v1086_v55 = vsel %vm1066_vm0, %v6769_v33, 0  ;;  %v558_v58 = vrot.slane %v556_v47, 5  ;;  %v569_v59 = vrot.slane %v567_v48, 4  ;;  %v6752_v61 = vcombine.high %v7799_v22, %v7804_v23  ;;  %v492_v42 = vld [vmem:[%s7665_s19 + $0x3c] sm:$0x1]  ;;  %v6633_v22 = vld [vmem:[%s10724_s1 + $0x290] sm:$0xff] }
  0x3a   : > { %1130 = vmatpush1.bf16.msra.mxu0 %v6699_v63  ;;  %1203 = vmatpush1.bf16.msra.mxu1 %v6701_v9  ;;  %v6754_v62 = vcombine.high %v6674_v40, %v6682_v45  ;;  %v562_v63 = vshll.u32 %v489_v41, 16  ;;  %v572_v0 = vrot.slane %v570_v52, 5  ;;  %v6753_v5 = vcombine.low %v6674_v40, %v6682_v45  ;;  %v6626_v48 = vld [vmem:[%s10724_s1 + $0x258] sm:$0xff] }
  0x3b   : > { %6789 = vmatprep.subr.msk.bf16.mxu0 %vm1066_vm0, %v6768_v20  ;;  %6794 = vmatprep.subr.msk.bf16.mxu1 %vm1066_vm0, %v6770_v32  ;;  %v559_v6 = vor.u32 %v558_v58, %v555_v51  ;;  %v576_v7 = vshll.u32 %v490_v46, 16  ;;  %v581_v8 = vshrl.u32 %v7833_v53, 16  ;;  %v537_v9 = vsel %vm7786_vm3, %v532_v49, %v536_v36  ;;  %v6641_v20 = vld [vmem:[%s10724_s1 + $0x2d0] sm:$0xff]  ;;  %v6650_v32 = vld [vmem:[%s10724_s1 + $0x318] sm:$0xff] }
  0x3c   : > { %v551_v11 = vsel %vm7786_vm3, %v546_v50, %v550_v44  ;;  %v573_v12 = vor.u32 %v572_v0, %v569_v59  ;;  %v584_v13 = vshll.u32 %v7833_v53, 16  ;;  %v6736_v14 = vcombine.high %v7842_v56, %v6665_v57  ;;  %v6625_v46 = vld [vmem:[%s10724_s1 + $0x250] sm:$0xff]  ;;  %v6634_v49 = vld [vmem:[%s10724_s1 + $0x298] sm:$0xff]  ;;  %v6691_v59 = vld [vmem:[%s10724_s1 + $0x460] sm:$0xff] }
  0x3d   : > { %6780 = vmatmul.mubr.msk.bf16.vlgmr.msra.gmra.mxu0 %vm1053_vm4, %v7823_v43  ;;  %6785 = vmatmul.mubr.msk.bf16.vlgmr.msra.gmra.mxu1 %vm1053_vm4, %v7823_v43  ;;  %v6738_v15 = vcombine.high %v6658_v2, %v6666_v3  ;;  %v595_v16 = vshrl.u32 %v7856_v4, 16  ;;  %v6735_v17 = vcombine.low %v7842_v56, %v6665_v57  ;;  %v564_v18 = vrot.slane %v562_v63, 5 }
  0x3e   : > { %1268 = vmatpush1.bf16.msra.mxu0 %v1080_v54  ;;  %1341 = vmatpush1.bf16.msra.mxu1 %v1086_v55  ;;  %v598_v21 = vshll.u32 %v7856_v4, 16  ;;  %v7877_v24 = vcombine.low %v537_v9, %v551_v11  ;;  %v560_v25 = vrot.slane %v559_v6, 4  ;;  %v578_v27 = vrot.slane %v576_v7, 5 }
  0x3f   : > { %1157 = vmatprep.mubr.bf16.mxu0 %v10731_v19  ;;  %1230 = vmatprep.mubr.bf16.mxu1 %v10731_v19  ;;  %v583_v29 = vrot.slane %v581_v8, 4  ;;  %v574_v33 = vrot.slane %v573_v12, 4  ;;  %v586_v36 = vrot.slane %v584_v13, 5  ;;  %v597_v39 = vrot.slane %v595_v16, 4  ;;  %v6675_v13 = vld [vmem:[%s10724_s1 + $0x3e0] sm:$0xff]  ;;  %v6676_v16 = vld [vmem:[%s10724_s1 + $0x3e8] sm:$0xff] }
  0x40   : > { %1269 = vmatprep.subr.bf16.mxu0 %v6752_v61  ;;  %1342 = vmatprep.subr.bf16.mxu1 %v6754_v62  ;;  %v600_v40 = vrot.slane %v598_v21, 5  ;;  %v6737_v41 = vcombine.low %v6658_v2, %v6666_v3  ;;  %v6720_v44 = vcombine.high %v6641_v20, %v6649_v28  ;;  %v6722_v45 = vcombine.high %v6642_v30, %v6650_v32  ;;  %v6692_v61 = vld [vmem:[%s10724_s1 + $0x468] sm:$0xff] }
  0x41   : > { %v565_v23 = vsel %vm7786_vm3, %v560_v25, %v564_v18  ;;  %v590_v47 = vshll.u32 %v491_v34, 16  ;;  %v579_v50 = vsel %vm7786_vm3, %v574_v33, %v578_v27  ;;  %v587_v51 = vor.u32 %v586_v36, %v583_v29  ;;  %v6644_v33 = vld [vmem:[%s10724_s1 + $0x2e8] sm:$0xff] }
  0x42   : > { %1270 = vmatpush1.bf16.msra.mxu0 %v6751_v35  ;;  %1343 = vmatpush1.bf16.msra.mxu1 %v6753_v5  ;;  %v6719_v35 = vcombine.low %v6641_v20, %v6649_v28  ;;  %v601_v52 = vor.u32 %v600_v40, %v597_v39  ;;  %v604_v54 = vshll.u32 %v492_v42, 16  ;;  %v6721_v55 = vcombine.low %v6642_v30, %v6650_v32  ;;  %v6667_v28 = vld [vmem:[%s10724_s1 + $0x3a0] sm:$0xff]  ;;  %v6652_v34 = vld [vmem:[%s10724_s1 + $0x328] sm:$0xff] }
  0x43   : > { %1271 = vmatprep.subr.bf16.mxu0 %v6736_v14  ;;  %1344 = vmatprep.subr.bf16.mxu1 %v6738_v15  ;;  %v6704_v56 = vcombine.high %v6625_v46, %v6633_v22  ;;  %v6706_v57 = vcombine.high %v6626_v48, %v6634_v49  ;;  %v7915_v58 = vcombine.low %v565_v23, %v579_v50  ;;  %v588_v62 = vrot.slane %v587_v51, 4  ;;  %v6683_v15 = vld [vmem:[%s10724_s1 + $0x420] sm:$0xff] }
  0x44   : > { %v592_v63 = vrot.slane %v590_v47, 5  ;;  %v602_v0 = vrot.slane %v601_v52, 4  ;;  %v606_v2 = vrot.slane %v604_v54, 5  ;;  %v6703_v3 = vcombine.low %v6625_v46, %v6633_v22  ;;  %v6627_v42 = vld [vmem:[%s10724_s1 + $0x260] sm:$0xff]  ;;  %v6636_v46 = vld [vmem:[%s10724_s1 + $0x2a8] sm:$0xff] }
  0x45   : > { %6781 = vmatmul.mubr.msk.bf16.gmra.mxu0 %vm1053_vm4, %v7877_v24  ;;  %6786 = vmatmul.mubr.msk.bf16.gmra.mxu1 %vm1053_vm4, %v7877_v24  ;;  %v6705_v5 = vcombine.low %v6626_v48, %v6634_v49  ;;  %v6772_v6 = vcombine.high %v6691_v59, %v6691_v59  ;;  %v6774_v7 = vcombine.high %v6692_v61, %v6692_v61  ;;  %v6693_v48 = vld [vmem:[%s10724_s1 + $0x470] sm:$0xff]  ;;  %v6694_v49 = vld [vmem:[%s10724_s1 + $0x478] sm:$0xff]  ;;  %vm2747_vm5 = vcmask 1042432  }
  0x46   : > { %1272 = vmatpush1.bf16.msra.mxu0 %v6735_v17  ;;  %1167 = vmatprep.mubr.bf16.mxu0 %v10731_v19  ;;  %v593_v8 = vsel %vm7786_vm3, %v588_v62, %v592_v63  ;;  %v607_v9 = vsel %vm7786_vm3, %v602_v0, %v606_v2  ;;  %v6771_v10 = vcombine.low %v6691_v59, %v6691_v59  ;;  %v6684_v17 = vld [vmem:[%s10724_s1 + $0x428] sm:$0xff]  ;;  %v6685_v59 = vld [vmem:[%s10724_s1 + $0x430] sm:$0xff]  ;;  %v6686_v62 = vld [vmem:[%s10724_s1 + $0x438] sm:$0xff]  ;;  %vm2748_vm6 = vcmask 1046532  }
  0x47   : > { %1240 = vmatprep.mubr.bf16.mxu1 %v10731_v19  ;;  %1345 = vmatpush1.bf16.msra.mxu1 %v6737_v41  ;;  %v7935_v11 = vcombine.low %v593_v8, %v607_v9  ;;  %v6773_v12 = vcombine.low %v6692_v61, %v6692_v61  ;;  %v7948_v14 = vcombine.low %v7725_v37, %v7728_v38  ;;  %v6659_v38 = vld [vmem:[%s10724_s1 + $0x360] sm:$0xff]  ;;  %v6678_v61 = vld [vmem:[%s10724_s1 + $0x3f8] sm:$0xff]  ;;  %v6661_v2 = vld [vmem:[%s10724_s1 + $0x370] sm:$0xff]  ;;  %vm5236_vm8 = vcmask 1041409  }
  0x48   : > { %1273 = vmatprep.subr.bf16.mxu0 %v6720_v44  ;;  %1346 = vmatprep.subr.bf16.mxu1 %v6722_v45  ;;  %v7961_v18 = vcombine.low %v7765_v60, %v7774_v1  ;;  %v1092_v20 = vsel %vm1066_vm0, %v6771_v10, 0  ;;  %v7970_v21 = vcombine.low %v7807_v26, %v7814_v31  ;;  %v6756_v25 = vcombine.high %v6675_v13, %v6683_v15  ;;  %v6660_v60 = vld [vmem:[%s10724_s1 + $0x368] sm:$0xff]  ;;  %v6635_v44 = vld [vmem:[%s10724_s1 + $0x2a0] sm:$0xff]  ;;  %v6670_v8 = vld [vmem:[%s10724_s1 + $0x3b8] sm:$0xff] }
  0x49   : > { %v1098_v37 = vsel %vm1066_vm0, %v6773_v12, 0  ;;  %v6758_v27 = vcombine.high %v6676_v16, %v6684_v17  ;;  %v6668_v1 = vld [vmem:[%s10724_s1 + $0x3a8] sm:$0xff]  ;;  %v7983_v29 = vcombine.low %v7833_v53, %v7856_v4  ;;  %v6755_v26 = vcombine.low %v6675_v13, %v6683_v15  ;;  %v6643_v53 = vld [vmem:[%s10724_s1 + $0x2e0] sm:$0xff]  ;;  %v6645_v15 = vld [vmem:[%s10724_s1 + $0x2f0] sm:$0xff] }
  0x4a   : > { %1274 = vmatpush1.bf16.msra.mxu0 %v6719_v35  ;;  %v6757_v31 = vcombine.low %v6676_v16, %v6684_v17  ;;  %v6740_v30 = vcombine.high %v6659_v38, %v6667_v28  ;;  %v6742_v32 = vcombine.high %v6660_v60, %v6668_v1  ;;  %v6651_v4 = vld [vmem:[%s10724_s1 + $0x320] sm:$0xff]  ;;  %v6739_v36 = vcombine.low %v6659_v38, %v6667_v28  ;;  %v6628_v45 = vld [vmem:[%s10724_s1 + $0x268] sm:$0xff]  ;;  %v6653_v16 = vld [vmem:[%s10724_s1 + $0x330] sm:$0xff] }
  0x4b   : > { %1347 = vmatpush1.bf16.msra.mxu1 %v6721_v55  ;;  %1275 = vmatprep.subr.bf16.mxu0 %v6704_v56  ;;  %v6741_v39 = vcombine.low %v6660_v60, %v6668_v1  ;;  %v6724_v40 = vcombine.high %v6643_v53, %v6651_v4  ;;  %v6726_v41 = vcombine.high %v6644_v33, %v6652_v34  ;;  %v6646_v17 = vld [vmem:[%s10724_s1 + $0x2f8] sm:$0xff]  ;;  %v6629_v28 = vld [vmem:[%s10724_s1 + $0x270] sm:$0xff]  ;;  %vm8651_vm7 = vmor %vm2747_vm5, %vm2748_vm6  ;;  %vm5238_vm9 = vcmask 1042434  }
  0x4c   : > { %1348 = vmatprep.subr.bf16.mxu1 %v6706_v57  ;;  %v6723_v22 = vcombine.low %v6643_v53, %v6651_v4  ;;  %v6725_v23 = vcombine.low %v6644_v33, %v6652_v34  ;;  %v6708_v35 = vcombine.high %v6627_v42, %v6635_v44  ;;  %v6710_v47 = vcombine.high %v6628_v45, %v6636_v46  ;;  %v6677_v57 = vld [vmem:[%s10724_s1 + $0x3f0] sm:$0xff]  ;;  %v6630_v1 = vld [vmem:[%s10724_s1 + $0x278] sm:$0xff]  ;;  %v477_v4 = vld [vmem:[%s10724_s1 + $0x200] sm:$0xff] }
  0x4d   : > { %6782 = vmatmul.mubr.msk.bf16.gmra.mxu0 %vm1053_vm4, %v7915_v58  ;;  %6787 = vmatmul.mubr.msk.bf16.gmra.mxu1 %vm1053_vm4, %v7915_v58  ;;  %v6707_v50 = vcombine.low %v6627_v42, %v6635_v44  ;;  %v6709_v51 = vcombine.low %v6628_v45, %v6636_v46  ;;  %v6776_v52 = vcombine.high %v6693_v48, %v6693_v48  ;;  %v6637_v60 = vld [vmem:[%s10724_s1 + $0x2b0] sm:$0xff]  ;;  %v478_v33 = vld [vmem:[%s10724_s1 + $0x208] sm:$0xff]  ;;  %v461_v44 = vld [vmem:[%s10724_s1 + $0x180] sm:$0xff]  ;;  %vm5240_vm10 = vcmask 1043459  }
  0x4e   : > { %1177 = vmatprep.mubr.bf16.mxu0 %v10731_v19  ;;  %1250 = vmatprep.mubr.bf16.mxu1 %v10731_v19  ;;  %v6778_v54 = vcombine.high %v6694_v49, %v6694_v49  ;;  %v6775_v55 = vcombine.low %v6693_v48, %v6693_v48  ;;  %v6777_v56 = vcombine.low %v6694_v49, %v6694_v49  ;;  %v469_v45 = vld [vmem:[%s10724_s1 + $0x1c0] sm:$0xff]  ;;  %v462_v46 = vld [vmem:[%s10724_s1 + $0x188] sm:$0xff]  ;;  %vm5242_vm11 = vcmask 1044484  }
  0x4f   : > { %1276 = vmatpush1.bf16.msra.mxu0 %v6703_v3  ;;  %1349 = vmatpush1.bf16.msra.mxu1 %v6705_v5  ;;  %v6760_v3 = vcombine.high %v6677_v57, %v6685_v59  ;;  %v6762_v5 = vcombine.high %v6678_v61, %v6686_v62  ;;  %v6759_v9 = vcombine.low %v6677_v57, %v6685_v59  ;;  %v429_v59 = vld [vmem:[%s10724_s1 + $0x80] sm:$0xff]  ;;  %vm5244_vm12 = vcmask 1045509  }
  0x50   : > { %6799 = vmatprep.subr.msk.bf16.mxu0 %vm1066_vm0, %v6772_v6  ;;  %6804 = vmatprep.subr.msk.bf16.mxu1 %vm1066_vm0, %v6774_v7  ;;  %v1104_v63 = vsel %vm1066_vm0, %v6775_v55, 0  ;;  %v1110_v0 = vsel %vm1066_vm0, %v6777_v56, 0  ;;  %v6669_v6 = vld [vmem:[%s10724_s1 + $0x3b0] sm:$0xff]  ;;  %v6662_v7 = vld [vmem:[%s10724_s1 + $0x378] sm:$0xff]  ;;  %v6761_v10 = vcombine.low %v6678_v61, %v6686_v62  ;;  %v6711_v34 = vcombine.low %v6629_v28, %v6637_v60  ;;  %v430_v61 = vld [vmem:[%s10724_s1 + $0x88] sm:$0xff] }
  0x51   : > { %v6744_v12 = vcombine.high %v6661_v2, %v6669_v6  ;;  %v6746_v13 = vcombine.high %v6662_v7, %v6670_v8  ;;  %v6745_v38 = vcombine.low %v6662_v7, %v6670_v8  ;;  %v6889_v42 = vcombine.low %v478_v33, %v478_v33  ;;  %v438_v62 = vld [vmem:[%s10724_s1 + $0xc8] sm:$0xff] }
  0x52   : > { %v6872_v48 = vcombine.high %v461_v44, %v469_v45  ;;  %v414_v7 = vld [vmem:[%s10724_s1 + $0x8] sm:$0xff]  ;;  %vm5246_vm13 = vcmask 1046534   ;;  %vm5248_vm14 = vcmask 1047559  }
  0x53   : > { %v422_v8 = vld [vmem:[%s10724_s1 + $0x48] sm:$0xff] }
  0x55   : > { %6783 = vmatmul.mubr.msk.bf16.gmra.mxu0 %vm1053_vm4, %v7935_v11  ;;  %6788 = vmatmul.mubr.msk.bf16.gmra.mxu1 %vm1053_vm4, %v7935_v11 }
  0x56   : > { %1293 = vmatprep.mubr.bf16.mxu0 %v10731_v19  ;;  %1366 = vmatprep.mubr.bf16.mxu1 %v10731_v19 }
  0x5d   : > { %6790 = vmatmul.mubr.msk.bf16.vlgmr.msra.gmra.mxu0 %vm1053_vm4, %v7823_v43  ;;  %6795 = vmatmul.mubr.msk.bf16.vlgmr.msra.gmra.mxu1 %vm1053_vm4, %v7823_v43 }
  0x5e   : > { %1414 = vmatpush1.bf16.msra.mxu0 %v1092_v20  ;;  %1487 = vmatpush1.bf16.msra.mxu1 %v1098_v37  ;;  %v6654_v20 = vld [vmem:[%s10724_s1 + $0x338] sm:$0xff]  ;;  %v6743_v37 = vcombine.low %v6661_v2, %v6669_v6  ;;  %v421_v6 = vld [vmem:[%s10724_s1 + $0x40] sm:$0xff] }
  0x5f   : > { %1303 = vmatprep.mubr.bf16.mxu0 %v10731_v19  ;;  %1376 = vmatprep.mubr.bf16.mxu1 %v10731_v19 }
  0x60   : > { %1415 = vmatprep.subr.bf16.mxu0 %v6756_v25  ;;  %1488 = vmatprep.subr.bf16.mxu1 %v6758_v27  ;;  %v6728_v25 = vcombine.high %v6645_v15, %v6653_v16  ;;  %v6730_v27 = vcombine.high %v6646_v17, %v6654_v20 }
  0x62   : > { %1416 = vmatpush1.bf16.msra.mxu0 %v6755_v26  ;;  %1489 = vmatpush1.bf16.msra.mxu1 %v6757_v31  ;;  %v6638_v26 = vld [vmem:[%s10724_s1 + $0x2b8] sm:$0xff]  ;;  %v6727_v31 = vcombine.low %v6645_v15, %v6653_v16 }
  0x63   : > { %1417 = vmatprep.subr.bf16.mxu0 %v6740_v30  ;;  %1490 = vmatprep.subr.bf16.mxu1 %v6742_v32  ;;  %v6729_v30 = vcombine.low %v6646_v17, %v6654_v20  ;;  %v6712_v32 = vcombine.high %v6629_v28, %v6637_v60  ;;  %v6714_v53 = vcombine.high %v6630_v1, %v6638_v26  ;;  %v480_v15 = vld [vmem:[%s10724_s1 + $0x218] sm:$0xff] }
  0x64   : > { %v6825_v17 = vcombine.low %v414_v7, %v422_v8  ;;  %v464_v28 = vld [vmem:[%s10724_s1 + $0x198] sm:$0xff] }
  0x65   : > { %6791 = vmatmul.mubr.msk.bf16.gmra.mxu0 %vm1053_vm4, %v7877_v24  ;;  %6796 = vmatmul.mubr.msk.bf16.gmra.mxu1 %vm1053_vm4, %v7877_v24 }
  0x66   : > { %1418 = vmatpush1.bf16.msra.mxu0 %v6739_v36  ;;  %1313 = vmatprep.mubr.bf16.mxu0 %v10731_v19  ;;  %v6713_v36 = vcombine.low %v6630_v1, %v6638_v26  ;;  %v447_v26 = vld [vmem:[%s10724_s1 + $0x110] sm:$0xff] }
  0x67   : > { %1386 = vmatprep.mubr.bf16.mxu1 %v10731_v19  ;;  %1491 = vmatpush1.bf16.msra.mxu1 %v6741_v39  ;;  %v6888_v39 = vcombine.high %v477_v4, %v477_v4 }
  0x68   : > { %1419 = vmatprep.subr.bf16.mxu0 %v6724_v40  ;;  %1492 = vmatprep.subr.bf16.mxu1 %v6726_v41  ;;  %v6890_v40 = vcombine.high %v478_v33, %v478_v33  ;;  %v6887_v41 = vcombine.low %v477_v4, %v477_v4  ;;  %v456_v4 = vld [vmem:[%s10724_s1 + $0x158] sm:$0xff] }
  0x6a   : > { %1420 = vmatpush1.bf16.msra.mxu0 %v6723_v22  ;;  %v470_v22 = vld [vmem:[%s10724_s1 + $0x1c8] sm:$0xff] }
  0x6b   : > { %1493 = vmatpush1.bf16.msra.mxu1 %v6725_v23  ;;  %1421 = vmatprep.subr.bf16.mxu0 %v6708_v35  ;;  %v2092_v23 = vsel %vm1066_vm0, %v6887_v41, 0  ;;  %v2098_v35 = vsel %vm1066_vm0, %v6889_v42, 0  ;;  %v6874_v49 = vcombine.high %v462_v46, %v470_v22  ;;  %v6873_v55 = vcombine.low %v462_v46, %v470_v22  ;;  %v439_v41 = vld [vmem:[%s10724_s1 + $0xd0] sm:$0xff]  ;;  %v432_v42 = vld [vmem:[%s10724_s1 + $0x98] sm:$0xff] }
  0x6c   : > { %1494 = vmatprep.subr.bf16.mxu1 %v6710_v47  ;;  %v445_v47 = vld [vmem:[%s10724_s1 + $0x100] sm:$0xff] }
  0x6d   : > { %6792 = vmatmul.mubr.msk.bf16.gmra.mxu0 %vm1053_vm4, %v7915_v58  ;;  %6797 = vmatmul.mubr.msk.bf16.gmra.mxu1 %vm1053_vm4, %v7915_v58 }
  0x6e   : > { %1323 = vmatprep.mubr.bf16.mxu0 %v10731_v19  ;;  %1396 = vmatprep.mubr.bf16.mxu1 %v10731_v19 }
  0x6f   : > { %1422 = vmatpush1.bf16.msra.mxu0 %v6707_v50  ;;  %1495 = vmatpush1.bf16.msra.mxu1 %v6709_v51  ;;  %v453_v50 = vld [vmem:[%s10724_s1 + $0x140] sm:$0xff]  ;;  %v446_v51 = vld [vmem:[%s10724_s1 + $0x108] sm:$0xff] }
  0x70   : > { %6809 = vmatprep.subr.msk.bf16.mxu0 %vm1066_vm0, %v6776_v52  ;;  %6814 = vmatprep.subr.msk.bf16.mxu1 %vm1066_vm0, %v6778_v54  ;;  %v454_v52 = vld [vmem:[%s10724_s1 + $0x148] sm:$0xff]  ;;  %v6871_v54 = vcombine.low %v461_v44, %v469_v45  ;;  %v6856_v56 = vcombine.high %v445_v47, %v453_v50  ;;  %v440_v44 = vld [vmem:[%s10724_s1 + $0xd8] sm:$0xff] }
  0x71   : > { %v6858_v57 = vcombine.high %v446_v51, %v454_v52 }
  0x75   : > { %6793 = vmatmul.mubr.msk.bf16.gmra.mxu0 %vm1053_vm4, %v7935_v11  ;;  %6798 = vmatmul.mubr.msk.bf16.gmra.mxu1 %vm1053_vm4, %v7935_v11 }
  0x76   : > { %1439 = vmatprep.mubr.bf16.mxu0 %v10731_v19  ;;  %1512 = vmatprep.mubr.bf16.mxu1 %v10731_v19 }
  0x7d   : > { %6800 = vmatmul.mubr.msk.bf16.vlgmr.msra.gmra.mxu0 %vm1053_vm4, %v7823_v43  ;;  %6805 = vmatmul.mubr.msk.bf16.vlgmr.msra.gmra.mxu1 %vm1053_vm4, %v7823_v43 }
  0x7e   : > { %1560 = vmatpush1.bf16.msra.mxu0 %v1104_v63  ;;  %1633 = vmatpush1.bf16.msra.mxu1 %v1110_v0  ;;  %v6855_v63 = vcombine.low %v445_v47, %v453_v50  ;;  %v6857_v0 = vcombine.low %v446_v51, %v454_v52  ;;  %v423_v47 = vld [vmem:[%s10724_s1 + $0x50] sm:$0xff]  ;;  %v6845_v51 = vcombine.low %v432_v42, %v440_v44 }
  0x7f   : > { %1449 = vmatprep.mubr.bf16.mxu0 %v10731_v19  ;;  %1522 = vmatprep.mubr.bf16.mxu1 %v10731_v19 }
  0x80   : > { %1561 = vmatprep.subr.bf16.mxu0 %v6760_v3  ;;  %1634 = vmatprep.subr.bf16.mxu1 %v6762_v5  ;;  %v6842_v3 = vcombine.high %v430_v61, %v438_v62  ;;  %v413_v5 = vld [vmem:[%s10724_s1] sm:$0xff] }
  0x81   : > { %v6823_v16 = vcombine.low %v413_v5, %v421_v6 }
  0x82   : > { %1562 = vmatpush1.bf16.msra.mxu0 %v6759_v9  ;;  %1635 = vmatpush1.bf16.msra.mxu1 %v6761_v10  ;;  %v6841_v10 = vcombine.low %v430_v61, %v438_v62 }
  0x83   : > { %1563 = vmatprep.subr.bf16.mxu0 %v6744_v12  ;;  %1636 = vmatprep.subr.bf16.mxu1 %v6746_v13  ;;  %v6824_v12 = vcombine.high %v413_v5, %v421_v6  ;;  %v479_v13 = vld [vmem:[%s10724_s1 + $0x210] sm:$0xff]  ;;  %v474_v5 = vld [vmem:[%s10724_s1 + $0x1e8] sm:$0xff] }
  0x84   : > { %v6892_v20 = vcombine.high %v479_v13, %v479_v13 }
  0x85   : > { %6801 = vmatmul.mubr.msk.bf16.gmra.mxu0 %vm1053_vm4, %v7877_v24  ;;  %6806 = vmatmul.mubr.msk.bf16.gmra.mxu1 %vm1053_vm4, %v7877_v24 }
  0x86   : > { %1564 = vmatpush1.bf16.msra.mxu0 %v6743_v37  ;;  %1459 = vmatprep.mubr.bf16.mxu0 %v10731_v19  ;;  %v6894_v37 = vcombine.high %v480_v15, %v480_v15 }
  0x87   : > { %1532 = vmatprep.mubr.bf16.mxu1 %v10731_v19  ;;  %1637 = vmatpush1.bf16.msra.mxu1 %v6745_v38  ;;  %v6893_v38 = vcombine.low %v480_v15, %v480_v15 }
  0x88   : > { %1565 = vmatprep.subr.bf16.mxu0 %v6728_v25  ;;  %1638 = vmatprep.subr.bf16.mxu1 %v6730_v27  ;;  %v463_v25 = vld [vmem:[%s10724_s1 + $0x190] sm:$0xff] }
  0x89   : > { %v471_v27 = vld [vmem:[%s10724_s1 + $0x1d0] sm:$0xff]  ;;  %v2110_v1 = vsel %vm1066_vm0, %v6893_v38, 0  ;;  %v434_v38 = vld [vmem:[%s10724_s1 + $0xa8] sm:$0xff] }
  0x8a   : > { %1566 = vmatpush1.bf16.msra.mxu0 %v6727_v31  ;;  %v6876_v31 = vcombine.high %v463_v25, %v471_v27  ;;  %v6875_v33 = vcombine.low %v463_v25, %v471_v27  ;;  %v442_v25 = vld [vmem:[%s10724_s1 + $0xe8] sm:$0xff] }
  0x8b   : > { %1639 = vmatpush1.bf16.msra.mxu1 %v6729_v30  ;;  %1567 = vmatprep.subr.bf16.mxu0 %v6712_v32  ;;  %v455_v32 = vld [vmem:[%s10724_s1 + $0x150] sm:$0xff] }
  0x8c   : > { %1640 = vmatprep.subr.bf16.mxu1 %v6714_v53  ;;  %v448_v53 = vld [vmem:[%s10724_s1 + $0x118] sm:$0xff]  ;;  %v6859_v45 = vcombine.low %v447_v26, %v455_v32 }
  0x8d   : > { %6802 = vmatmul.mubr.msk.bf16.gmra.mxu0 %vm1053_vm4, %v7915_v58  ;;  %6807 = vmatmul.mubr.msk.bf16.gmra.mxu1 %vm1053_vm4, %v7915_v58  ;;  %v6861_v46 = vcombine.low %v448_v53, %v456_v4 }
  0x8e   : > { %1469 = vmatprep.mubr.bf16.mxu0 %v10731_v19  ;;  %1542 = vmatprep.mubr.bf16.mxu1 %v10731_v19 }
  0x8f   : > { %1568 = vmatpush1.bf16.msra.mxu0 %v6711_v34  ;;  %1641 = vmatpush1.bf16.msra.mxu1 %v6713_v36  ;;  %v6860_v36 = vcombine.high %v447_v26, %v455_v32  ;;  %v425_v26 = vld [vmem:[%s10724_s1 + $0x60] sm:$0xff] }
  0x90   : > { %6903 = vmatprep.subr.msk.bf16.mxu0 %vm1066_vm0, %v6888_v39  ;;  %6908 = vmatprep.subr.msk.bf16.mxu1 %vm1066_vm0, %v6890_v40  ;;  %v6862_v39 = vcombine.high %v448_v53, %v456_v4  ;;  %v431_v40 = vld [vmem:[%s10724_s1 + $0x90] sm:$0xff]  ;;  %v6849_v53 = vcombine.low %v434_v38, %v442_v25 }
  0x91   : > { %v6844_v22 = vcombine.high %v431_v40, %v439_v41  ;;  %v6843_v50 = vcombine.low %v431_v40, %v439_v41 }
  0x95   : > { %6803 = vmatmul.mubr.msk.bf16.gmra.mxu0 %vm1053_vm4, %v7935_v11  ;;  %6808 = vmatmul.mubr.msk.bf16.gmra.mxu1 %vm1053_vm4, %v7935_v11 }
  0x96   : > { %1585 = vmatprep.mubr.bf16.mxu0 %v10731_v19  ;;  %1658 = vmatprep.mubr.bf16.mxu1 %v10731_v19 }
  0x9d   : > { %6810 = vmatmul.mubr.msk.bf16.vlgmr.msra.gmra.mxu0 %vm1053_vm4, %v7823_v43  ;;  %6815 = vmatmul.mubr.msk.bf16.vlgmr.msra.gmra.mxu1 %vm1053_vm4, %v7823_v43  ;;  %v437_v43 = vld [vmem:[%s10724_s1 + $0xc0] sm:$0xff] }
  0x9e   : > { %2146 = vmatpush1.bf16.msra.mxu0 %v2092_v23  ;;  %2219 = vmatpush1.bf16.msra.mxu1 %v2098_v35  ;;  %v6840_v2 = vcombine.high %v429_v59, %v437_v43  ;;  %v6839_v9 = vcombine.low %v429_v59, %v437_v43  ;;  %v6846_v23 = vcombine.high %v432_v42, %v440_v44  ;;  %v415_v35 = vld [vmem:[%s10724_s1 + $0x10] sm:$0xff] }
  0x9f   : > { %1595 = vmatprep.mubr.bf16.mxu0 %v10731_v19  ;;  %1668 = vmatprep.mubr.bf16.mxu1 %v10731_v19  ;;  %v6828_v52 = vcombine.high %v415_v35, %v423_v47 }
  0xa0   : > { %2147 = vmatprep.subr.bf16.mxu0 %v6872_v48  ;;  %2220 = vmatprep.subr.bf16.mxu1 %v6874_v49  ;;  %v416_v48 = vld [vmem:[%s10724_s1 + $0x18] sm:$0xff] }
  0xa1   : > { %v424_v49 = vld [vmem:[%s10724_s1 + $0x58] sm:$0xff] }
  0xa2   : > { %2148 = vmatpush1.bf16.msra.mxu0 %v6871_v54  ;;  %2221 = vmatpush1.bf16.msra.mxu1 %v6873_v55  ;;  %v6830_v54 = vcombine.high %v416_v48, %v424_v49  ;;  %v481_v55 = vld [vmem:[%s10724_s1 + $0x220] sm:$0xff]  ;;  %v6829_v59 = vcombine.low %v416_v48, %v424_v49  ;;  %v451_v49 = vld [vmem:[%s10724_s1 + $0x130] sm:$0xff] }
  0xa3   : > { %2149 = vmatprep.subr.bf16.mxu0 %v6856_v56  ;;  %2222 = vmatprep.subr.bf16.mxu1 %v6858_v57  ;;  %v482_v56 = vld [vmem:[%s10724_s1 + $0x228] sm:$0xff]  ;;  %v6827_v57 = vcombine.low %v415_v35, %v423_v47  ;;  %v6896_v43 = vcombine.high %v481_v55, %v481_v55  ;;  %v6895_v62 = vcombine.low %v481_v55, %v481_v55  ;;  %v476_v35 = vld [vmem:[%s10724_s1 + $0x1f8] sm:$0xff] }
  0xa4   : > { %v6898_v61 = vcombine.high %v482_v56, %v482_v56  ;;  %v460_v55 = vld [vmem:[%s10724_s1 + $0x178] sm:$0xff] }
  0xa5   : > { %6811 = vmatmul.mubr.msk.bf16.gmra.mxu0 %vm1053_vm4, %v7877_v24  ;;  %6816 = vmatmul.mubr.msk.bf16.gmra.mxu1 %vm1053_vm4, %v7877_v24  ;;  %v6826_v24 = vcombine.high %v414_v7, %v422_v8  ;;  %v2116_v6 = vsel %vm1066_vm0, %v6895_v62, 0  ;;  %v449_v8 = vld [vmem:[%s10724_s1 + $0x120] sm:$0xff] }
  0xa6   : > { %2150 = vmatpush1.bf16.msra.mxu0 %v6855_v63  ;;  %1605 = vmatprep.mubr.bf16.mxu0 %v10731_v19  ;;  %v6897_v63 = vcombine.low %v482_v56, %v482_v56 }
  0xa7   : > { %1678 = vmatprep.mubr.bf16.mxu1 %v10731_v19  ;;  %2223 = vmatpush1.bf16.msra.mxu1 %v6857_v0  ;;  %v465_v0 = vld [vmem:[%s10724_s1 + $0x1a0] sm:$0xff] }
  0xa8   : > { %2151 = vmatprep.subr.bf16.mxu0 %v6840_v2  ;;  %2224 = vmatprep.subr.bf16.mxu1 %v6842_v3  ;;  %v473_v2 = vld [vmem:[%s10724_s1 + $0x1e0] sm:$0xff]  ;;  %v466_v3 = vld [vmem:[%s10724_s1 + $0x1a8] sm:$0xff]  ;;  %v2122_v7 = vsel %vm1066_vm0, %v6897_v63, 0 }
  0xa9   : > { %v6879_v15 = vcombine.low %v465_v0, %v473_v2 }
  0xaa   : > { %2152 = vmatpush1.bf16.msra.mxu0 %v6839_v9  ;;  %v6880_v9 = vcombine.high %v465_v0, %v473_v2  ;;  %v435_v2 = vld [vmem:[%s10724_s1 + $0xb0] sm:$0xff] }
  0xab   : > { %2225 = vmatpush1.bf16.msra.mxu1 %v6841_v10  ;;  %2153 = vmatprep.subr.bf16.mxu0 %v6824_v12  ;;  %v6882_v10 = vcombine.high %v466_v3, %v474_v5  ;;  %v457_v12 = vld [vmem:[%s10724_s1 + $0x160] sm:$0xff] }
  0xac   : > { %2226 = vmatprep.subr.bf16.mxu1 %v6826_v24  ;;  %v450_v24 = vld [vmem:[%s10724_s1 + $0x128] sm:$0xff]  ;;  %v6863_v27 = vcombine.low %v449_v8, %v457_v12 }
  0xad   : > { %6812 = vmatmul.mubr.msk.bf16.gmra.mxu0 %vm1053_vm4, %v7915_v58  ;;  %6817 = vmatmul.mubr.msk.bf16.gmra.mxu1 %vm1053_vm4, %v7915_v58  ;;  %v6891_v58 = vcombine.low %v479_v13, %v479_v13  ;;  %v458_v13 = vld [vmem:[%s10724_s1 + $0x168] sm:$0xff] }
  0xae   : > { %1615 = vmatprep.mubr.bf16.mxu0 %v10731_v19  ;;  %1688 = vmatprep.mubr.bf16.mxu1 %v10731_v19 }
  0xaf   : > { %2154 = vmatpush1.bf16.msra.mxu0 %v6823_v16  ;;  %2227 = vmatpush1.bf16.msra.mxu1 %v6825_v17  ;;  %v2104_v60 = vsel %vm1066_vm0, %v6891_v58, 0  ;;  %v6881_v16 = vcombine.low %v466_v3, %v474_v5  ;;  %v6864_v17 = vcombine.high %v449_v8, %v457_v12  ;;  %v441_v58 = vld [vmem:[%s10724_s1 + $0xe0] sm:$0xff]  ;;  %v444_v8 = vld [vmem:[%s10724_s1 + $0xf8] sm:$0xff] }
  0xb0   : > { %6913 = vmatprep.subr.msk.bf16.mxu0 %vm1066_vm0, %v6892_v20  ;;  %6918 = vmatprep.subr.msk.bf16.mxu1 %vm1066_vm0, %v6894_v37  ;;  %v6866_v20 = vcombine.high %v450_v24, %v458_v13  ;;  %v433_v37 = vld [vmem:[%s10724_s1 + $0xa0] sm:$0xff] }
  0xb1   : > { %v6847_v32 = vcombine.low %v433_v37, %v441_v58 }
  0xb5   : > { %6813 = vmatmul.mubr.msk.bf16.gmra.mxu0 %vm1053_vm4, %v7935_v11  ;;  %6818 = vmatmul.mubr.msk.bf16.gmra.mxu1 %vm1053_vm4, %v7935_v11  ;;  %v472_v11 = vld [vmem:[%s10724_s1 + $0x1d8] sm:$0xff] }
  0xb6   : > { %2171 = vmatprep.mubr.bf16.mxu0 %v10731_v19  ;;  %2244 = vmatprep.mubr.bf16.mxu1 %v10731_v19  ;;  %v6878_v30 = vcombine.high %v464_v28, %v472_v11  ;;  %v6877_v34 = vcombine.low %v464_v28, %v472_v11  ;;  %v6865_v28 = vcombine.low %v450_v24, %v458_v13 }
  0xb7   : > { %v6848_v11 = vcombine.high %v433_v37, %v441_v58  ;;  %v420_v58 = vld [vmem:[%s10724_s1 + $0x38] sm:$0xff] }
  0xbd   : > { %6904 = vmatmul.mubr.msk.bf16.vlgmr.msra.gmra.mxu0 %vm1053_vm4, %v7948_v14  ;;  %6909 = vmatmul.mubr.msk.bf16.vlgmr.msra.gmra.mxu1 %vm1053_vm4, %v7948_v14 }
  0xbe   : > { %2292 = vmatpush1.bf16.msra.mxu0 %v2104_v60  ;;  %2365 = vmatpush1.bf16.msra.mxu1 %v2110_v1  ;;  %v6850_v60 = vcombine.high %v434_v38, %v442_v25  ;;  %v417_v1 = vld [vmem:[%s10724_s1 + $0x20] sm:$0xff]  ;;  %v428_v38 = vld [vmem:[%s10724_s1 + $0x78] sm:$0xff] }
  0xbf   : > { %2181 = vmatprep.mubr.bf16.mxu0 %v10731_v19  ;;  %2254 = vmatprep.mubr.bf16.mxu1 %v10731_v19  ;;  %v6832_v4 = vcombine.high %v417_v1, %v425_v26 }
  0xc0   : > { %2293 = vmatprep.subr.bf16.mxu0 %v6876_v31  ;;  %2366 = vmatprep.subr.bf16.mxu1 %v6878_v30  ;;  %v418_v31 = vld [vmem:[%s10724_s1 + $0x28] sm:$0xff] }
  0xc1   : > { %v426_v30 = vld [vmem:[%s10724_s1 + $0x68] sm:$0xff] }
  0xc2   : > { %2294 = vmatpush1.bf16.msra.mxu0 %v6875_v33  ;;  %2367 = vmatpush1.bf16.msra.mxu1 %v6877_v34  ;;  %v6834_v33 = vcombine.high %v418_v31, %v426_v30  ;;  %v483_v34 = vld [vmem:[%s10724_s1 + $0x230] sm:$0xff]  ;;  %v6833_v40 = vcombine.low %v418_v31, %v426_v30  ;;  %v7015_v30 = vld [vmem:[%s10724_s1 + $0x680] sm:$0xff] }
  0xc3   : > { %2295 = vmatprep.subr.bf16.mxu0 %v6860_v36  ;;  %2368 = vmatprep.subr.bf16.mxu1 %v6862_v39  ;;  %v484_v36 = vld [vmem:[%s10724_s1 + $0x238] sm:$0xff]  ;;  %v6831_v39 = vcombine.low %v417_v1, %v425_v26  ;;  %v6900_v41 = vcombine.high %v483_v34, %v483_v34  ;;  %v6899_v44 = vcombine.low %v483_v34, %v483_v34 }
  0xc4   : > { %v6902_v42 = vcombine.high %v484_v36, %v484_v36  ;;  %v6838_v1 = vcombine.high %v420_v58, %v428_v38  ;;  %v6837_v34 = vcombine.low %v420_v58, %v428_v38 }
  0xc5   : > { %6905 = vmatmul.mubr.msk.bf16.gmra.mxu0 %vm1053_vm4, %v7961_v18  ;;  %6910 = vmatmul.mubr.msk.bf16.gmra.mxu1 %vm1053_vm4, %v7961_v18  ;;  %v2128_v47 = vsel %vm1066_vm0, %v6899_v44, 0 }
  0xc6   : > { %2296 = vmatpush1.bf16.msra.mxu0 %v6859_v45  ;;  %2191 = vmatprep.mubr.bf16.mxu0 %v10731_v19  ;;  %v6901_v45 = vcombine.low %v484_v36, %v484_v36  ;;  %v7092_v36 = vcombine.high %v7015_v30, %v7015_v30 }
  0xc7   : > { %2264 = vmatprep.mubr.bf16.mxu1 %v10731_v19  ;;  %2369 = vmatpush1.bf16.msra.mxu1 %v6861_v46  ;;  %v467_v46 = vld [vmem:[%s10724_s1 + $0x1b0] sm:$0xff] }
  0xc8   : > { %2297 = vmatprep.subr.bf16.mxu0 %v6844_v22  ;;  %2370 = vmatprep.subr.bf16.mxu1 %v6846_v23  ;;  %v475_v22 = vld [vmem:[%s10724_s1 + $0x1f0] sm:$0xff]  ;;  %v468_v23 = vld [vmem:[%s10724_s1 + $0x1b8] sm:$0xff]  ;;  %v2134_v48 = vsel %vm1066_vm0, %v6901_v45, 0 }
  0xca   : > { %2298 = vmatpush1.bf16.msra.mxu0 %v6843_v50  ;;  %v6884_v50 = vcombine.high %v467_v46, %v475_v22 }
  0xcb   : > { %2371 = vmatpush1.bf16.msra.mxu1 %v6845_v51  ;;  %2299 = vmatprep.subr.bf16.mxu0 %v6828_v52  ;;  %v6886_v51 = vcombine.high %v468_v23, %v476_v35  ;;  %v459_v52 = vld [vmem:[%s10724_s1 + $0x170] sm:$0xff] }
  0xcc   : > { %2372 = vmatprep.subr.bf16.mxu1 %v6830_v54  ;;  %v452_v54 = vld [vmem:[%s10724_s1 + $0x138] sm:$0xff]  ;;  %v6868_v63 = vcombine.high %v451_v49, %v459_v52 }
  0xcd   : > { %6906 = vmatmul.mubr.msk.bf16.gmra.mxu0 %vm1053_vm4, %v7970_v21  ;;  %6911 = vmatmul.mubr.msk.bf16.gmra.mxu1 %vm1053_vm4, %v7970_v21  ;;  %v6870_v0 = vcombine.high %v452_v54, %v460_v55  ;;  %v6869_v24 = vcombine.low %v452_v54, %v460_v55 }
  0xce   : > { %2201 = vmatprep.mubr.bf16.mxu0 %v10731_v19  ;;  %2274 = vmatprep.mubr.bf16.mxu1 %v10731_v19 }
  0xcf   : > { %2300 = vmatpush1.bf16.msra.mxu0 %v6827_v57  ;;  %2373 = vmatpush1.bf16.msra.mxu1 %v6829_v59  ;;  %v6883_v59 = vcombine.low %v467_v46, %v475_v22 }
  0xd0   : > { %6923 = vmatprep.subr.msk.bf16.mxu0 %vm1066_vm0, %v6896_v43  ;;  %6928 = vmatprep.subr.msk.bf16.mxu1 %vm1066_vm0, %v6898_v61  ;;  %v6885_v43 = vcombine.low %v468_v23, %v476_v35 }
  0xd5   : > { %6907 = vmatmul.mubr.msk.bf16.gmra.mxu0 %vm1053_vm4, %v7983_v29  ;;  %6912 = vmatmul.mubr.msk.bf16.gmra.mxu1 %vm1053_vm4, %v7983_v29 }
  0xd6   : > { %2317 = vmatprep.mubr.bf16.mxu0 %v10731_v19  ;;  %2390 = vmatprep.mubr.bf16.mxu1 %v10731_v19 }
  0xdd   : > { %6914 = vmatmul.mubr.msk.bf16.vlgmr.msra.gmra.mxu0 %vm1053_vm4, %v7948_v14  ;;  %6919 = vmatmul.mubr.msk.bf16.vlgmr.msra.gmra.mxu1 %vm1053_vm4, %v7948_v14 }
  0xde   : > { %2438 = vmatpush1.bf16.msra.mxu0 %v2116_v6  ;;  %2511 = vmatpush1.bf16.msra.mxu1 %v2122_v7  ;;  %v443_v6 = vld [vmem:[%s10724_s1 + $0xf0] sm:$0xff]  ;;  %v436_v7 = vld [vmem:[%s10724_s1 + $0xb8] sm:$0xff] }
  0xdf   : > { %2327 = vmatprep.mubr.bf16.mxu0 %v10731_v19  ;;  %2400 = vmatprep.mubr.bf16.mxu1 %v10731_v19  ;;  %v6852_v13 = vcombine.high %v435_v2, %v443_v6  ;;  %v6851_v25 = vcombine.low %v435_v2, %v443_v6 }
  0xe0   : > { %2439 = vmatprep.subr.bf16.mxu0 %v6880_v9  ;;  %2512 = vmatprep.subr.bf16.mxu1 %v6882_v10  ;;  %v6867_v9 = vcombine.low %v451_v49, %v459_v52  ;;  %v6999_v52 = vld [vmem:[%s10724_s1 + $0x600] sm:$0xff] }
  0xe2   : > { %2440 = vmatpush1.bf16.msra.mxu0 %v6879_v15  ;;  %2513 = vmatpush1.bf16.msra.mxu1 %v6881_v16  ;;  %v6854_v15 = vcombine.high %v436_v7, %v444_v8  ;;  %v419_v16 = vld [vmem:[%s10724_s1 + $0x30] sm:$0xff] }
  0xe3   : > { %2441 = vmatprep.subr.bf16.mxu0 %v6864_v17  ;;  %2514 = vmatprep.subr.bf16.mxu1 %v6866_v20  ;;  %v427_v17 = vld [vmem:[%s10724_s1 + $0x70] sm:$0xff] }
  0xe5   : > { %6915 = vmatmul.mubr.msk.bf16.gmra.mxu0 %vm1053_vm4, %v7961_v18  ;;  %6920 = vmatmul.mubr.msk.bf16.gmra.mxu1 %vm1053_vm4, %v7961_v18 }
  0xe6   : > { %2442 = vmatpush1.bf16.msra.mxu0 %v6863_v27  ;;  %2337 = vmatprep.mubr.bf16.mxu0 %v10731_v19 }
  0xe7   : > { %2410 = vmatprep.mubr.bf16.mxu1 %v10731_v19  ;;  %2515 = vmatpush1.bf16.msra.mxu1 %v6865_v28 }
  0xe8   : > { %2443 = vmatprep.subr.bf16.mxu0 %v6848_v11  ;;  %2516 = vmatprep.subr.bf16.mxu1 %v6850_v60  ;;  %v6853_v11 = vcombine.low %v436_v7, %v444_v8  ;;  %v6836_v60 = vcombine.high %v419_v16, %v427_v17  ;;  %v6983_v8 = vld [vmem:[%s10724_s1 + $0x580] sm:$0xff] }
  0xea   : > { %2444 = vmatpush1.bf16.msra.mxu0 %v6847_v32  ;;  %v7016_v32 = vld [vmem:[%s10724_s1 + $0x688] sm:$0xff] }
  0xeb   : > { %2517 = vmatpush1.bf16.msra.mxu1 %v6849_v53  ;;  %2445 = vmatprep.subr.bf16.mxu0 %v6832_v4 }
  0xec   : > { %2518 = vmatprep.subr.bf16.mxu1 %v6834_v33  ;;  %v6835_v33 = vcombine.low %v419_v16, %v427_v17  ;;  %v6992_v16 = vld [vmem:[%s10724_s1 + $0x5c8] sm:$0xff] }
  0xed   : > { %6916 = vmatmul.mubr.msk.bf16.gmra.mxu0 %vm1053_vm4, %v7970_v21  ;;  %6921 = vmatmul.mubr.msk.bf16.gmra.mxu1 %vm1053_vm4, %v7970_v21 }
  0xee   : > { %2347 = vmatprep.mubr.bf16.mxu0 %v10731_v19  ;;  %2420 = vmatprep.mubr.bf16.mxu1 %v10731_v19 }
  0xef   : > { %2446 = vmatpush1.bf16.msra.mxu0 %v6831_v39  ;;  %2519 = vmatpush1.bf16.msra.mxu1 %v6833_v40  ;;  %v7094_v39 = vcombine.high %v7016_v32, %v7016_v32 }
  0xf0   : > { %6933 = vmatprep.subr.msk.bf16.mxu0 %vm1066_vm0, %v6900_v41  ;;  %6938 = vmatprep.subr.msk.bf16.mxu1 %vm1066_vm0, %v6902_v42 }
  0xf5   : > { %6917 = vmatmul.mubr.msk.bf16.gmra.mxu0 %vm1053_vm4, %v7983_v29  ;;  %6922 = vmatmul.mubr.msk.bf16.gmra.mxu1 %vm1053_vm4, %v7983_v29 }
  0xf6   : > { %2463 = vmatprep.mubr.bf16.mxu0 %v10731_v19  ;;  %2536 = vmatprep.mubr.bf16.mxu1 %v10731_v19 }
  0xfd   : > { %v8395_v56 = vpop.f32.mrf.mxu0  ;;  %v8397_v57 = vpop.f32.mrf.mxu1  ;;  %6924 = vmatmul.mubr.msk.bf16.vlgmr.msra.gmra.mxu0 %vm1053_vm4, %v7948_v14  ;;  %6929 = vmatmul.mubr.msk.bf16.vlgmr.msra.gmra.mxu1 %vm1053_vm4, %v7948_v14 }
  0xfe   : > { %2584 = vmatpush1.bf16.msra.mxu0 %v2128_v47  ;;  %2657 = vmatpush1.bf16.msra.mxu1 %v2134_v48 }
  0xff   : > { %v8403_v61 = vpop.f32.mrf.mxu0  ;;  %v8405_v62 = vpop.f32.mrf.mxu1  ;;  %2473 = vmatprep.mubr.bf16.mxu0 %v10731_v19  ;;  %2546 = vmatprep.mubr.bf16.mxu1 %v10731_v19 }
 0x100   : > { %2585 = vmatprep.subr.bf16.mxu0 %v6884_v50  ;;  %2658 = vmatprep.subr.bf16.mxu1 %v6886_v51  ;;  %v7091_v50 = vcombine.low %v7015_v30, %v7015_v30  ;;  %v7093_v51 = vcombine.low %v7016_v32, %v7016_v32 }
 0x101   : > { %v8412_v3 = vpop.f32.mrf.mxu0  ;;  %v8414_v5 = vpop.f32.mrf.mxu1 }
 0x102   : > { %2586 = vmatpush1.bf16.msra.mxu0 %v6883_v59  ;;  %2659 = vmatpush1.bf16.msra.mxu1 %v6885_v43  ;;  %v7007_v59 = vld [vmem:[%s10724_s1 + $0x640] sm:$0xff]  ;;  %v7000_v43 = vld [vmem:[%s10724_s1 + $0x608] sm:$0xff]  ;;  %v3240_v6 = vsel %vm1066_vm0, %v7091_v50, 0  ;;  %v3246_v7 = vsel %vm1066_vm0, %v7093_v51, 0 }
 0x103   : > { %v8425_v10 = vpop.f32.mrf.mxu0  ;;  %v8427_v12 = vpop.f32.mrf.mxu1  ;;  %2587 = vmatprep.subr.bf16.mxu0 %v6868_v63  ;;  %2660 = vmatprep.subr.bf16.mxu1 %v6870_v0  ;;  %v7008_v63 = vld [vmem:[%s10724_s1 + $0x648] sm:$0xff]  ;;  %v7075_v38 = vcombine.low %v6999_v52, %v7007_v59 }
 0x105   : > { %v8435_v20 = vpop.f32.mrf.mxu0  ;;  %v8437_v37 = vpop.f32.mrf.mxu1  ;;  %6925 = vmatmul.mubr.msk.bf16.gmra.mxu0 %vm1053_vm4, %v7961_v18  ;;  %6930 = vmatmul.mubr.msk.bf16.gmra.mxu1 %vm1053_vm4, %v7961_v18 }
 0x106   : > { %2588 = vmatpush1.bf16.msra.mxu0 %v6867_v9  ;;  %2483 = vmatprep.mubr.bf16.mxu0 %v10731_v19  ;;  %v7076_v9 = vcombine.high %v6999_v52, %v7007_v59 }
 0x107   : > { %v8450_v27 = vpop.f32.mrf.mxu0  ;;  %v8452_v28 = vpop.f32.mrf.mxu1  ;;  %2556 = vmatprep.mubr.bf16.mxu1 %v10731_v19  ;;  %2661 = vmatpush1.bf16.msra.mxu1 %v6869_v24  ;;  %v7078_v24 = vcombine.high %v7000_v43, %v7008_v63 }
 0x108   : > { %2589 = vmatprep.subr.bf16.mxu0 %v6852_v13  ;;  %2662 = vmatprep.subr.bf16.mxu1 %v6854_v15  ;;  %v6991_v13 = vld [vmem:[%s10724_s1 + $0x5c0] sm:$0xff]  ;;  %v6984_v15 = vld [vmem:[%s10724_s1 + $0x588] sm:$0xff] }
 0x109   : > { %v8455_v26 = vpop.f32.mrf.mxu0  ;;  %v8457_v31 = vpop.f32.mrf.mxu1  ;;  %v7062_v30 = vcombine.high %v6984_v15, %v6992_v16  ;;  %v7059_v50 = vcombine.low %v6983_v8, %v6991_v13  ;;  %v7061_v59 = vcombine.low %v6984_v15, %v6992_v16 }
 0x10a   : > { %2590 = vmatpush1.bf16.msra.mxu0 %v6851_v25  ;;  %v7077_v25 = vcombine.low %v7000_v43, %v7008_v63 }
 0x10b   : > { %v8465_v53 = vpop.f32.mrf.mxu0  ;;  %v8467_v4 = vpop.f32.mrf.mxu1  ;;  %2663 = vmatpush1.bf16.msra.mxu1 %v6853_v11  ;;  %2591 = vmatprep.subr.bf16.mxu0 %v6836_v60 }
 0x10c   : > { %2664 = vmatprep.subr.bf16.mxu1 %v6838_v1  ;;  %v7060_v1 = vcombine.high %v6983_v8, %v6991_v13  ;;  %v6960_v13 = vld [vmem:[%s10724_s1 + $0x4c8] sm:$0xff] }
 0x10d   : > { %v8469_v40 = vpop.f32.mrf.mxu0  ;;  %v8471_v41 = vpop.f32.mrf.mxu1  ;;  %6926 = vmatmul.mubr.msk.bf16.gmra.mxu0 %vm1053_vm4, %v7970_v21  ;;  %6931 = vmatmul.mubr.msk.bf16.gmra.mxu1 %vm1053_vm4, %v7970_v21 }
 0x10e   : > { %2493 = vmatprep.mubr.bf16.mxu0 %v10731_v19  ;;  %2566 = vmatprep.mubr.bf16.mxu1 %v10731_v19 }
 0x10f   : > { %v8479_v42 = vpop.f32.mrf.mxu0  ;;  %v8481_v44 = vpop.f32.mrf.mxu1  ;;  %2592 = vmatpush1.bf16.msra.mxu0 %v6835_v33  ;;  %2665 = vmatpush1.bf16.msra.mxu1 %v6837_v34  ;;  %v6975_v34 = vld [vmem:[%s10724_s1 + $0x540] sm:$0xff] }
 0x110   : > { %7107 = vmatprep.subr.msk.bf16.mxu0 %vm1066_vm0, %v7092_v36  ;;  %7112 = vmatprep.subr.msk.bf16.mxu1 %vm1066_vm0, %v7094_v39  ;;  %v6968_v36 = vld [vmem:[%s10724_s1 + $0x508] sm:$0xff] }
 0x111   : > { %v8485_v45 = vpop.f32.mrf.mxu0  ;;  %v8487_v46 = vpop.f32.mrf.mxu1  ;;  %v6976_v39 = vld [vmem:[%s10724_s1 + $0x548] sm:$0xff] }
 0x112   : > { %v7046_v63 = vcombine.high %v6968_v36, %v6976_v39 }
 0x113   : > { %v8489_v22 = vpop.f32.mrf.mxu0  ;;  %v8491_v23 = vpop.f32.mrf.mxu1 }
 0x115   : > { %v8493_v35 = vpop.f32.mrf.mxu0  ;;  %v8495_v47 = vpop.f32.mrf.mxu1  ;;  %6927 = vmatmul.mubr.msk.bf16.gmra.mxu0 %vm1053_vm4, %v7983_v29  ;;  %6932 = vmatmul.mubr.msk.bf16.gmra.mxu1 %vm1053_vm4, %v7983_v29 }
 0x116   : > { %2609 = vmatprep.mubr.bf16.mxu0 %v10731_v19  ;;  %2682 = vmatprep.mubr.bf16.mxu1 %v10731_v19 }
 0x117   : > { %v8503_v48 = vpop.f32.mrf.mxu0  ;;  %v8505_v49 = vpop.f32.mrf.mxu1 }
 0x118   : > { %10749 = vst [vmem:[#allocation4_spill] sm:$0xff] %v8503_v48  ;;  %10750 = vst [vmem:[#allocation5_spill] sm:$0xff] %v8505_v49 }
 0x119   : > { %v8510_v54 = vpop.f32.mrf.mxu0  ;;  %v8512_v55 = vpop.f32.mrf.mxu1 }
 0x11a   : > { %10751 = vst [vmem:[#allocation6_spill] sm:$0xff] %v8510_v54  ;;  %10752 = vst [vmem:[#allocation7_spill] sm:$0xff] %v8512_v55 }
 0x11b   : > { %v8523_v0 = vpop.f32.mrf.mxu0  ;;  %v8525_v2 = vpop.f32.mrf.mxu1 }
 0x11c   : > { %10753 = vst [vmem:[#allocation8_spill] sm:$0xff] %v8523_v0  ;;  %10754 = vst [vmem:[#allocation9_spill] sm:$0xff] %v8525_v2 }
 0x11d   : > { %v8541_v17 = vpop.f32.mrf.mxu0  ;;  %v8543_v58 = vpop.f32.mrf.mxu1  ;;  %6934 = vmatmul.mubr.msk.bf16.vlgmr.msra.gmra.mxu0 %vm1053_vm4, %v7948_v14  ;;  %6939 = vmatmul.mubr.msk.bf16.vlgmr.msra.gmra.mxu1 %vm1053_vm4, %v7948_v14  ;;  %v6967_v14 = vld [vmem:[%s10724_s1 + $0x500] sm:$0xff] }
 0x11e   : > { %10755 = vst [vmem:[#allocation10_spill] sm:$0xff] %v8541_v17  ;;  %10756 = vst [vmem:[#allocation11_spill] sm:$0xff] %v8543_v58  ;;  %3294 = vmatpush1.bf16.msra.mxu0 %v3240_v6  ;;  %3367 = vmatpush1.bf16.msra.mxu1 %v3246_v7  ;;  %v7044_v43 = vcombine.high %v6967_v14, %v6975_v34  ;;  %v6951_v6 = vld [vmem:[%s10724_s1 + $0x480] sm:$0xff]  ;;  %v7043_v15 = vcombine.low %v6967_v14, %v6975_v34  ;;  %v8608_v14 = vld [vmem:[%s10724_s1 + $0x690] sm:$0xff] }
 0x11f   : > { %v8549_v11 = vpop.f32.mrf.mxu0  ;;  %v8551_v60 = vpop.f32.mrf.mxu1  ;;  %2619 = vmatprep.mubr.bf16.mxu0 %v10731_v19  ;;  %2692 = vmatprep.mubr.bf16.mxu1 %v10731_v19  ;;  %v6959_v7 = vld [vmem:[%s10724_s1 + $0x4c0] sm:$0xff]  ;;  %v8613_v34 = vld [vmem:[%s10724_s1 + $0x698] sm:$0xff]  ;;  %v6965_v58 = vld [vmem:[%s10724_s1 + $0x4f0] sm:$0xff] }
 0x120   : > { %10757 = vst [vmem:[#allocation12_spill] sm:$0xff] %v8549_v11  ;;  %10758 = vst [vmem:[#allocation13_spill] sm:$0xff] %v8551_v60  ;;  %3295 = vmatprep.subr.bf16.mxu0 %v7076_v9  ;;  %3368 = vmatprep.subr.bf16.mxu1 %v7078_v24  ;;  %v6952_v24 = vld [vmem:[%s10724_s1 + $0x488] sm:$0xff] }
 0x121   : > { %v8558_v32 = vpop.f32.mrf.mxu0  ;;  %v8560_v33 = vpop.f32.mrf.mxu1 }
 0x122   : > { %10759 = vst [vmem:[#allocation14_spill] sm:$0xff] %v8558_v32  ;;  %10760 = vst [vmem:[#allocation15_spill] sm:$0xff] %v8560_v33  ;;  %3296 = vmatpush1.bf16.msra.mxu0 %v7075_v38  ;;  %3369 = vmatpush1.bf16.msra.mxu1 %v7077_v25  ;;  %v7028_v25 = vcombine.high %v6951_v6, %v6959_v7  ;;  %v2728_v32 = vld [vmem:[%s7665_s19 + $0x28] sm:$0xe] }
 0x123   : > { %v8571_v51 = vpop.f32.mrf.mxu0  ;;  %v8573_v52 = vpop.f32.mrf.mxu1  ;;  %3297 = vmatprep.subr.bf16.mxu0 %v7060_v1  ;;  %3370 = vmatprep.subr.bf16.mxu1 %v7062_v30  ;;  %v7030_v1 = vcombine.high %v6952_v24, %v6960_v13 }
 0x124   : > { %10761 = vst [vmem:[#allocation16_spill] sm:$0xff] %v8571_v51  ;;  %10762 = vst [vmem:[#allocation17_spill] sm:$0xff] %v8573_v52 }
 0x125   : > { %v8581_v9 = vpop.f32.mrf.mxu0  ;;  %v8583_v8 = vpop.f32.mrf.mxu1  ;;  %6935 = vmatmul.mubr.msk.bf16.gmra.mxu0 %vm1053_vm4, %v7961_v18  ;;  %6940 = vmatmul.mubr.msk.bf16.gmra.mxu1 %vm1053_vm4, %v7961_v18  ;;  %v7045_v18 = vcombine.low %v6968_v36, %v6976_v39 }
 0x126   : > { %10763 = vst [vmem:[#allocation18_spill] sm:$0xff] %v8581_v9  ;;  %10764 = vst [vmem:[#allocation19_spill] sm:$0xff] %v8583_v8  ;;  %3298 = vmatpush1.bf16.msra.mxu0 %v7059_v50  ;;  %2629 = vmatprep.mubr.bf16.mxu0 %v10731_v19  ;;  %v7027_v50 = vcombine.low %v6951_v6, %v6959_v7  ;;  %v10773_v6 = vmov 0  }
 0x127   : > { %v8596_v16 = vpop.f32.mrf.mxu0  ;;  %v8598_v38 = vpop.f32.mrf.mxu1  ;;  %2702 = vmatprep.mubr.bf16.mxu1 %v10731_v19  ;;  %3371 = vmatpush1.bf16.msra.mxu1 %v7061_v59  ;;  %v7029_v59 = vcombine.low %v6952_v24, %v6960_v13  ;;  %v2723_v13 = vld [vmem:[%s7665_s19] sm:$0xe] }
 0x128   : > { %10765 = vst [vmem:[#allocation20_spill] sm:$0xff] %v8596_v16  ;;  %10766 = vst [vmem:[#allocation21_spill] sm:$0xff] %v8598_v38  ;;  %3299 = vmatprep.subr.bf16.mxu0 %v7044_v43  ;;  %3372 = vmatprep.subr.bf16.mxu1 %v7046_v63  ;;  %v7096_v43 = vcombine.high %v8608_v14, %v8608_v14  ;;  %v7098_v63 = vcombine.high %v8613_v34, %v8613_v34 }
 0x129   : > { %v8601_v30 = vpop.f32.mrf.mxu0  ;;  %v8603_v8 = vpop.f32.mrf.mxu1 }
 0x12a   : > { %10767 = vst [vmem:[#allocation22_spill] sm:$0xff] %v8601_v30  ;;  %10768 = vst [vmem:[#allocation23_spill] sm:$0xff] %v8603_v8  ;;  %3300 = vmatpush1.bf16.msra.mxu0 %v7043_v15 }
 0x12b   : > { %v8615_v36 = vpop.f32.mrf.mxu0  ;;  %v8617_v39 = vpop.f32.mrf.mxu1  ;;  %3373 = vmatpush1.bf16.msra.mxu1 %v7045_v18  ;;  %3301 = vmatprep.subr.bf16.mxu0 %v7028_v25  ;;  %v2724_v18 = vld [vmem:[%s7665_s19 + $0x8] sm:$0xe] }
 0x12c   : > { %10769 = vst [vmem:[#allocation24_spill] sm:$0xff] %v8615_v36  ;;  %10770 = vst [vmem:[#allocation25_spill] sm:$0xff] %v8617_v39  ;;  %3374 = vmatprep.subr.bf16.mxu1 %v7030_v1  ;;  %v6943_v1 = vrot.slane %v2723_v13, 9  ;;  %v2725_v13 = vld [vmem:[%s7665_s19 + $0x10] sm:$0xe] }
 0x12d   : > { %v8623_v19 = vpop.f32.mrf.mxu0  ;;  %v8625_v15 = vpop.f32.mrf.mxu1  ;;  %6936 = vmatmul.mubr.msk.bf16.gmra.mxu0 %vm1053_vm4, %v7970_v21  ;;  %6941 = vmatmul.mubr.msk.bf16.gmra.mxu1 %vm1053_vm4, %v7970_v21  ;;  %v7467_v36 = vld [vmem:[%s7665_s19 + $0x1c] sm:$0x1] }
 0x12e   : > { %10771 = vst [vmem:[#allocation26_spill] sm:$0xff] %v8623_v19  ;;  %10772 = vst [vmem:[#allocation27_spill] sm:$0xff] %v8625_v15  ;;  %2639 = vmatprep.mubr.bf16.mxu0 %v10773_v6  ;;  %2712 = vmatprep.mubr.bf16.mxu1 %v10773_v6  ;;  %v7464_v15 = vld [vmem:[%s7665_s19 + $0x4] sm:$0x1]  ;;  %v6944_v19 = vrot.slane %v2724_v18, 9 }
 0x12f   : > { %v8633_v7 = vpop.f32.mrf.mxu0  ;;  %v8635_v24 = vpop.f32.mrf.mxu1  ;;  %3302 = vmatpush1.bf16.msra.mxu0 %v7027_v50  ;;  %3375 = vmatpush1.bf16.msra.mxu1 %v7029_v59 }
 0x130   : > { %10774 = vst [vmem:[#allocation28_spill] sm:$0xff] %v8633_v7  ;;  %10775 = vst [vmem:[#allocation29_spill] sm:$0xff] %v8635_v24  ;;  %7117 = vmatprep.subr.msk.bf16.mxu0 %vm1066_vm0, %v7096_v43  ;;  %7122 = vmatprep.subr.msk.bf16.mxu1 %vm1066_vm0, %v7098_v63  ;;  %v2752_v7 = vrot.slane %v7464_v15, 5  ;;  %v7465_v24 = vld [vmem:[%s7665_s19 + $0xc] sm:$0x1] }
 0x131   : > { %v8641_v21 = vpop.f32.mrf.mxu0  ;;  %v8643_v25 = vpop.f32.mrf.mxu1  ;;  %v2756_v50 = vrot.slane %v7465_v24, 5 }
 0x132   : > { %10776 = vst [vmem:[#allocation30_spill] sm:$0xff] %v8641_v21  ;;  %10777 = vst [vmem:[#allocation31_spill] sm:$0xff] %v8643_v25  ;;  %v2753_v15 = vsel %vm8651_vm7, %v6943_v1, %v2752_v7  ;;  %v7001_v7 = vld [vmem:[%s10724_s1 + $0x610] sm:$0xff]  ;;  %v7010_v25 = vld [vmem:[%s10724_s1 + $0x658] sm:$0xff] }
 0x133   : > { %v8647_v59 = vpop.f32.mrf.mxu0  ;;  %v8649_v39 = vpop.f32.mrf.mxu1  ;;  %v2757_v24 = vsel %vm8651_vm7, %v6944_v19, %v2756_v50 }
 0x134   : > { %10778 = vst [vmem:[#allocation32_spill] sm:$0xff] %v8647_v59  ;;  %10779 = vst [vmem:[#allocation33_spill] sm:$0xff] %v8649_v39  ;;  %v2726_v39 = vld [vmem:[%s7665_s19 + $0x18] sm:$0xe]  ;;  %v8686_v50 = vcombine.low %v2753_v15, %v2757_v24 }
 0x135   : > { %v8655_v63 = vpop.f32.mrf.mxu0  ;;  %v8657_v21 = vpop.f32.mrf.mxu1  ;;  %6937 = vmatmul.mubr.msk.bf16.gmra.mxu0 %vm1053_vm4, %v7983_v29  ;;  %6942 = vmatmul.mubr.msk.bf16.gmra.mxu1 %vm1053_vm4, %v7983_v29  ;;  %v7095_v29 = vcombine.low %v8608_v14, %v8608_v14  ;;  %v7466_v14 = vld [vmem:[%s7665_s19 + $0x14] sm:$0x1] }
 0x136   : > { %10782 = vst [vmem:[#allocation34_spill] sm:$0xff] %v8655_v63  ;;  %10783 = vst [vmem:[#allocation35_spill] sm:$0xff] %v8657_v21  ;;  %3319 = vmatprep.mubr.bf16.mxu0 %v10773_v6  ;;  %3392 = vmatprep.mubr.bf16.mxu1 %v10773_v6  ;;  %v7097_v63 = vcombine.low %v8613_v34, %v8613_v34  ;;  %v2760_v59 = vrot.slane %v7466_v14, 5  ;;  %v7002_v34 = vld [vmem:[%s10724_s1 + $0x618] sm:$0xff]  ;;  %v6985_v14 = vld [vmem:[%s10724_s1 + $0x590] sm:$0xff] }
 0x137   : > { %v8670_v18 = vpop.f32.mrf.mxu0  ;;  %v8672_v21 = vpop.f32.mrf.mxu1  ;;  %v3252_v8 = vsel %vm1066_vm0, %v7095_v29, 0  ;;  %v7082_v38 = vcombine.high %v7002_v34, %v7010_v25  ;;  %v6994_v29 = vld [vmem:[%s10724_s1 + $0x5d8] sm:$0xff]  ;;  %v7081_v52 = vcombine.low %v7002_v34, %v7010_v25  ;;  %v7468_v34 = vld [vmem:[%s7665_s19 + $0x24] sm:$0x1] }
 0x138   : > { %10784 = vst [vmem:[#allocation36_spill] sm:$0xff] %v8670_v18  ;;  %10785 = vst [vmem:[#allocation37_spill] sm:$0xff] %v8672_v21  ;;  %v7009_v21 = vld [vmem:[%s10724_s1 + $0x650] sm:$0xff]  ;;  %v6945_v18 = vrot.slane %v2725_v13, 9  ;;  %v3258_v13 = vsel %vm1066_vm0, %v7097_v63, 0 }
 0x139   : > { %v8682_v1 = vpop.f32.mrf.mxu0  ;;  %v8684_v19 = vpop.f32.mrf.mxu1  ;;  %v7080_v30 = vcombine.high %v7001_v7, %v7009_v21  ;;  %v7079_v16 = vcombine.low %v7001_v7, %v7009_v21 }
 0x13a   : > { %10786 = vst [vmem:[#allocation38_spill] sm:$0xff] %v8682_v1  ;;  %10787 = vst [vmem:[#allocation39_spill] sm:$0xff] %v8684_v19  ;;  %v6946_v1 = vrot.slane %v2726_v39, 9  ;;  %v2764_v19 = vrot.slane %v7467_v36, 5  ;;  %v6993_v39 = vld [vmem:[%s10724_s1 + $0x5d0] sm:$0xff]  ;;  %v6986_v36 = vld [vmem:[%s10724_s1 + $0x598] sm:$0xff] }
 0x13b   : > { %v8699_v15 = vpop.f32.mrf.mxu0  ;;  %v8701_v24 = vpop.f32.mrf.mxu1  ;;  %v7064_v33 = vcombine.high %v6985_v14, %v6993_v39 }
 0x13c   : > { %10788 = vst [vmem:[#allocation40_spill] sm:$0xff] %v8699_v15  ;;  %10789 = vst [vmem:[#allocation41_spill] sm:$0xff] %v8701_v24  ;;  %v2761_v15 = vsel %vm8651_vm7, %v6945_v18, %v2760_v59  ;;  %v2765_v9 = vsel %vm8651_vm7, %v6946_v1, %v2764_v19  ;;  %v7066_v59 = vcombine.high %v6986_v36, %v6994_v29  ;;  %v6977_v1 = vld [vmem:[%s10724_s1 + $0x550] sm:$0xff] }
 0x13d   : > { %v8717_v63 = vpop.f32.mrf.mxu0  ;;  %v8719_v24 = vpop.f32.mrf.mxu1  ;;  %7108 = vmatmul.mubr.msk.bf16.vlgmr.msra.gmra.mxu0 %vm1053_vm4, %v8686_v50  ;;  %7113 = vmatmul.mubr.msk.bf16.vlgmr.msra.gmra.mxu1 %vm1053_vm4, %v8686_v50  ;;  %v8744_v18 = vcombine.low %v2761_v15, %v2765_v9  ;;  %v7063_v19 = vcombine.low %v6985_v14, %v6993_v39  ;;  %v6948_v9 = vrot.slane %v2728_v32, 9  ;;  %v7469_v15 = vld [vmem:[%s7665_s19 + $0x2c] sm:$0x1]  ;;  %v6962_v39 = vld [vmem:[%s10724_s1 + $0x4d8] sm:$0xff] }
 0x13e   : > { %10790 = vst [vmem:[#allocation42_spill] sm:$0xff] %v8717_v63  ;;  %10791 = vst [vmem:[#allocation43_spill] sm:$0xff] %v8719_v24  ;;  %3440 = vmatpush1.bf16.msra.mxu0 %v3252_v8  ;;  %3513 = vmatpush1.bf16.msra.mxu1 %v3258_v13  ;;  %v2727_v63 = vld [vmem:[%s7665_s19 + $0x20] sm:$0xe]  ;;  %v6969_v8 = vld [vmem:[%s10724_s1 + $0x510] sm:$0xff]  ;;  %v2768_v13 = vrot.slane %v7468_v34, 5 }
 0x13f   : > { %v8730_v51 = vpop.f32.mrf.mxu0  ;;  %v8732_v24 = vpop.f32.mrf.mxu1  ;;  %3329 = vmatprep.mubr.bf16.mxu0 %v10773_v6  ;;  %3402 = vmatprep.mubr.bf16.mxu1 %v10773_v6  ;;  %v6947_v7 = vrot.slane %v2727_v63, 9  ;;  %v2772_v63 = vrot.slane %v7469_v15, 5 }
 0x140   : > { %10792 = vst [vmem:[#allocation44_spill] sm:$0xff] %v8730_v51  ;;  %10793 = vst [vmem:[#allocation45_spill] sm:$0xff] %v8732_v24  ;;  %3441 = vmatprep.subr.bf16.mxu0 %v7080_v30  ;;  %3514 = vmatprep.subr.bf16.mxu1 %v7082_v38  ;;  %v6970_v30 = vld [vmem:[%s10724_s1 + $0x518] sm:$0xff]  ;;  %v7065_v24 = vcombine.low %v6986_v36, %v6994_v29  ;;  %v7048_v51 = vcombine.high %v6969_v8, %v6977_v1 }
 0x141   : > { %v8740_v21 = vpop.f32.mrf.mxu0  ;;  %v8742_v25 = vpop.f32.mrf.mxu1  ;;  %v6978_v38 = vld [vmem:[%s10724_s1 + $0x558] sm:$0xff]  ;;  %v2769_v36 = vsel %vm8651_vm7, %v6947_v7, %v2768_v13  ;;  %v2773_v29 = vsel %vm8651_vm7, %v6948_v9, %v2772_v63  ;;  %v7471_v63 = vld [vmem:[%s7665_s19 + $0x3c] sm:$0x1] }
 0x142   : > { %10794 = vst [vmem:[#allocation46_spill] sm:$0xff] %v8740_v21  ;;  %10795 = vst [vmem:[#allocation47_spill] sm:$0xff] %v8742_v25  ;;  %3442 = vmatpush1.bf16.msra.mxu0 %v7079_v16  ;;  %3515 = vmatpush1.bf16.msra.mxu1 %v7081_v52  ;;  %v7050_v60 = vcombine.high %v6970_v30, %v6978_v38  ;;  %v6953_v16 = vld [vmem:[%s10724_s1 + $0x490] sm:$0xff] }
 0x143   : > { %v8757_v25 = vpop.f32.mrf.mxu0  ;;  %v8759_v21 = vpop.f32.mrf.mxu1  ;;  %3443 = vmatprep.subr.bf16.mxu0 %v7064_v33  ;;  %3516 = vmatprep.subr.bf16.mxu1 %v7066_v59  ;;  %v6961_v52 = vld [vmem:[%s10724_s1 + $0x4d0] sm:$0xff]  ;;  %v6954_v33 = vld [vmem:[%s10724_s1 + $0x498] sm:$0xff]  ;;  %v7047_v59 = vcombine.low %v6969_v8, %v6977_v1  ;;  %v8797_v8 = vcombine.low %v2769_v36, %v2773_v29  ;;  %v7019_v1 = vld [vmem:[%s10724_s1 + $0x6a0] sm:$0xff] }
 0x144   : > { %10796 = vst [vmem:[#allocation48_spill] sm:$0xff] %v8757_v25  ;;  %10797 = vst [vmem:[#allocation49_spill] sm:$0xff] %v8759_v21  ;;  %v7032_v21 = vcombine.high %v6953_v16, %v6961_v52  ;;  %v7034_v7 = vcombine.high %v6954_v33, %v6962_v39  ;;  %v7031_v36 = vcombine.low %v6953_v16, %v6961_v52 }
 0x145   : > { %v8767_v32 = vpop.f32.mrf.mxu0  ;;  %v8769_v14 = vpop.f32.mrf.mxu1  ;;  %7109 = vmatmul.mubr.msk.bf16.gmra.mxu0 %vm1053_vm4, %v8744_v18  ;;  %7114 = vmatmul.mubr.msk.bf16.gmra.mxu1 %vm1053_vm4, %v8744_v18  ;;  %v7033_v29 = vcombine.low %v6954_v33, %v6962_v39 }
 0x146   : > { %10798 = vst [vmem:[#allocation50_spill] sm:$0xff] %v8767_v32  ;;  %10799 = vst [vmem:[#allocation51_spill] sm:$0xff] %v8769_v14  ;;  %3444 = vmatpush1.bf16.msra.mxu0 %v7063_v19  ;;  %3339 = vmatprep.mubr.bf16.mxu0 %v10773_v6  ;;  %v2729_v14 = vld [vmem:[%s7665_s19 + $0x30] sm:$0xe]  ;;  %v2730_v32 = vld [vmem:[%s7665_s19 + $0x38] sm:$0xe]  ;;  %v7049_v19 = vcombine.low %v6970_v30, %v6978_v38 }
 0x147   : > { %v8786_v34 = vpop.f32.mrf.mxu0  ;;  %v8788_v15 = vpop.f32.mrf.mxu1  ;;  %3412 = vmatprep.mubr.bf16.mxu1 %v10773_v6  ;;  %3517 = vmatpush1.bf16.msra.mxu1 %v7065_v24  ;;  %v7020_v24 = vld [vmem:[%s10724_s1 + $0x6a8] sm:$0xff]  ;;  %v6949_v30 = vrot.slane %v2729_v14, 9  ;;  %v7470_v38 = vld [vmem:[%s7665_s19 + $0x34] sm:$0x1] }
 0x148   : > { %10800 = vst [vmem:[#allocation52_spill] sm:$0xff] %v8786_v34  ;;  %10801 = vst [vmem:[#allocation53_spill] sm:$0xff] %v8788_v15  ;;  %3445 = vmatprep.subr.bf16.mxu0 %v7048_v51  ;;  %3518 = vmatprep.subr.bf16.mxu1 %v7050_v60  ;;  %v2776_v51 = vrot.slane %v7470_v38, 5  ;;  %v6950_v60 = vrot.slane %v2730_v32, 9  ;;  %v2780_v15 = vrot.slane %v7471_v63, 5  ;;  %v7100_v34 = vcombine.high %v7019_v1, %v7019_v1 }
 0x149   : > { %v8793_v13 = vpop.f32.mrf.mxu0  ;;  %v8795_v9 = vpop.f32.mrf.mxu1  ;;  %v7102_v25 = vcombine.high %v7020_v24, %v7020_v24  ;;  %v7101_v38 = vcombine.low %v7020_v24, %v7020_v24 }
 0x14a   : > { %10802 = vst [vmem:[#allocation54_spill] sm:$0xff] %v8793_v13  ;;  %10803 = vst [vmem:[#allocation55_spill] sm:$0xff] %v8795_v9  ;;  %3446 = vmatpush1.bf16.msra.mxu0 %v7047_v59  ;;  %v2781_v16 = vsel %vm8651_vm7, %v6950_v60, %v2780_v15 }
 0x14b   : > { %v8807_v13 = vpop.f32.mrf.mxu0  ;;  %v8809_v9 = vpop.f32.mrf.mxu1  ;;  %3519 = vmatpush1.bf16.msra.mxu1 %v7049_v19  ;;  %3447 = vmatprep.subr.bf16.mxu0 %v7032_v21  ;;  %v2777_v21 = vsel %vm8651_vm7, %v6949_v30, %v2776_v51  ;;  %v7099_v30 = vcombine.low %v7019_v1, %v7019_v1  ;;  %v7003_v51 = vld [vmem:[%s10724_s1 + $0x620] sm:$0xff]  ;;  %v7012_v1 = vld [vmem:[%s10724_s1 + $0x668] sm:$0xff] }
 0x14c   : > { %10804 = vst [vmem:[#allocation56_spill] sm:$0xff] %v8807_v13  ;;  %10805 = vst [vmem:[#allocation57_spill] sm:$0xff] %v8809_v9  ;;  %3520 = vmatprep.subr.bf16.mxu1 %v7034_v7  ;;  %v8835_v39 = vcombine.low %v2777_v21, %v2781_v16  ;;  %v6957_v13 = vld [vmem:[%s10724_s1 + $0x4b0] sm:$0xff] }
 0x14d   : > { %v8811_v11 = vpop.f32.mrf.mxu0  ;;  %v8813_v59 = vpop.f32.mrf.mxu1  ;;  %7110 = vmatmul.mubr.msk.bf16.gmra.mxu0 %vm1053_vm4, %v8797_v8  ;;  %7115 = vmatmul.mubr.msk.bf16.gmra.mxu1 %vm1053_vm4, %v8797_v8  ;;  %v3264_v16 = vsel %vm1066_vm0, %v7099_v30, 0  ;;  %v6996_v30 = vld [vmem:[%s10724_s1 + $0x5e8] sm:$0xff]  ;;  %v7040_v17 = vcombine.high %v6957_v13, %v6965_v58 }
 0x14e   : > { %10806 = vst [vmem:[#allocation58_spill] sm:$0xff] %v8811_v11  ;;  %10807 = vst [vmem:[#allocation59_spill] sm:$0xff] %v8813_v59  ;;  %3349 = vmatprep.mubr.bf16.mxu0 %v10773_v6  ;;  %3422 = vmatprep.mubr.bf16.mxu1 %v10773_v6 }
 0x14f   : > { %v8825_v52 = vpop.f32.mrf.mxu0  ;;  %v8827_v32 = vpop.f32.mrf.mxu1  ;;  %3448 = vmatpush1.bf16.msra.mxu0 %v7031_v36  ;;  %3521 = vmatpush1.bf16.msra.mxu1 %v7033_v29  ;;  %v7011_v36 = vld [vmem:[%s10724_s1 + $0x660] sm:$0xff]  ;;  %v7004_v29 = vld [vmem:[%s10724_s1 + $0x628] sm:$0xff] }
 0x150   : > { %10808 = vst [vmem:[#allocation60_spill] sm:$0xff] %v8825_v52  ;;  %10809 = vst [vmem:[#allocation61_spill] sm:$0xff] %v8827_v32  ;;  %7127 = vmatprep.subr.msk.bf16.mxu0 %vm1066_vm0, %v7100_v34  ;;  %7132 = vmatprep.subr.msk.bf16.mxu1 %vm1066_vm0, %v7102_v25  ;;  %v6963_v32 = vld [vmem:[%s10724_s1 + $0x4e0] sm:$0xff]  ;;  %v6973_v52 = vld [vmem:[%s10724_s1 + $0x530] sm:$0xff] }
 0x151   : > { %v8831_v14 = vpop.f32.mrf.mxu0  ;;  %v8833_v33 = vpop.f32.mrf.mxu1 }
 0x152   : > { %10810 = vst [vmem:[#allocation62_spill] sm:$0xff] %v8831_v14  ;;  %10811 = vst [vmem:[#allocation63_spill] sm:$0xff] %v8833_v33  ;;  %v6971_v14 = vld [vmem:[%s10724_s1 + $0x520] sm:$0xff] }
 0x153   : > { %v8837_v19 = vpop.f32.mrf.mxu0  ;;  %v8839_v43 = vpop.f32.mrf.mxu1 }
 0x154   : > { %10812 = vst [vmem:[#allocation64_spill] sm:$0xff] %v8837_v19  ;;  %10813 = vst [vmem:[#allocation65_spill] sm:$0xff] %v8839_v43  ;;  %v7085_v43 = vcombine.low %v7004_v29, %v7012_v1 }
 0x155   : > { %v8841_v15 = vpop.f32.mrf.mxu0  ;;  %v8843_v7 = vpop.f32.mrf.mxu1  ;;  %7111 = vmatmul.mubr.msk.bf16.gmra.mxu0 %vm1053_vm4, %v8835_v39  ;;  %7116 = vmatmul.mubr.msk.bf16.gmra.mxu1 %vm1053_vm4, %v8835_v39 }
 0x156   : > { %10814 = vst [vmem:[#allocation66_spill] sm:$0xff] %v8841_v15  ;;  %10815 = vst [vmem:[#allocation67_spill] sm:$0xff] %v8843_v7  ;;  %3465 = vmatprep.mubr.bf16.mxu0 %v10773_v6  ;;  %3538 = vmatprep.mubr.bf16.mxu1 %v10773_v6  ;;  %v6995_v7 = vld [vmem:[%s10724_s1 + $0x5e0] sm:$0xff]  ;;  %v7083_v15 = vcombine.low %v7003_v51, %v7011_v36 }
 0x157   : > { %v8851_v25 = vpop.f32.mrf.mxu0  ;;  %v8853_v34 = vpop.f32.mrf.mxu1 }
 0x158   : > { %10816 = vst [vmem:[#allocation68_spill] sm:$0xff] %v8851_v25  ;;  %10817 = vst [vmem:[#allocation69_spill] sm:$0xff] %v8853_v34  ;;  %v7084_v34 = vcombine.high %v7003_v51, %v7011_v36  ;;  %v7086_v25 = vcombine.high %v7004_v29, %v7012_v1  ;;  %v6972_v36 = vld [vmem:[%s10724_s1 + $0x528] sm:$0xff] }
 0x159   : > { %v8858_v60 = vpop.f32.mrf.mxu0  ;;  %v8860_v63 = vpop.f32.mrf.mxu1 }
 0x15a   : > { %10818 = vst [vmem:[#allocation70_spill] sm:$0xff] %v8858_v60  ;;  %10819 = vst [vmem:[#allocation71_spill] sm:$0xff] %v8860_v63  ;;  %v3270_v63 = vsel %vm1066_vm0, %v7101_v38, 0  ;;  %v6987_v60 = vld [vmem:[%s10724_s1 + $0x5a0] sm:$0xff] }
 0x15b   : > { %v8871_v24 = vpop.f32.mrf.mxu0  ;;  %v8873_v21 = vpop.f32.mrf.mxu1 }
 0x15c   : > { %10820 = vst [vmem:[#allocation72_spill] sm:$0xff] %v8871_v24  ;;  %10821 = vst [vmem:[#allocation73_spill] sm:$0xff] %v8873_v21  ;;  %v6988_v24 = vld [vmem:[%s10724_s1 + $0x5a8] sm:$0xff] }
 0x15d   : > { %v8889_v21 = vpop.f32.mrf.mxu0  ;;  %v8891_v38 = vpop.f32.mrf.mxu1  ;;  %7118 = vmatmul.mubr.msk.bf16.vlgmr.msra.gmra.mxu0 %vm1053_vm4, %v8686_v50  ;;  %7123 = vmatmul.mubr.msk.bf16.vlgmr.msra.gmra.mxu1 %vm1053_vm4, %v8686_v50 }
 0x15e   : > { %10822 = vst [vmem:[#allocation74_spill] sm:$0xff] %v8889_v21  ;;  %10823 = vst [vmem:[#allocation75_spill] sm:$0xff] %v8891_v38  ;;  %3586 = vmatpush1.bf16.msra.mxu0 %v3264_v16  ;;  %3659 = vmatpush1.bf16.msra.mxu1 %v3270_v63  ;;  %v7068_v21 = vcombine.high %v6987_v60, %v6995_v7  ;;  %v7070_v38 = vcombine.high %v6988_v24, %v6996_v30  ;;  %v6979_v63 = vld [vmem:[%s10724_s1 + $0x560] sm:$0xff] }
 0x15f   : > { %v8897_v19 = vpop.f32.mrf.mxu0  ;;  %v8899_v33 = vpop.f32.mrf.mxu1  ;;  %3475 = vmatprep.mubr.bf16.mxu0 %v10773_v6  ;;  %3548 = vmatprep.mubr.bf16.mxu1 %v10773_v6 }
 0x160   : > { %10824 = vst [vmem:[#allocation76_spill] sm:$0xff] %v8897_v19  ;;  %10825 = vst [vmem:[#allocation77_spill] sm:$0xff] %v8899_v33  ;;  %3587 = vmatprep.subr.bf16.mxu0 %v7084_v34  ;;  %3660 = vmatprep.subr.bf16.mxu1 %v7086_v25  ;;  %v6980_v25 = vld [vmem:[%s10724_s1 + $0x568] sm:$0xff]  ;;  %v7067_v34 = vcombine.low %v6987_v60, %v6995_v7  ;;  %v6955_v19 = vld [vmem:[%s10724_s1 + $0x4a0] sm:$0xff] }
 0x161   : > { %v8906_v16 = vpop.f32.mrf.mxu0  ;;  %v8908_v51 = vpop.f32.mrf.mxu1  ;;  %v7054_v33 = vcombine.high %v6972_v36, %v6980_v25  ;;  %v6956_v7 = vld [vmem:[%s10724_s1 + $0x4a8] sm:$0xff] }
 0x162   : > { %10826 = vst [vmem:[#allocation78_spill] sm:$0xff] %v8906_v16  ;;  %10827 = vst [vmem:[#allocation79_spill] sm:$0xff] %v8908_v51  ;;  %3588 = vmatpush1.bf16.msra.mxu0 %v7083_v15  ;;  %3661 = vmatpush1.bf16.msra.mxu1 %v7085_v43  ;;  %v7069_v51 = vcombine.low %v6988_v24, %v6996_v30  ;;  %v7052_v16 = vcombine.high %v6971_v14, %v6979_v63  ;;  %v6964_v60 = vld [vmem:[%s10724_s1 + $0x4e8] sm:$0xff] }
 0x163   : > { %v8919_v29 = vpop.f32.mrf.mxu0  ;;  %v8921_v1 = vpop.f32.mrf.mxu1  ;;  %3589 = vmatprep.subr.bf16.mxu0 %v7068_v21  ;;  %3662 = vmatprep.subr.bf16.mxu1 %v7070_v38  ;;  %v7051_v24 = vcombine.low %v6971_v14, %v6979_v63  ;;  %v7053_v38 = vcombine.low %v6972_v36, %v6980_v25  ;;  %v7021_v14 = vld [vmem:[%s10724_s1 + $0x6b0] sm:$0xff]  ;;  %v7022_v63 = vld [vmem:[%s10724_s1 + $0x6b8] sm:$0xff] }
 0x164   : > { %10828 = vst [vmem:[#allocation80_spill] sm:$0xff] %v8919_v29  ;;  %10829 = vst [vmem:[#allocation81_spill] sm:$0xff] %v8921_v1  ;;  %v7104_v36 = vcombine.high %v7021_v14, %v7021_v14  ;;  %v7106_v25 = vcombine.high %v7022_v63, %v7022_v63 }
 0x165   : > { %v8929_v15 = vpop.f32.mrf.mxu0  ;;  %v8931_v43 = vpop.f32.mrf.mxu1  ;;  %7119 = vmatmul.mubr.msk.bf16.gmra.mxu0 %vm1053_vm4, %v8744_v18  ;;  %7124 = vmatmul.mubr.msk.bf16.gmra.mxu1 %vm1053_vm4, %v8744_v18 }
 0x166   : > { %10830 = vst [vmem:[#allocation82_spill] sm:$0xff] %v8929_v15  ;;  %10831 = vst [vmem:[#allocation83_spill] sm:$0xff] %v8931_v43  ;;  %3590 = vmatpush1.bf16.msra.mxu0 %v7067_v34  ;;  %3485 = vmatprep.mubr.bf16.mxu0 %v10773_v6  ;;  %v7036_v43 = vcombine.high %v6955_v19, %v6963_v32  ;;  %v7038_v15 = vcombine.high %v6956_v7, %v6964_v60 }
 0x167   : > { %v8944_v21 = vpop.f32.mrf.mxu0  ;;  %v8946_v30 = vpop.f32.mrf.mxu1  ;;  %3558 = vmatprep.mubr.bf16.mxu1 %v10773_v6  ;;  %3663 = vmatpush1.bf16.msra.mxu1 %v7069_v51 }
 0x168   : > { %10832 = vst [vmem:[#allocation84_spill] sm:$0xff] %v8944_v21  ;;  %10833 = vst [vmem:[#allocation85_spill] sm:$0xff] %v8946_v30  ;;  %3591 = vmatprep.subr.bf16.mxu0 %v7052_v16  ;;  %3664 = vmatprep.subr.bf16.mxu1 %v7054_v33  ;;  %v7035_v33 = vcombine.low %v6955_v19, %v6963_v32  ;;  %v7037_v16 = vcombine.low %v6956_v7, %v6964_v60 }
 0x169   : > { %v8949_v1 = vpop.f32.mrf.mxu0  ;;  %v8951_v29 = vpop.f32.mrf.mxu1 }
 0x16a   : > { %10834 = vst [vmem:[#allocation86_spill] sm:$0xff] %v8949_v1  ;;  %10835 = vst [vmem:[#allocation87_spill] sm:$0xff] %v8951_v29  ;;  %3592 = vmatpush1.bf16.msra.mxu0 %v7051_v24 }
 0x16b   : > { %v8959_v34 = vpop.f32.mrf.mxu0  ;;  %v8961_v51 = vpop.f32.mrf.mxu1  ;;  %3665 = vmatpush1.bf16.msra.mxu1 %v7053_v38  ;;  %3593 = vmatprep.subr.bf16.mxu0 %v7036_v43 }
 0x16c   : > { %10836 = vst [vmem:[#allocation88_spill] sm:$0xff] %v8959_v34  ;;  %10837 = vst [vmem:[#allocation89_spill] sm:$0xff] %v8961_v51  ;;  %3666 = vmatprep.subr.bf16.mxu1 %v7038_v15 }
 0x16d   : > { %v8963_v29 = vpop.f32.mrf.mxu0  ;;  %v8965_v1 = vpop.f32.mrf.mxu1  ;;  %7120 = vmatmul.mubr.msk.bf16.gmra.mxu0 %vm1053_vm4, %v8797_v8  ;;  %7125 = vmatmul.mubr.msk.bf16.gmra.mxu1 %vm1053_vm4, %v8797_v8 }
 0x16e   : > { %10838 = vst [vmem:[#allocation90_spill] sm:$0xff] %v8963_v29  ;;  %10839 = vst [vmem:[#allocation91_spill] sm:$0xff] %v8965_v1  ;;  %3495 = vmatprep.mubr.bf16.mxu0 %v10773_v6  ;;  %3568 = vmatprep.mubr.bf16.mxu1 %v10773_v6 }
 0x16f   : > { %v8973_v32 = vpop.f32.mrf.mxu0  ;;  %v8975_v19 = vpop.f32.mrf.mxu1  ;;  %3594 = vmatpush1.bf16.msra.mxu0 %v7035_v33  ;;  %3667 = vmatpush1.bf16.msra.mxu1 %v7037_v16 }
 0x170   : > { %10840 = vst [vmem:[#allocation92_spill] sm:$0xff] %v8973_v32  ;;  %10841 = vst [vmem:[#allocation93_spill] sm:$0xff] %v8975_v19  ;;  %7137 = vmatprep.subr.msk.bf16.mxu0 %vm1066_vm0, %v7104_v36  ;;  %7142 = vmatprep.subr.msk.bf16.mxu1 %vm1066_vm0, %v7106_v25  ;;  %v7103_v36 = vcombine.low %v7021_v14, %v7021_v14  ;;  %v7105_v25 = vcombine.low %v7022_v63, %v7022_v63  ;;  %v7014_v14 = vld [vmem:[%s10724_s1 + $0x678] sm:$0xff]  ;;  %v6997_v32 = vld [vmem:[%s10724_s1 + $0x5f0] sm:$0xff] }
 0x171   : > { %v8979_v15 = vpop.f32.mrf.mxu0  ;;  %v8981_v43 = vpop.f32.mrf.mxu1 }
 0x172   : > { %10842 = vst [vmem:[#allocation94_spill] sm:$0xff] %v8979_v15  ;;  %10843 = vst [vmem:[#allocation95_spill] sm:$0xff] %v8981_v43  ;;  %v6989_v43 = vld [vmem:[%s10724_s1 + $0x5b0] sm:$0xff] }
 0x173   : > { %v8983_v7 = vpop.f32.mrf.mxu0  ;;  %v8985_v60 = vpop.f32.mrf.mxu1  ;;  %v7072_v30 = vcombine.high %v6989_v43, %v6997_v32 }
 0x174   : > { %10844 = vst [vmem:[#allocation96_spill] sm:$0xff] %v8983_v7  ;;  %10845 = vst [vmem:[#allocation97_spill] sm:$0xff] %v8985_v60  ;;  %v7013_v7 = vld [vmem:[%s10724_s1 + $0x670] sm:$0xff] }
 0x175   : > { %v8987_v24 = vpop.f32.mrf.mxu0  ;;  %v8989_v38 = vpop.f32.mrf.mxu1  ;;  %7121 = vmatmul.mubr.msk.bf16.gmra.mxu0 %vm1053_vm4, %v8835_v39  ;;  %7126 = vmatmul.mubr.msk.bf16.gmra.mxu1 %vm1053_vm4, %v8835_v39 }
 0x176   : > { %10846 = vst [vmem:[#allocation98_spill] sm:$0xff] %v8987_v24  ;;  %10847 = vst [vmem:[#allocation99_spill] sm:$0xff] %v8989_v38  ;;  %3611 = vmatprep.mubr.bf16.mxu0 %v10773_v6  ;;  %3684 = vmatprep.mubr.bf16.mxu1 %v10773_v6  ;;  %v7005_v38 = vld [vmem:[%s10724_s1 + $0x630] sm:$0xff] }
 0x177   : > { %v8997_v33 = vpop.f32.mrf.mxu0  ;;  %v8999_v16 = vpop.f32.mrf.mxu1  ;;  %v7088_v15 = vcombine.high %v7005_v38, %v7013_v7  ;;  %v7087_v1 = vcombine.low %v7005_v38, %v7013_v7  ;;  %v6974_v38 = vld [vmem:[%s10724_s1 + $0x538] sm:$0xff] }
 0x178   : > { %10848 = vst [vmem:[#allocation100_spill] sm:$0xff] %v8997_v33  ;;  %10849 = vst [vmem:[#allocation101_spill] sm:$0xff] %v8999_v16  ;;  %v7006_v33 = vld [vmem:[%s10724_s1 + $0x638] sm:$0xff] }
 0x179   : > { %v9004_v24 = vpop.f32.mrf.mxu0  ;;  %v9006_v60 = vpop.f32.mrf.mxu1  ;;  %v7090_v19 = vcombine.high %v7006_v33, %v7014_v14  ;;  %v7089_v29 = vcombine.low %v7006_v33, %v7014_v14 }
 0x17a   : > { %10850 = vst [vmem:[#allocation102_spill] sm:$0xff] %v9004_v24  ;;  %10851 = vst [vmem:[#allocation103_spill] sm:$0xff] %v9006_v60  ;;  %v3276_v24 = vsel %vm1066_vm0, %v7103_v36, 0  ;;  %v3282_v60 = vsel %vm1066_vm0, %v7105_v25, 0  ;;  %v6998_v36 = vld [vmem:[%s10724_s1 + $0x5f8] sm:$0xff] }
 0x17b   : > { %v9017_v63 = vpop.f32.mrf.mxu0  ;;  %v9019_v16 = vpop.f32.mrf.mxu1 }
 0x17c   : > { %10852 = vst [vmem:[#allocation104_spill] sm:$0xff] %v9017_v63  ;;  %10853 = vst [vmem:[#allocation105_spill] sm:$0xff] %v9019_v16  ;;  %v6990_v63 = vld [vmem:[%s10724_s1 + $0x5b8] sm:$0xff] }
 0x17d   : > { %v9035_v16 = vpop.f32.mrf.mxu0  ;;  %v9037_v25 = vpop.f32.mrf.mxu1  ;;  %7128 = vmatmul.mubr.msk.bf16.vlgmr.msra.gmra.mxu0 %vm1053_vm4, %v8686_v50  ;;  %7133 = vmatmul.mubr.msk.bf16.vlgmr.msra.gmra.mxu1 %vm1053_vm4, %v8686_v50  ;;  %v7074_v21 = vcombine.high %v6990_v63, %v6998_v36  ;;  %v7073_v59 = vcombine.low %v6990_v63, %v6998_v36 }
 0x17e   : > { %3732 = vmatpush1.bf16.msra.mxu0 %v3276_v24  ;;  %3805 = vmatpush1.bf16.msra.mxu1 %v3282_v60  ;;  %v6981_v60 = vld [vmem:[%s10724_s1 + $0x570] sm:$0xff] }
 0x17f   : > { %v9043_v51 = vpop.f32.mrf.mxu0  ;;  %v9045_v34 = vpop.f32.mrf.mxu1  ;;  %3621 = vmatprep.mubr.bf16.mxu0 %v10773_v6  ;;  %3694 = vmatprep.mubr.bf16.mxu1 %v10773_v6  ;;  %v7056_v11 = vcombine.high %v6973_v52, %v6981_v60 }
 0x180   : > { %3733 = vmatprep.subr.bf16.mxu0 %v7088_v15  ;;  %3806 = vmatprep.subr.bf16.mxu1 %v7090_v19  ;;  %v6982_v19 = vld [vmem:[%s10724_s1 + $0x578] sm:$0xff]  ;;  %v7071_v15 = vcombine.low %v6989_v43, %v6997_v32  ;;  %v7055_v32 = vcombine.low %v6973_v52, %v6981_v60  ;;  %v7039_v60 = vcombine.low %v6957_v13, %v6965_v58 }
 0x181   : > { %v9052_v24 = vpop.f32.mrf.mxu0  ;;  %v9054_v7 = vpop.f32.mrf.mxu1  ;;  %v7058_v9 = vcombine.high %v6974_v38, %v6982_v19  ;;  %v7057_v36 = vcombine.low %v6974_v38, %v6982_v19 }
 0x182   : > { %3734 = vmatpush1.bf16.msra.mxu0 %v7087_v1  ;;  %3807 = vmatpush1.bf16.msra.mxu1 %v7089_v29 }
 0x183   : > { %v9065_v33 = vpop.f32.mrf.mxu0  ;;  %v9067_v14 = vpop.f32.mrf.mxu1  ;;  %3735 = vmatprep.subr.bf16.mxu0 %v7072_v30  ;;  %3808 = vmatprep.subr.bf16.mxu1 %v7074_v21  ;;  %v6958_v21 = vld [vmem:[%s10724_s1 + $0x4b8] sm:$0xff] }
 0x184   : > { %v6966_v30 = vld [vmem:[%s10724_s1 + $0x4f8] sm:$0xff] }
 0x185   : > { %v9075_v1 = vpop.f32.mrf.mxu0  ;;  %v9077_v29 = vpop.f32.mrf.mxu1  ;;  %7129 = vmatmul.mubr.msk.bf16.gmra.mxu0 %vm1053_vm4, %v8744_v18  ;;  %7134 = vmatmul.mubr.msk.bf16.gmra.mxu1 %vm1053_vm4, %v8744_v18  ;;  %v7042_v2 = vcombine.high %v6958_v21, %v6966_v30  ;;  %v7041_v54 = vcombine.low %v6958_v21, %v6966_v30 }
 0x186   : > { %3736 = vmatpush1.bf16.msra.mxu0 %v7071_v15  ;;  %3631 = vmatprep.mubr.bf16.mxu0 %v10773_v6 }
 0x187   : > { %v9090_v43 = vpop.f32.mrf.mxu0  ;;  %v9092_v63 = vpop.f32.mrf.mxu1  ;;  %3704 = vmatprep.mubr.bf16.mxu1 %v10773_v6  ;;  %3809 = vmatpush1.bf16.msra.mxu1 %v7073_v59 }
 0x188   : > { %3737 = vmatprep.subr.bf16.mxu0 %v7056_v11  ;;  %3810 = vmatprep.subr.bf16.mxu1 %v7058_v9 }
 0x189   : > { %v9095_v0 = vpop.f32.mrf.mxu0  ;;  %v9097_v55 = vpop.f32.mrf.mxu1 }
 0x18a   : > { %3738 = vmatpush1.bf16.msra.mxu0 %v7055_v32 }
 0x18b   : > { %v9099_v15 = vpop.f32.mrf.mxu0  ;;  %v9101_v52 = vpop.f32.mrf.mxu1  ;;  %3811 = vmatpush1.bf16.msra.mxu1 %v7057_v36  ;;  %3739 = vmatprep.subr.bf16.mxu0 %v7040_v17 }
 0x18c   : > { %3812 = vmatprep.subr.bf16.mxu1 %v7042_v2 }
 0x18d   : > { %v9103_v59 = vpop.f32.mrf.mxu0  ;;  %v9105_v38 = vpop.f32.mrf.mxu1  ;;  %7130 = vmatmul.mubr.msk.bf16.gmra.mxu0 %vm1053_vm4, %v8797_v8  ;;  %7135 = vmatmul.mubr.msk.bf16.gmra.mxu1 %vm1053_vm4, %v8797_v8 }
 0x18e   : > { %3641 = vmatprep.mubr.bf16.mxu0 %v10773_v6  ;;  %3714 = vmatprep.mubr.bf16.mxu1 %v10773_v6 }
 0x18f   : > { %v9113_v11 = vpop.f32.mrf.mxu0  ;;  %v9115_v58 = vpop.f32.mrf.mxu1  ;;  %3740 = vmatpush1.bf16.msra.mxu0 %v7039_v60  ;;  %3813 = vmatpush1.bf16.msra.mxu1 %v7041_v54 }
 0x191   : > { %v9117_v2 = vpop.f32.mrf.mxu0  ;;  %v9119_v17 = vpop.f32.mrf.mxu1 }
 0x193   : > { %v9121_v13 = vpop.f32.mrf.mxu0  ;;  %v9123_v9 = vpop.f32.mrf.mxu1 }
 0x195   : > { %v9125_v19 = vpop.f32.mrf.mxu0  ;;  %v9127_v21 = vpop.f32.mrf.mxu1  ;;  %7131 = vmatmul.mubr.msk.bf16.gmra.mxu0 %vm1053_vm4, %v8835_v39  ;;  %7136 = vmatmul.mubr.msk.bf16.gmra.mxu1 %vm1053_vm4, %v8835_v39 }
 0x196   : > { %10854 = vst [vmem:[#allocation106_spill] sm:$0xff] %v9127_v21  ;;  %3757 = vmatprep.mubr.bf16.mxu0 %v10773_v6  ;;  %3830 = vmatprep.mubr.bf16.mxu1 %v10773_v6 }
 0x197   : > { %v9135_v54 = vpop.f32.mrf.mxu0  ;;  %v9137_v30 = vpop.f32.mrf.mxu1 }
 0x198   : > { %10855 = vst [vmem:[#allocation107_spill] sm:$0xff] %v9135_v54  ;;  %10856 = vst [vmem:[#allocation108_spill] sm:$0xff] %v9137_v30 }
 0x199   : > { %v9139_v32 = vpop.f32.mrf.mxu0  ;;  %v9141_v36 = vpop.f32.mrf.mxu1 }
 0x19a   : > { %10857 = vst [vmem:[#allocation109_spill] sm:$0xff] %v9139_v32  ;;  %10858 = vst [vmem:[#allocation110_spill] sm:$0xff] %v9141_v36 }
 0x19b   : > { %v9143_v60 = vpop.f32.mrf.mxu0  ;;  %v9145_v49 = vpop.f32.mrf.mxu1 }
 0x19c   : > { %10859 = vst [vmem:[#allocation111_spill] sm:$0xff] %v9143_v60  ;;  %10860 = vst [vmem:[#allocation112_spill] sm:$0xff] %v9145_v49 }
 0x19d   : > { %v9147_v48 = vpop.f32.mrf.mxu0  ;;  %v9149_v21 = vpop.f32.mrf.mxu1  ;;  %7138 = vmatmul.mubr.msk.bf16.vlgmr.msra.gmra.mxu0 %vm1053_vm4, %v8686_v50  ;;  %7143 = vmatmul.mubr.msk.bf16.vlgmr.msra.gmra.mxu1 %vm1053_vm4, %v8686_v50 }
 0x19e   : > { %10861 = vst [vmem:[#allocation113_spill] sm:$0xff] %v9147_v48  ;;  %10862 = vst [vmem:[#allocation114_spill] sm:$0xff] %v9149_v21  ;;  %3767 = vmatprep.mubr.bf16.mxu0 %v10773_v6  ;;  %3840 = vmatprep.mubr.bf16.mxu1 %v10773_v6 }
 0x19f   : > { %v9157_v32 = vpop.f32.mrf.mxu0  ;;  %v9159_v36 = vpop.f32.mrf.mxu1 }
 0x1a0   : > { %10863 = vst [vmem:[#allocation115_spill] sm:$0xff] %v9159_v36 }
 0x1a1   : > { %v9161_v60 = vpop.f32.mrf.mxu0  ;;  %v9163_v49 = vpop.f32.mrf.mxu1 }
 0x1a2   : > { %10864 = vst [vmem:[#allocation116_spill] sm:$0xff] %v9161_v60  ;;  %10865 = vst [vmem:[#allocation117_spill] sm:$0xff] %v9163_v49 }
 0x1a3   : > { %v9165_v48 = vpop.f32.mrf.mxu0  ;;  %v9167_v21 = vpop.f32.mrf.mxu1 }
 0x1a4   : > { %10866 = vst [vmem:[#allocation118_spill] sm:$0xff] %v9165_v48  ;;  %10867 = vst [vmem:[#allocation119_spill] sm:$0xff] %v9167_v21 }
 0x1a5   : > { %v9169_v30 = vpop.f32.mrf.mxu0  ;;  %v9171_v54 = vpop.f32.mrf.mxu1  ;;  %7139 = vmatmul.mubr.msk.bf16.gmra.mxu0 %vm1053_vm4, %v8744_v18  ;;  %7144 = vmatmul.mubr.msk.bf16.gmra.mxu1 %vm1053_vm4, %v8744_v18 }
 0x1a6   : > { %10868 = vst [vmem:[#allocation120_spill] sm:$0xff] %v9169_v30  ;;  %10869 = vst [vmem:[#allocation121_spill] sm:$0xff] %v9171_v54  ;;  %3777 = vmatprep.mubr.bf16.mxu0 %v10773_v6  ;;  %3850 = vmatprep.mubr.bf16.mxu1 %v10773_v6 }
 0x1a7   : > { %v9179_v50 = vpop.f32.mrf.mxu0  ;;  %v9181_v49 = vpop.f32.mrf.mxu1 }
 0x1a8   : > { %10870 = vst [vmem:[#allocation122_spill] sm:$0xff] %v9179_v50  ;;  %10871 = vst [vmem:[#allocation123_spill] sm:$0xff] %v9181_v49 }
 0x1a9   : > { %v9183_v48 = vpop.f32.mrf.mxu0  ;;  %v9185_v21 = vpop.f32.mrf.mxu1 }
 0x1aa   : > { %10872 = vst [vmem:[#allocation124_spill] sm:$0xff] %v9183_v48  ;;  %10873 = vst [vmem:[#allocation125_spill] sm:$0xff] %v9185_v21 }
 0x1ab   : > { %v9187_v30 = vpop.f32.mrf.mxu0  ;;  %v9189_v54 = vpop.f32.mrf.mxu1 }
 0x1ac   : > { %10874 = vst [vmem:[#allocation126_spill] sm:$0xff] %v9187_v30  ;;  %10875 = vst [vmem:[#allocation127_spill] sm:$0xff] %v9189_v54 }
 0x1ad   : > { %v9191_v60 = vpop.f32.mrf.mxu0  ;;  %v9193_v36 = vpop.f32.mrf.mxu1  ;;  %7140 = vmatmul.mubr.msk.bf16.gmra.mxu0 %vm1053_vm4, %v8797_v8  ;;  %7145 = vmatmul.mubr.msk.bf16.gmra.mxu1 %vm1053_vm4, %v8797_v8 }
 0x1ae   : > { %10876 = vst [vmem:[#allocation128_spill] sm:$0xff] %v9191_v60  ;;  %10877 = vst [vmem:[#allocation129_spill] sm:$0xff] %v9193_v36  ;;  %3787 = vmatprep.mubr.bf16.mxu0 %v10773_v6  ;;  %3860 = vmatprep.mubr.bf16.mxu1 %v10773_v6 }
 0x1af   : > { %v9201_v18 = vpop.f32.mrf.mxu0  ;;  %v9203_v21 = vpop.f32.mrf.mxu1 }
 0x1b0   : > { %10878 = vst [vmem:[#allocation130_spill] sm:$0xff] %v9201_v18  ;;  %10879 = vst [vmem:[#allocation131_spill] sm:$0xff] %v9203_v21 }
 0x1b1   : > { %v9205_v30 = vpop.f32.mrf.mxu0  ;;  %v9207_v54 = vpop.f32.mrf.mxu1 }
 0x1b2   : > { %10880 = vst [vmem:[#allocation132_spill] sm:$0xff] %v9205_v30  ;;  %10881 = vst [vmem:[#allocation133_spill] sm:$0xff] %v9207_v54 }
 0x1b3   : > { %v9209_v60 = vpop.f32.mrf.mxu0  ;;  %v9211_v36 = vpop.f32.mrf.mxu1 }
 0x1b4   : > { %10882 = vst [vmem:[#allocation134_spill] sm:$0xff] %v9209_v60  ;;  %10883 = vst [vmem:[#allocation135_spill] sm:$0xff] %v9211_v36 }
 0x1b5   : > { %v9213_v48 = vpop.f32.mrf.mxu0  ;;  %v9215_v49 = vpop.f32.mrf.mxu1  ;;  %7141 = vmatmul.mubr.msk.bf16.gmra.mxu0 %vm1053_vm4, %v8835_v39  ;;  %7146 = vmatmul.mubr.msk.bf16.gmra.mxu1 %vm1053_vm4, %v8835_v39 }
 0x1b6   : > { %10884 = vst [vmem:[#allocation136_spill] sm:$0xff] %v9213_v48  ;;  %10885 = vst [vmem:[#allocation137_spill] sm:$0xff] %v9215_v49 }
 0x1b7   : > { %v9221_v6 = vpop.f32.mrf.mxu0  ;;  %v9223_v8 = vpop.f32.mrf.mxu1 }
 0x1b8   : > { %10886 = vst [vmem:[#allocation138_spill] sm:$0xff] %v9221_v6  ;;  %10887 = vst [vmem:[#allocation139_spill] sm:$0xff] %v9223_v8 }
 0x1b9   : > { %v9225_v30 = vpop.f32.mrf.mxu0  ;;  %v9227_v54 = vpop.f32.mrf.mxu1 }
 0x1ba   : > { %10888 = vst [vmem:[#allocation140_spill] sm:$0xff] %v9225_v30  ;;  %10889 = vst [vmem:[#allocation141_spill] sm:$0xff] %v9227_v54 }
 0x1bb   : > { %v9229_v60 = vpop.f32.mrf.mxu0  ;;  %v9231_v36 = vpop.f32.mrf.mxu1 }
 0x1bc   : > { %10890 = vst [vmem:[#allocation142_spill] sm:$0xff] %v9229_v60  ;;  %10891 = vst [vmem:[#allocation143_spill] sm:$0xff] %v9231_v36 }
 0x1bd   : > { %v9233_v48 = vpop.f32.mrf.mxu0  ;;  %v9235_v49 = vpop.f32.mrf.mxu1 }
 0x1be   : > { %10892 = vst [vmem:[#allocation144_spill] sm:$0xff] %v9233_v48  ;;  %10893 = vst [vmem:[#allocation145_spill] sm:$0xff] %v9235_v49 }
 0x1bf   : > { %v9237_v21 = vpop.f32.mrf.mxu0  ;;  %v9239_v18 = vpop.f32.mrf.mxu1 }
 0x1c0   : > { %10894 = vst [vmem:[#allocation146_spill] sm:$0xff] %v9237_v21  ;;  %10895 = vst [vmem:[#allocation147_spill] sm:$0xff] %v9239_v18 }
 0x1c1   : > { %v9241_v39 = vpop.f32.mrf.mxu0  ;;  %v9243_v6 = vpop.f32.mrf.mxu1 }
 0x1c2   : > { %10896 = vst [vmem:[#allocation148_spill] sm:$0xff] %v9241_v39  ;;  %10897 = vst [vmem:[#allocation149_spill] sm:$0xff] %v9243_v6 }
 0x1c3   : > { %v9245_v8 = vpop.f32.mrf.mxu0  ;;  %v9247_v30 = vpop.f32.mrf.mxu1 }
 0x1c4   : > { %10898 = vst [vmem:[#allocation150_spill] sm:$0xff] %v9245_v8  ;;  %10899 = vst [vmem:[#allocation151_spill] sm:$0xff] %v9247_v30 }
 0x1c5   : > { %v9249_v54 = vpop.f32.mrf.mxu0  ;;  %v9251_v60 = vpop.f32.mrf.mxu1 }
 0x1c6   : > { %10900 = vst [vmem:[#allocation152_spill] sm:$0xff] %v9249_v54  ;;  %10901 = vst [vmem:[#allocation153_spill] sm:$0xff] %v9251_v60 }
 0x1c7   : > { %v9253_v36 = vpop.f32.mrf.mxu0  ;;  %v9255_v48 = vpop.f32.mrf.mxu1 }
 0x1c8   : > { %10902 = vst [vmem:[#allocation154_spill] sm:$0xff] %v9253_v36  ;;  %10903 = vst [vmem:[#allocation155_spill] sm:$0xff] %v9255_v48 }
 0x1c9   : > { %v9257_v49 = vpop.f32.mrf.mxu0  ;;  %v9259_v21 = vpop.f32.mrf.mxu1 }
 0x1ca   : > { %10904 = vst [vmem:[#allocation156_spill] sm:$0xff] %v9257_v49  ;;  %10905 = vst [vmem:[#allocation157_spill] sm:$0xff] %v9259_v21  ;;  %v4003_v21 = vlaneseq }
 0x1cb   : > { %v9261_v18 = vpop.f32.mrf.mxu0  ;;  %v9263_v39 = vpop.f32.mrf.mxu1 }
 0x1cc   : > { %10906 = vst [vmem:[#allocation158_spill] sm:$0xff] %v9261_v18  ;;  %10907 = vst [vmem:[#allocation159_spill] sm:$0xff] %v9263_v39 }
 0x1cd   : > { %v9265_v6 = vpop.f32.mrf.mxu0  ;;  %v9267_v8 = vpop.f32.mrf.mxu1 }
 0x1ce   : > { %10908 = vst [vmem:[#allocation160_spill] sm:$0xff] %v9265_v6  ;;  %10909 = vst [vmem:[#allocation161_spill] sm:$0xff] %v9267_v8 }
 0x1cf   : > { %v9269_v30 = vpop.f32.mrf.mxu0  ;;  %v9271_v54 = vpop.f32.mrf.mxu1 }
 0x1d0   : > { %10910 = vst [vmem:[#allocation162_spill] sm:$0xff] %v9269_v30  ;;  %10911 = vst [vmem:[#allocation163_spill] sm:$0xff] %v9271_v54  ;;  %v9289_v30 = vshrl.u32 %v4003_v21, 7 }
 0x1d1   : > { %v9273_v60 = vpop.f32.mrf.mxu0  ;;  %v9275_v36 = vpop.f32.mrf.mxu1 }
 0x1d2   : > { %10912 = vst [vmem:[#allocation164_spill] sm:$0xff] %v9273_v60  ;;  %10913 = vst [vmem:[#allocation165_spill] sm:$0xff] %v9275_v36  ;;  %v9311_v21 = vsub.s32 1, %v9289_v30 }
 0x1d3   : > { %v9277_v48 = vpop.f32.mrf.mxu0  ;;  %v9279_v49 = vpop.f32.mrf.mxu1  ;;  %10920 = vst [vmem:[#allocation172_spill] sm:$0xff] %v9289_v30 }
 0x1d4   : > { %10914 = vst [vmem:[#allocation166_spill] sm:$0xff] %v9277_v48  ;;  %10915 = vst [vmem:[#allocation167_spill] sm:$0xff] %v9279_v49  ;;  %v9300_v49 = vsub.s32 0, %v9289_v30 }
 0x1d5   : > { %v9281_v18 = vpop.f32.mrf.mxu0  ;;  %v9283_v39 = vpop.f32.mrf.mxu1  ;;  %10927 = vst [vmem:[#allocation179_spill] sm:$0xff] %v9311_v21 }
 0x1d6   : > { %10916 = vst [vmem:[#allocation168_spill] sm:$0xff] %v9281_v18  ;;  %10917 = vst [vmem:[#allocation169_spill] sm:$0xff] %v9283_v39  ;;  %v9303_v18 = vsub.s32 2, %v9289_v30  ;;  %v9330_v39 = vadd.f32 %v9043_v51, %v8403_v61  ;;  %v9350_v61 = vadd.f32 %v9052_v24, %v8412_v3  ;;  %v9370_v3 = vadd.f32 %v9067_v14, %v8427_v12  ;;  %v10939_v14 = vld [vmem:[#allocation106_spill] sm:$0xff] }
 0x1d7   : > { %v9285_v6 = vpop.f32.mrf.mxu0  ;;  %v9287_v8 = vpop.f32.mrf.mxu1  ;;  %10925 = vst [vmem:[#allocation177_spill] sm:$0xff] %v9300_v49  ;;  %v9390_v12 = vadd.f32 %v9092_v63, %v8452_v28  ;;  %v9410_v28 = vadd.f32 %v9103_v59, %v8469_v40  ;;  %v9430_v40 = vadd.f32 %v9117_v2, %v8485_v45  ;;  %v10945_v63 = vld [vmem:[#allocation108_spill] sm:$0xff]  ;;  %v10950_v59 = vld [vmem:[#allocation7_spill] sm:$0xff] }
 0x1d8   : > { %10918 = vst [vmem:[#allocation170_spill] sm:$0xff] %v9285_v6  ;;  %10919 = vst [vmem:[#allocation171_spill] sm:$0xff] %v9287_v8  ;;  %v9308_v8 = vld [vmem:[%s10725_s2] sm:$0xff]  ;;  %v9326_v6 = vadd.f32 %v9037_v25, %v8397_v57  ;;  %v9346_v57 = vadd.f32 %v9045_v34, %v8405_v62  ;;  %v9362_v25 = vadd.f32 %v9054_v7, %v8414_v5 }
 0x1d9   : > { %v9291_v54 = vpop.f32.mrf.mxu0  ;;  %v9293_v60 = vpop.f32.mrf.mxu1  ;;  %10926 = vst [vmem:[#allocation178_spill] sm:$0xff] %v9303_v18  ;;  %v9354_v51 = vrot.slane %v9308_v8, %v9311_v21  ;;  %v9366_v62 = vadd.f32 %v9065_v33, %v8425_v10  ;;  %v9374_v34 = vadd.f32 %v9075_v1, %v8435_v20  ;;  %v9382_v5 = vadd.f32 %v9077_v29, %v8437_v37  ;;  %v10941_v1 = vld [vmem:[#allocation4_spill] sm:$0xff]  ;;  %v10942_v29 = vld [vmem:[#allocation107_spill] sm:$0xff] }
 0x1da   : > { %10921 = vst [vmem:[#allocation173_spill] sm:$0xff] %v9291_v54  ;;  %10922 = vst [vmem:[#allocation174_spill] sm:$0xff] %v9293_v60  ;;  %v9314_v60 = vsub.s32 3, %v9289_v30  ;;  %v9322_v54 = vadd.f32 %v9035_v16, %v8395_v56  ;;  %v9342_v56 = vrot.slane %v9308_v8, %v9303_v18  ;;  %v9386_v10 = vadd.f32 %v9090_v43, %v8450_v27  ;;  %v10944_v43 = vld [vmem:[#allocation5_spill] sm:$0xff]  ;;  %v10954_v2 = vld [vmem:[#allocation111_spill] sm:$0xff] }
 0x1db   : > { %v9295_v36 = vpop.f32.mrf.mxu0  ;;  %v9297_v48 = vpop.f32.mrf.mxu1  ;;  %v9394_v20 = vadd.f32 %v9095_v0, %v8455_v26  ;;  %v9398_v7 = vadd.f32 %v9097_v55, %v8457_v31  ;;  %v9402_v37 = vadd.f32 %v9099_v15, %v8465_v53  ;;  %v9406_v27 = vadd.f32 %v9101_v52, %v8467_v4  ;;  %10930 = vst [vmem:[#allocation182_spill] sm:$0xff] %v9410_v28  ;;  %v10947_v15 = vld [vmem:[#allocation6_spill] sm:$0xff]  ;;  %v10948_v52 = vld [vmem:[#allocation109_spill] sm:$0xff]  ;;  %v10971_v21 = vld [vmem:[#allocation116_spill] sm:$0xff] }
 0x1dc   : > { %10923 = vst [vmem:[#allocation175_spill] sm:$0xff] %v9295_v36  ;;  %10924 = vst [vmem:[#allocation176_spill] sm:$0xff] %v9297_v48  ;;  %v9358_v16 = vrot.slane %v9308_v8, %v9314_v60  ;;  %v9418_v31 = vadd.f32 %v9105_v38, %v8471_v41  ;;  %v9422_v53 = vadd.f32 %v9113_v11, %v8479_v42  ;;  %v10951_v38 = vld [vmem:[#allocation110_spill] sm:$0xff]  ;;  %v10974_v18 = vld [vmem:[#allocation117_spill] sm:$0xff] }
 0x1dd   : > { %10928 = vst [vmem:[#allocation180_spill] sm:$0xff] %v9314_v60  ;;  %v9316_v36 = vpop.f32.mrf.mxu0  ;;  %v9318_v48 = vpop.f32.mrf.mxu1  ;;  %v9426_v4 = vadd.f32 %v9115_v58, %v8481_v44  ;;  %10934 = vst [vmem:[#allocation186_spill] sm:$0xff] %v9430_v40  ;;  %v9434_v55 = vadd.f32 %v9119_v17, %v8487_v46  ;;  %v9438_v41 = vadd.f32 %v9121_v13, %v8489_v22  ;;  %v10953_v58 = vld [vmem:[#allocation8_spill] sm:$0xff]  ;;  %v10956_v17 = vld [vmem:[#allocation9_spill] sm:$0xff] }
 0x1de   : > { %10929 = vst [vmem:[#allocation181_spill] sm:$0xff] %v9316_v36  ;;  %v9338_v36 = vrot.slane %v9308_v8, %v9300_v49  ;;  %10931 = vst [vmem:[#allocation183_spill] sm:$0xff] %v9418_v31  ;;  %v9442_v42 = vadd.f32 %v9123_v9, %v8491_v23  ;;  %v9446_v44 = vadd.f32 %v9125_v19, %v8493_v35  ;;  %v10957_v13 = vld [vmem:[#allocation112_spill] sm:$0xff]  ;;  %v10959_v19 = vld [vmem:[#allocation10_spill] sm:$0xff] }
 0x1df   : > { %v9332_v50 = vpop.f32.mrf.mxu0  ;;  %v9334_v30 = vpop.f32.mrf.mxu1  ;;  %10932 = vst [vmem:[#allocation184_spill] sm:$0xff] %v9422_v53  ;;  %10933 = vst [vmem:[#allocation185_spill] sm:$0xff] %v9426_v4  ;;  %v9454_v46 = vadd.f32 %v10939_v14, %v8495_v47  ;;  %v9458_v22 = vadd.f32 %v10942_v29, %v10941_v1  ;;  %v9462_v23 = vadd.f32 %v10945_v63, %v10944_v43  ;;  %v10960_v14 = vld [vmem:[#allocation113_spill] sm:$0xff]  ;;  %v10962_v63 = vld [vmem:[#allocation11_spill] sm:$0xff] }
 0x1e0   : > { %10935 = vst [vmem:[#allocation187_spill] sm:$0xff] %v9434_v55  ;;  %10936 = vst [vmem:[#allocation188_spill] sm:$0xff] %v9438_v41  ;;  %v9466_v35 = vadd.f32 %v10948_v52, %v10947_v15  ;;  %v9470_v11 = vadd.f32 %v10951_v38, %v10950_v59  ;;  %v9474_v47 = vadd.f32 %v10954_v2, %v10953_v58  ;;  %v10963_v15 = vld [vmem:[#allocation114_spill] sm:$0xff]  ;;  %v10965_v59 = vld [vmem:[#allocation12_spill] sm:$0xff] }
 0x1e1   : > { %v9376_v24 = vpop.f32.mrf.mxu0  ;;  %v9378_v60 = vpop.f32.mrf.mxu1  ;;  %10937 = vst [vmem:[#allocation189_spill] sm:$0xff] %v9442_v42  ;;  %10938 = vst [vmem:[#allocation190_spill] sm:$0xff] %v9446_v44  ;;  %v9478_v9 = vadd.f32 %v10957_v13, %v10956_v17  ;;  %v9482_v1 = vadd.f32 %v10960_v14, %v10959_v19  ;;  %v9490_v52 = vadd.f32 %v10963_v15, %v10962_v63  ;;  %v10967_v58 = vld [vmem:[#allocation13_spill] sm:$0xff]  ;;  %v10968_v2 = vld [vmem:[#allocation115_spill] sm:$0xff] }
 0x1e2   : > { %10940 = vst [vmem:[#allocation106_spill] sm:$0xff] %v9454_v46  ;;  %10943 = vst [vmem:[#allocation4_spill] sm:$0xff] %v9458_v22  ;;  %v9494_v38 = vadd.f32 %v9157_v32, %v10965_v59  ;;  %v9498_v17 = vadd.f32 %v10968_v2, %v10967_v58  ;;  %v10970_v13 = vld [vmem:[#allocation14_spill] sm:$0xff]  ;;  %v10973_v14 = vld [vmem:[#allocation15_spill] sm:$0xff] }
 0x1e3   : > { %v9412_v33 = vpop.f32.mrf.mxu0  ;;  %v9414_v26 = vpop.f32.mrf.mxu1  ;;  %10946 = vst [vmem:[#allocation107_spill] sm:$0xff] %v9462_v23  ;;  %10949 = vst [vmem:[#allocation5_spill] sm:$0xff] %v9466_v35  ;;  %v9502_v19 = vadd.f32 %v10971_v21, %v10970_v13  ;;  %v9506_v49 = vadd.f32 %v10974_v18, %v10973_v14  ;;  %v10979_v15 = vld [vmem:[#allocation17_spill] sm:$0xff]  ;;  %v10982_v59 = vld [vmem:[#allocation18_spill] sm:$0xff] }
 0x1e4   : > { %10952 = vst [vmem:[#allocation108_spill] sm:$0xff] %v9470_v11  ;;  %10955 = vst [vmem:[#allocation6_spill] sm:$0xff] %v9474_v47  ;;  %v10985_v13 = vld [vmem:[#allocation19_spill] sm:$0xff]  ;;  %v10988_v14 = vld [vmem:[#allocation20_spill] sm:$0xff] }
 0x1e5   : > { %v9448_v0 = vpop.f32.mrf.mxu0  ;;  %v9450_v45 = vpop.f32.mrf.mxu1  ;;  %10958 = vst [vmem:[#allocation109_spill] sm:$0xff] %v9478_v9  ;;  %10961 = vst [vmem:[#allocation7_spill] sm:$0xff] %v9482_v1  ;;  %v10976_v1 = vld [vmem:[#allocation16_spill] sm:$0xff]  ;;  %v10977_v9 = vld [vmem:[#allocation118_spill] sm:$0xff] }
 0x1e6   : > { %10964 = vst [vmem:[#allocation110_spill] sm:$0xff] %v9490_v52  ;;  %10966 = vst [vmem:[#allocation8_spill] sm:$0xff] %v9494_v38  ;;  %v9510_v63 = vadd.f32 %v10977_v9, %v10976_v1  ;;  %v10980_v52 = vld [vmem:[#allocation119_spill] sm:$0xff]  ;;  %v10983_v38 = vld [vmem:[#allocation120_spill] sm:$0xff] }
 0x1e7   : > { %v9484_v29 = vpop.f32.mrf.mxu0  ;;  %v9486_v43 = vpop.f32.mrf.mxu1  ;;  %10969 = vst [vmem:[#allocation111_spill] sm:$0xff] %v9498_v17  ;;  %10972 = vst [vmem:[#allocation9_spill] sm:$0xff] %v9502_v19  ;;  %v9514_v32 = vadd.f32 %v10980_v52, %v10979_v15  ;;  %v9518_v58 = vadd.f32 %v10983_v38, %v10982_v59  ;;  %v10986_v19 = vld [vmem:[#allocation121_spill] sm:$0xff]  ;;  %v10994_v15 = vld [vmem:[#allocation22_spill] sm:$0xff] }
 0x1e8   : > { %10975 = vst [vmem:[#allocation112_spill] sm:$0xff] %v9506_v49  ;;  %10978 = vst [vmem:[#allocation10_spill] sm:$0xff] %v9510_v63  ;;  %v9526_v18 = vadd.f32 %v10986_v19, %v10985_v13  ;;  %v10989_v49 = vld [vmem:[#allocation122_spill] sm:$0xff]  ;;  %v10991_v1 = vld [vmem:[#allocation21_spill] sm:$0xff] }
 0x1e9   : > { %10981 = vst [vmem:[#allocation113_spill] sm:$0xff] %v9514_v32  ;;  %10984 = vst [vmem:[#allocation11_spill] sm:$0xff] %v9518_v58  ;;  %v9520_v2 = vpop.f32.mrf.mxu0  ;;  %v9522_v21 = vpop.f32.mrf.mxu1  ;;  %v9530_v9 = vadd.f32 %v10989_v49, %v10988_v14  ;;  %v10992_v63 = vld [vmem:[#allocation123_spill] sm:$0xff]  ;;  %v10995_v32 = vld [vmem:[#allocation124_spill] sm:$0xff] }
 0x1ea   : > { %10987 = vst [vmem:[#allocation114_spill] sm:$0xff] %v9526_v18  ;;  %v9534_v52 = vadd.f32 %v10992_v63, %v10991_v1  ;;  %v9538_v38 = vadd.f32 %v10995_v32, %v10994_v15  ;;  %v10997_v59 = vld [vmem:[#allocation23_spill] sm:$0xff]  ;;  %v10998_v58 = vld [vmem:[#allocation125_spill] sm:$0xff]  ;;  %v11000_v47 = vld [vmem:[#allocation24_spill] sm:$0xff] }
 0x1eb   : > { %10990 = vst [vmem:[#allocation12_spill] sm:$0xff] %v9530_v9  ;;  %v9542_v17 = vadd.f32 %v10998_v58, %v10997_v59  ;;  %v11001_v11 = vld [vmem:[#allocation126_spill] sm:$0xff]  ;;  %v11003_v13 = vld [vmem:[#allocation25_spill] sm:$0xff]  ;;  %v11004_v18 = vld [vmem:[#allocation127_spill] sm:$0xff]  ;;  %v9556_v1 = vpop.f32.mrf.mxu0  ;;  %v9558_v32 = vpop.f32.mrf.mxu1 }
 0x1ec   : > { %10993 = vst [vmem:[#allocation13_spill] sm:$0xff] %v9534_v52  ;;  %10996 = vst [vmem:[#allocation115_spill] sm:$0xff] %v9538_v38  ;;  %v9546_v19 = vadd.f32 %v11001_v11, %v11000_v47  ;;  %v9550_v49 = vadd.f32 %v11004_v18, %v11003_v13  ;;  %v11006_v14 = vld [vmem:[#allocation26_spill] sm:$0xff]  ;;  %v11007_v9 = vld [vmem:[#allocation128_spill] sm:$0xff] }
 0x1ed   : > { %10999 = vst [vmem:[#allocation14_spill] sm:$0xff] %v9542_v17  ;;  %v9554_v63 = vadd.f32 %v11007_v9, %v11006_v14  ;;  %v11009_v15 = vld [vmem:[#allocation27_spill] sm:$0xff]  ;;  %v11010_v38 = vld [vmem:[#allocation129_spill] sm:$0xff]  ;;  %v11012_v59 = vld [vmem:[#allocation28_spill] sm:$0xff] }
 0x1ee   : > { %11002 = vst [vmem:[#allocation116_spill] sm:$0xff] %v9546_v19  ;;  %11005 = vst [vmem:[#allocation15_spill] sm:$0xff] %v9550_v49  ;;  %v9562_v58 = vadd.f32 %v11010_v38, %v11009_v15  ;;  %v11013_v17 = vld [vmem:[#allocation130_spill] sm:$0xff]  ;;  %v11015_v47 = vld [vmem:[#allocation29_spill] sm:$0xff] }
 0x1ef   : > { %11008 = vst [vmem:[#allocation117_spill] sm:$0xff] %v9554_v63  ;;  %v9566_v11 = vadd.f32 %v11013_v17, %v11012_v59  ;;  %v11016_v19 = vld [vmem:[#allocation131_spill] sm:$0xff]  ;;  %v11018_v13 = vld [vmem:[#allocation30_spill] sm:$0xff]  ;;  %v11019_v49 = vld [vmem:[#allocation132_spill] sm:$0xff] }
 0x1f0   : > { %11011 = vst [vmem:[#allocation16_spill] sm:$0xff] %v9562_v58  ;;  %v9570_v18 = vadd.f32 %v11016_v19, %v11015_v47  ;;  %v9574_v9 = vadd.f32 %v11019_v49, %v11018_v13  ;;  %v11021_v14 = vld [vmem:[#allocation31_spill] sm:$0xff]  ;;  %v11022_v63 = vld [vmem:[#allocation133_spill] sm:$0xff]  ;;  %v11024_v35 = vld [vmem:[#allocation32_spill] sm:$0xff]  ;;  %v9592_v47 = vpop.f32.mrf.mxu0  ;;  %v9594_v49 = vpop.f32.mrf.mxu1 }
 0x1f1   : > { %11014 = vst [vmem:[#allocation118_spill] sm:$0xff] %v9566_v11  ;;  %v9578_v52 = vadd.f32 %v11022_v63, %v11021_v14  ;;  %v11025_v23 = vld [vmem:[#allocation134_spill] sm:$0xff]  ;;  %v11027_v15 = vld [vmem:[#allocation33_spill] sm:$0xff]  ;;  %v11028_v58 = vld [vmem:[#allocation135_spill] sm:$0xff] }
 0x1f2   : > { %11017 = vst [vmem:[#allocation17_spill] sm:$0xff] %v9570_v18  ;;  %11020 = vst [vmem:[#allocation119_spill] sm:$0xff] %v9574_v9  ;;  %v9582_v38 = vadd.f32 %v11025_v23, %v11024_v35  ;;  %v9586_v17 = vadd.f32 %v11028_v58, %v11027_v15  ;;  %v11030_v59 = vld [vmem:[#allocation34_spill] sm:$0xff]  ;;  %v11031_v11 = vld [vmem:[#allocation136_spill] sm:$0xff] }
 0x1f3   : > { %11023 = vst [vmem:[#allocation18_spill] sm:$0xff] %v9578_v52  ;;  %v9590_v19 = vadd.f32 %v11031_v11, %v11030_v59  ;;  %v11033_v13 = vld [vmem:[#allocation35_spill] sm:$0xff]  ;;  %v11034_v9 = vld [vmem:[#allocation137_spill] sm:$0xff]  ;;  %v11036_v14 = vld [vmem:[#allocation36_spill] sm:$0xff] }
 0x1f4   : > { %11026 = vst [vmem:[#allocation120_spill] sm:$0xff] %v9582_v38  ;;  %11029 = vst [vmem:[#allocation19_spill] sm:$0xff] %v9586_v17  ;;  %v9598_v63 = vadd.f32 %v11034_v9, %v11033_v13  ;;  %v11037_v52 = vld [vmem:[#allocation138_spill] sm:$0xff]  ;;  %v11039_v35 = vld [vmem:[#allocation37_spill] sm:$0xff] }
 0x1f5   : > { %11032 = vst [vmem:[#allocation121_spill] sm:$0xff] %v9590_v19  ;;  %v9602_v23 = vadd.f32 %v11037_v52, %v11036_v14  ;;  %v11040_v38 = vld [vmem:[#allocation139_spill] sm:$0xff]  ;;  %v11042_v15 = vld [vmem:[#allocation38_spill] sm:$0xff]  ;;  %v11043_v17 = vld [vmem:[#allocation140_spill] sm:$0xff]  ;;  %v9624_v14 = vpop.f32.mrf.mxu0 }
 0x1f6   : > { %11035 = vst [vmem:[#allocation20_spill] sm:$0xff] %v9598_v63  ;;  %v9606_v58 = vadd.f32 %v11040_v38, %v11039_v35  ;;  %v9610_v11 = vadd.f32 %v11043_v17, %v11042_v15  ;;  %v11045_v59 = vld [vmem:[#allocation39_spill] sm:$0xff]  ;;  %v11046_v19 = vld [vmem:[#allocation141_spill] sm:$0xff]  ;;  %v11048_v22 = vld [vmem:[#allocation40_spill] sm:$0xff]  ;;  %v9626_v38 = vpop.f32.mrf.mxu1 }
 0x1f7   : > { %11038 = vst [vmem:[#allocation122_spill] sm:$0xff] %v9602_v23  ;;  %v9614_v18 = vadd.f32 %v11046_v19, %v11045_v59  ;;  %v11049_v46 = vld [vmem:[#allocation142_spill] sm:$0xff]  ;;  %v11051_v13 = vld [vmem:[#allocation41_spill] sm:$0xff]  ;;  %v11052_v63 = vld [vmem:[#allocation143_spill] sm:$0xff] }
 0x1f8   : > { %11041 = vst [vmem:[#allocation21_spill] sm:$0xff] %v9606_v58  ;;  %11044 = vst [vmem:[#allocation123_spill] sm:$0xff] %v9610_v11  ;;  %v9618_v9 = vadd.f32 %v11049_v46, %v11048_v22  ;;  %v9622_v52 = vadd.f32 %v11052_v63, %v11051_v13  ;;  %v11054_v35 = vld [vmem:[#allocation172_spill] sm:$0xff]  ;;  %v11056_v17 = vld [vmem:[#allocation42_spill] sm:$0xff] }
 0x1f9   : > { %11047 = vst [vmem:[#allocation22_spill] sm:$0xff] %v9614_v18  ;;  %v9629_v58 = vsub.s32 4, %v11054_v35  ;;  %v11057_v15 = vld [vmem:[#allocation144_spill] sm:$0xff]  ;;  %v11059_v19 = vld [vmem:[#allocation43_spill] sm:$0xff]  ;;  %v11060_v59 = vld [vmem:[#allocation145_spill] sm:$0xff]  ;;  %v9644_v63 = vsub.s32 6, %v11054_v35 }
 0x1fa   : > { %11050 = vst [vmem:[#allocation124_spill] sm:$0xff] %v9618_v9  ;;  %11053 = vst [vmem:[#allocation23_spill] sm:$0xff] %v9622_v52  ;;  %v9633_v11 = vadd.f32 %v11057_v15, %v11056_v17  ;;  %v9637_v18 = vadd.f32 %v11060_v59, %v11059_v19  ;;  %v11062_v46 = vld [vmem:[#allocation44_spill] sm:$0xff]  ;;  %v11063_v22 = vld [vmem:[#allocation146_spill] sm:$0xff]  ;;  %v9658_v19 = vpop.f32.mrf.mxu0  ;;  %v9660_v59 = vpop.f32.mrf.mxu1 }
 0x1fb   : > { %11055 = vst [vmem:[#allocation125_spill] sm:$0xff] %v9629_v58  ;;  %v9641_v9 = vadd.f32 %v11063_v22, %v11062_v46  ;;  %11065 = vst [vmem:[#allocation127_spill] sm:$0xff] %v9644_v63  ;;  %v11066_v13 = vld [vmem:[#allocation45_spill] sm:$0xff]  ;;  %v11067_v52 = vld [vmem:[#allocation147_spill] sm:$0xff]  ;;  %v9663_v46 = vsub.s32 5, %v11054_v35 }
 0x1fc   : > { %11058 = vst [vmem:[#allocation24_spill] sm:$0xff] %v9633_v11  ;;  %11061 = vst [vmem:[#allocation126_spill] sm:$0xff] %v9637_v18  ;;  %v9648_v23 = vadd.f32 %v11067_v52, %v11066_v13  ;;  %v11069_v44 = vld [vmem:[#allocation46_spill] sm:$0xff]  ;;  %v11070_v42 = vld [vmem:[#allocation148_spill] sm:$0xff] }
 0x1fd   : > { %11064 = vst [vmem:[#allocation25_spill] sm:$0xff] %v9641_v9  ;;  %v9652_v41 = vadd.f32 %v11070_v42, %v11069_v44  ;;  %v11072_v17 = vld [vmem:[#allocation47_spill] sm:$0xff]  ;;  %v11073_v15 = vld [vmem:[#allocation149_spill] sm:$0xff]  ;;  %11075 = vst [vmem:[#allocation129_spill] sm:$0xff] %v9663_v46 }
 0x1fe   : > { %11068 = vst [vmem:[#allocation26_spill] sm:$0xff] %v9648_v23  ;;  %v9656_v11 = vadd.f32 %v11073_v15, %v11072_v17  ;;  %v11076_v22 = vld [vmem:[#allocation48_spill] sm:$0xff]  ;;  %v11077_v9 = vld [vmem:[#allocation150_spill] sm:$0xff]  ;;  %v11079_v52 = vld [vmem:[#allocation49_spill] sm:$0xff]  ;;  %v9678_v17 = vsub.s32 7, %v11054_v35 }
 0x1ff   : > { %11071 = vst [vmem:[#allocation128_spill] sm:$0xff] %v9652_v41  ;;  %v9667_v18 = vadd.f32 %v11077_v9, %v11076_v22  ;;  %v11080_v13 = vld [vmem:[#allocation151_spill] sm:$0xff]  ;;  %v11082_v42 = vld [vmem:[#allocation50_spill] sm:$0xff]  ;;  %v11083_v44 = vld [vmem:[#allocation152_spill] sm:$0xff] }
 0x200   : > { %11074 = vst [vmem:[#allocation27_spill] sm:$0xff] %v9656_v11  ;;  %v9671_v23 = vadd.f32 %v11080_v13, %v11079_v52  ;;  %v9675_v41 = vadd.f32 %v11083_v44, %v11082_v42  ;;  %11085 = vst [vmem:[#allocation131_spill] sm:$0xff] %v9678_v17  ;;  %v11086_v15 = vld [vmem:[#allocation51_spill] sm:$0xff]  ;;  %v11087_v11 = vld [vmem:[#allocation153_spill] sm:$0xff]  ;;  %v2637_v52 = vpop.f32.mrf.mxu0  ;;  %v9692_v13 = vpop.f32.mrf.mxu1  ;;  %v9696_v42 = vrot.slane %v9308_v8, %v9629_v58 }
 0x201   : > { %11078 = vst [vmem:[#allocation28_spill] sm:$0xff] %v9667_v18  ;;  %v9682_v55 = vadd.f32 %v11087_v11, %v11086_v15  ;;  %v11089_v40 = vld [vmem:[#allocation52_spill] sm:$0xff]  ;;  %v11090_v4 = vld [vmem:[#allocation154_spill] sm:$0xff]  ;;  %v11092_v9 = vld [vmem:[#allocation53_spill] sm:$0xff] }
 0x202   : > { %11081 = vst [vmem:[#allocation130_spill] sm:$0xff] %v9671_v23  ;;  %11084 = vst [vmem:[#allocation29_spill] sm:$0xff] %v9675_v41  ;;  %v9686_v53 = vadd.f32 %v11090_v4, %v11089_v40  ;;  %v11093_v22 = vld [vmem:[#allocation155_spill] sm:$0xff]  ;;  %v11096_v35 = vld [vmem:[#allocation54_spill] sm:$0xff] }
 0x203   : > { %11088 = vst [vmem:[#allocation30_spill] sm:$0xff] %v9682_v55  ;;  %v9690_v18 = vadd.f32 %v11093_v22, %v11092_v9  ;;  %11095 = vst [vmem:[#allocation133_spill] sm:$0xff] %v9696_v42  ;;  %v11097_v44 = vld [vmem:[#allocation156_spill] sm:$0xff]  ;;  %v11099_v11 = vld [vmem:[#allocation55_spill] sm:$0xff]  ;;  %v9712_v9 = vrot.slane %v9308_v8, %v9644_v63 }
 0x204   : > { %11091 = vst [vmem:[#allocation132_spill] sm:$0xff] %v9686_v53  ;;  %v9700_v41 = vadd.f32 %v11097_v44, %v11096_v35  ;;  %v11100_v15 = vld [vmem:[#allocation157_spill] sm:$0xff]  ;;  %v11102_v4 = vld [vmem:[#allocation56_spill] sm:$0xff]  ;;  %v11103_v40 = vld [vmem:[#allocation158_spill] sm:$0xff] }
 0x205   : > { %11094 = vst [vmem:[#allocation31_spill] sm:$0xff] %v9690_v18  ;;  %v9704_v55 = vadd.f32 %v11100_v15, %v11099_v11  ;;  %v9708_v53 = vadd.f32 %v11103_v40, %v11102_v4  ;;  %11105 = vst [vmem:[#allocation135_spill] sm:$0xff] %v9712_v9  ;;  %v11106_v22 = vld [vmem:[#allocation57_spill] sm:$0xff]  ;;  %v11107_v18 = vld [vmem:[#allocation159_spill] sm:$0xff]  ;;  %v2641_v15 = vpop.f32.mrf.mxu0  ;;  %v9728_v4 = vrot.slane %v9308_v8, %v9663_v46 }
 0x206   : > { %11098 = vst [vmem:[#allocation32_spill] sm:$0xff] %v9700_v41  ;;  %v9716_v58 = vadd.f32 %v11107_v18, %v11106_v22  ;;  %v11109_v23 = vld [vmem:[#allocation58_spill] sm:$0xff]  ;;  %v11110_v42 = vld [vmem:[#allocation160_spill] sm:$0xff]  ;;  %v11112_v44 = vld [vmem:[#allocation59_spill] sm:$0xff] }
 0x207   : > { %11101 = vst [vmem:[#allocation134_spill] sm:$0xff] %v9704_v55  ;;  %11104 = vst [vmem:[#allocation33_spill] sm:$0xff] %v9708_v53  ;;  %v9720_v35 = vadd.f32 %v11110_v42, %v11109_v23  ;;  %v11113_v41 = vld [vmem:[#allocation161_spill] sm:$0xff]  ;;  %v2714_v55 = vpop.f32.mrf.mxu1  ;;  %v11116_v40 = vld [vmem:[#allocation60_spill] sm:$0xff] }
 0x208   : > { %11108 = vst [vmem:[#allocation34_spill] sm:$0xff] %v9716_v58  ;;  %v9724_v11 = vadd.f32 %v11113_v41, %v11112_v44  ;;  %11115 = vst [vmem:[#allocation137_spill] sm:$0xff] %v9728_v4  ;;  %v11117_v63 = vld [vmem:[#allocation162_spill] sm:$0xff]  ;;  %v11119_v18 = vld [vmem:[#allocation61_spill] sm:$0xff]  ;;  %v9744_v41 = vrot.slane %v9308_v8, %v9678_v17 }
 0x209   : > { %11111 = vst [vmem:[#allocation136_spill] sm:$0xff] %v9720_v35  ;;  %v9732_v53 = vadd.f32 %v11117_v63, %v11116_v40  ;;  %v11120_v22 = vld [vmem:[#allocation163_spill] sm:$0xff]  ;;  %v11122_v23 = vld [vmem:[#allocation62_spill] sm:$0xff]  ;;  %v11123_v42 = vld [vmem:[#allocation164_spill] sm:$0xff] }
 0x20a   : > { %11114 = vst [vmem:[#allocation35_spill] sm:$0xff] %v9724_v11  ;;  %v9736_v58 = vadd.f32 %v11120_v22, %v11119_v18  ;;  %v9740_v35 = vadd.f32 %v11123_v42, %v11122_v23  ;;  %11125 = vst [vmem:[#allocation139_spill] sm:$0xff] %v9744_v41  ;;  %v11126_v44 = vld [vmem:[#allocation63_spill] sm:$0xff]  ;;  %v11127_v11 = vld [vmem:[#allocation165_spill] sm:$0xff]  ;;  %v2643_v42 = vpop.f32.mrf.mxu0 }
 0x20b   : > { %11118 = vst [vmem:[#allocation36_spill] sm:$0xff] %v9732_v53  ;;  %v9748_v46 = vadd.f32 %v11127_v11, %v11126_v44  ;;  %v11129_v4 = vld [vmem:[#allocation64_spill] sm:$0xff]  ;;  %v11130_v9 = vld [vmem:[#allocation166_spill] sm:$0xff]  ;;  %v11132_v40 = vld [vmem:[#allocation65_spill] sm:$0xff] }
 0x20c   : > { %11121 = vst [vmem:[#allocation138_spill] sm:$0xff] %v9736_v58  ;;  %11124 = vst [vmem:[#allocation37_spill] sm:$0xff] %v9740_v35  ;;  %v9752_v63 = vadd.f32 %v11130_v9, %v11129_v4  ;;  %v11133_v53 = vld [vmem:[#allocation167_spill] sm:$0xff]  ;;  %v11135_v22 = vld [vmem:[#allocation66_spill] sm:$0xff]  ;;  %v2716_v35 = vpop.f32.mrf.mxu1 }
 0x20d   : > { %11128 = vst [vmem:[#allocation38_spill] sm:$0xff] %v9748_v46  ;;  %v9756_v18 = vadd.f32 %v11133_v53, %v11132_v40  ;;  %v11136_v58 = vld [vmem:[#allocation168_spill] sm:$0xff]  ;;  %v11138_v8 = vld [vmem:[#allocation67_spill] sm:$0xff]  ;;  %v11139_v17 = vld [vmem:[#allocation169_spill] sm:$0xff] }
 0x20e   : > { %11131 = vst [vmem:[#allocation140_spill] sm:$0xff] %v9752_v63  ;;  %v9760_v23 = vadd.f32 %v11136_v58, %v11135_v22  ;;  %v9764_v41 = vadd.f32 %v11139_v17, %v11138_v8  ;;  %v11141_v11 = vld [vmem:[#allocation68_spill] sm:$0xff]  ;;  %v11142_v44 = vld [vmem:[#allocation170_spill] sm:$0xff]  ;;  %v11144_v9 = vld [vmem:[#allocation69_spill] sm:$0xff] }
 0x20f   : > { %11134 = vst [vmem:[#allocation39_spill] sm:$0xff] %v9756_v18  ;;  %v9768_v46 = vadd.f32 %v11142_v44, %v11141_v11  ;;  %v11145_v4 = vld [vmem:[#allocation171_spill] sm:$0xff]  ;;  %v11147_v53 = vld [vmem:[#allocation70_spill] sm:$0xff]  ;;  %v11148_v40 = vld [vmem:[#allocation173_spill] sm:$0xff] }
 0x210   : > { %11137 = vst [vmem:[#allocation141_spill] sm:$0xff] %v9760_v23  ;;  %11140 = vst [vmem:[#allocation40_spill] sm:$0xff] %v9764_v41  ;;  %v9772_v63 = vadd.f32 %v11145_v4, %v11144_v9  ;;  %v9776_v18 = vadd.f32 %v11148_v40, %v11147_v53  ;;  %v11149_v58 = vld [vmem:[#allocation71_spill] sm:$0xff]  ;;  %v11150_v22 = vld [vmem:[#allocation174_spill] sm:$0xff]  ;;  %v2645_v4 = vpop.f32.mrf.mxu0 }
 0x211   : > { %11143 = vst [vmem:[#allocation142_spill] sm:$0xff] %v9768_v46  ;;  %v9780_v23 = vadd.f32 %v11150_v22, %v11149_v58  ;;  %v11151_v31 = vld [vmem:[#allocation72_spill] sm:$0xff]  ;;  %v11152_v28 = vld [vmem:[#allocation175_spill] sm:$0xff]  ;;  %v11153_v8 = vld [vmem:[#allocation73_spill] sm:$0xff] }
 0x212   : > { %11146 = vst [vmem:[#allocation41_spill] sm:$0xff] %v9772_v63  ;;  %v9784_v17 = vadd.f32 %v11152_v28, %v11151_v31  ;;  %v11154_v41 = vld [vmem:[#allocation176_spill] sm:$0xff]  ;;  %v11155_v44 = vld [vmem:[#allocation74_spill] sm:$0xff]  ;;  %v11156_v46 = vld [vmem:[#allocation181_spill] sm:$0xff]  ;;  %v9794_v63 = vpop.f32.mrf.mxu1 }
 0x213   : > { %v9788_v11 = vadd.f32 %v11154_v41, %v11153_v8  ;;  %v9792_v9 = vadd.f32 %v11156_v46, %v11155_v44  ;;  %11157 = vst [vmem:[#allocation143_spill] sm:$0xff] %v9794_v63  ;;  %v11158_v53 = vld [vmem:[#allocation75_spill] sm:$0xff]  ;;  %v11159_v58 = vld [vmem:[#allocation76_spill] sm:$0xff]  ;;  %v11160_v28 = vld [vmem:[#allocation77_spill] sm:$0xff] }
 0x214   : > { %v9798_v40 = vadd.f32 %v9318_v48, %v11158_v53  ;;  %v9802_v22 = vadd.f32 %v9332_v50, %v11159_v58  ;;  %v9806_v31 = vadd.f32 %v9334_v30, %v11160_v28  ;;  %v11161_v41 = vld [vmem:[#allocation78_spill] sm:$0xff]  ;;  %v11162_v46 = vld [vmem:[#allocation79_spill] sm:$0xff]  ;;  %v11163_v63 = vld [vmem:[#allocation80_spill] sm:$0xff]  ;;  %v9828_v28 = vpop.f32.mrf.mxu0 }
 0x215   : > { %v9810_v8 = vadd.f32 %v9376_v24, %v11161_v41  ;;  %v9814_v44 = vadd.f32 %v9378_v60, %v11162_v46  ;;  %v9818_v48 = vadd.f32 %v9412_v33, %v11163_v63  ;;  %v11164_v53 = vld [vmem:[#allocation81_spill] sm:$0xff]  ;;  %v11165_v58 = vld [vmem:[#allocation82_spill] sm:$0xff]  ;;  %v9830_v24 = vpop.f32.mrf.mxu1  ;;  %v11168_v41 = vld [vmem:[#allocation83_spill] sm:$0xff] }
 0x216   : > { %v9822_v50 = vadd.f32 %v9414_v26, %v11164_v53  ;;  %v9826_v30 = vadd.f32 %v9448_v0, %v11165_v58  ;;  %11167 = vst [vmem:[#allocation42_spill] sm:$0xff] %v9830_v24  ;;  %v9834_v60 = vadd.f32 %v9450_v45, %v11168_v41  ;;  %v11169_v46 = vld [vmem:[#allocation84_spill] sm:$0xff]  ;;  %v11170_v63 = vld [vmem:[#allocation85_spill] sm:$0xff]  ;;  %v11172_v53 = vld [vmem:[#allocation86_spill] sm:$0xff] }
 0x217   : > { %v9838_v33 = vadd.f32 %v9484_v29, %v11169_v46  ;;  %v9842_v26 = vadd.f32 %v9486_v43, %v11170_v63  ;;  %v9846_v0 = vadd.f32 %v9520_v2, %v11172_v53  ;;  %v11173_v58 = vld [vmem:[#allocation87_spill] sm:$0xff]  ;;  %v11174_v24 = vld [vmem:[#allocation88_spill] sm:$0xff]  ;;  %v11176_v41 = vld [vmem:[#allocation89_spill] sm:$0xff]  ;;  %v3321_v63 = vpop.f32.mrf.mxu0 }
 0x218   : > { %11166 = vst [vmem:[#allocation172_spill] sm:$0xff] %v9826_v30  ;;  %v9850_v30 = vadd.f32 %v9522_v21, %v11173_v58  ;;  %v9854_v45 = vadd.f32 %v9556_v1, %v11174_v24  ;;  %v9858_v29 = vadd.f32 %v9558_v32, %v11176_v41  ;;  %v11178_v46 = vld [vmem:[#allocation90_spill] sm:$0xff]  ;;  %v11180_v2 = vld [vmem:[#allocation91_spill] sm:$0xff]  ;;  %v11182_v21 = vld [vmem:[#allocation92_spill] sm:$0xff]  ;;  %v3871_v1 = vadd.f32 %v3321_v63, %v9322_v54 }
 0x219   : > { %11171 = vst [vmem:[#allocation144_spill] sm:$0xff] %v9842_v26  ;;  %v9862_v43 = vadd.f32 %v9592_v47, %v11178_v46  ;;  %v3394_v26 = vpop.f32.mrf.mxu1  ;;  %v9866_v53 = vadd.f32 %v9594_v49, %v11180_v2  ;;  %v9870_v58 = vadd.f32 %v9624_v14, %v11182_v21  ;;  %v11184_v32 = vld [vmem:[#allocation93_spill] sm:$0xff]  ;;  %v11186_v47 = vld [vmem:[#allocation94_spill] sm:$0xff]  ;;  %v11190_v2 = vld [vmem:[#allocation96_spill] sm:$0xff]  ;;  %v3323_v14 = vpop.f32.mrf.mxu0 }
 0x21a   : > { %11175 = vst [vmem:[#allocation43_spill] sm:$0xff] %v9854_v45  ;;  %11177 = vst [vmem:[#allocation145_spill] sm:$0xff] %v9858_v29  ;;  %v3873_v24 = vadd.f32 %v3394_v26, %v9326_v6  ;;  %v9876_v41 = vadd.f32 %v9626_v38, %v11184_v32  ;;  %v9880_v46 = vadd.f32 %v9658_v19, %v11186_v47  ;;  %v11192_v63 = vld [vmem:[#allocation97_spill] sm:$0xff]  ;;  %v11194_v32 = vld [vmem:[#allocation98_spill] sm:$0xff] }
 0x21b   : > { %11179 = vst [vmem:[#allocation44_spill] sm:$0xff] %v9862_v43  ;;  %11181 = vst [vmem:[#allocation146_spill] sm:$0xff] %v9866_v53  ;;  %v11188_v43 = vld [vmem:[#allocation95_spill] sm:$0xff]  ;;  %v9887_v53 = vadd.f32 %v2637_v52, %v11190_v2  ;;  %v3396_v21 = vpop.f32.mrf.mxu1  ;;  %v4083_v54 = vadd.f32 %v9338_v36, %v3871_v1  ;;  %v3872_v38 = vadd.f32 %v3323_v14, %v9330_v39  ;;  %v11198_v47 = vld [vmem:[#allocation100_spill] sm:$0xff]  ;;  %v3325_v1 = vpop.f32.mrf.mxu0 }
 0x21c   : > { %11183 = vst [vmem:[#allocation45_spill] sm:$0xff] %v9870_v58  ;;  %11185 = vst [vmem:[#allocation147_spill] sm:$0xff] %v9876_v41  ;;  %v9884_v49 = vadd.f32 %v9660_v59, %v11188_v43  ;;  %v4085_v6 = vadd.f32 %v9342_v56, %v3873_v24  ;;  %v3874_v26 = vadd.f32 %v3396_v21, %v9346_v57  ;;  %v11196_v43 = vld [vmem:[#allocation99_spill] sm:$0xff]  ;;  %v11200_v14 = vld [vmem:[#allocation101_spill] sm:$0xff] }
 0x21d   : > { %11187 = vst [vmem:[#allocation46_spill] sm:$0xff] %v9880_v46  ;;  %11191 = vst [vmem:[#allocation47_spill] sm:$0xff] %v9887_v53  ;;  %v9895_v19 = vadd.f32 %v9692_v13, %v11192_v63  ;;  %v9898_v59 = vadd.f32 %v2641_v15, %v11194_v32  ;;  %v9901_v52 = vadd.f32 %v2714_v55, %v11196_v43  ;;  %v3398_v53 = vpop.f32.mrf.mxu1  ;;  %v4211_v24 = vmax.f32 %v4083_v54, 0.0  ;;  %v11202_v21 = vld [vmem:[#allocation102_spill] sm:$0xff] }
 0x21e   : > { %11189 = vst [vmem:[#allocation148_spill] sm:$0xff] %v9884_v49  ;;  %v9904_v2 = vadd.f32 %v2643_v42, %v11198_v47  ;;  %v4213_v49 = vmax.f32 %v4085_v6, 0.0  ;;  %v4084_v39 = vadd.f32 %v9354_v51, %v3872_v38  ;;  %v4086_v57 = vadd.f32 %v9358_v16, %v3874_v26  ;;  %v3327_v42 = vpop.f32.mrf.mxu0 }
 0x21f   : > { %11193 = vst [vmem:[#allocation149_spill] sm:$0xff] %v9895_v19  ;;  %11195 = vst [vmem:[#allocation48_spill] sm:$0xff] %v9898_v59  ;;  %v9909_v13 = vadd.f32 %v2716_v35, %v11200_v14  ;;  %v9912_v15 = vadd.f32 %v2645_v4, %v11202_v21  ;;  %v3887_v55 = vadd.f32 %v3325_v1, %v9350_v61  ;;  %v3400_v32 = vpop.f32.mrf.mxu1  ;;  %v4339_v43 = vrot.slane %v4211_v24, 4 }
 0x220   : > { %11197 = vst [vmem:[#allocation150_spill] sm:$0xff] %v9901_v52  ;;  %11199 = vst [vmem:[#allocation49_spill] sm:$0xff] %v9904_v2  ;;  %v3889_v63 = vadd.f32 %v3398_v53, %v9362_v25  ;;  %v4351_v47 = vrot.slane %v4213_v49, 4  ;;  %v4212_v54 = vmax.f32 %v4084_v39, 0.0  ;;  %v4214_v6 = vmax.f32 %v4086_v57, 0.0 }
 0x221   : > { %11201 = vst [vmem:[#allocation151_spill] sm:$0xff] %v9909_v13  ;;  %11203 = vst [vmem:[#allocation50_spill] sm:$0xff] %v9912_v15  ;;  %v4099_v38 = vadd.f32 %v9338_v36, %v3887_v55  ;;  %v3888_v35 = vadd.f32 %v3327_v42, %v9366_v62  ;;  %v3890_v14 = vadd.f32 %v3400_v32, %v9370_v3  ;;  %v3331_v42 = vpop.f32.mrf.mxu0  ;;  %v3404_v41 = vpop.f32.mrf.mxu1 }
 0x222   : > { %v4101_v26 = vadd.f32 %v9342_v56, %v3889_v63  ;;  %v4340_v4 = vadd.f32 %v4339_v43, %v4211_v24  ;;  %v4352_v21 = vadd.f32 %v4351_v47, %v4213_v49  ;;  %v4345_v15 = vrot.slane %v4212_v54, 4 }
 0x223   : > { %v4357_v61 = vrot.slane %v4214_v6, 4  ;;  %v4227_v1 = vmax.f32 %v4099_v38, 0.0  ;;  %v4100_v53 = vadd.f32 %v9354_v51, %v3888_v35  ;;  %v4102_v13 = vadd.f32 %v9358_v16, %v3890_v14 }
 0x224   : > { %v4229_v25 = vmax.f32 %v4101_v26, 0.0  ;;  %v4341_v39 = vrot.slane %v4340_v4, 2  ;;  %v4353_v57 = vrot.slane %v4352_v21, 2  ;;  %v4346_v2 = vadd.f32 %v4345_v15, %v4212_v54 }
 0x225   : > { %v4358_v55 = vadd.f32 %v4357_v61, %v4214_v6  ;;  %v4435_v52 = vrot.slane %v4227_v1, 4  ;;  %v4228_v59 = vmax.f32 %v4100_v53, 0.0  ;;  %v4230_v62 = vmax.f32 %v4102_v13, 0.0  ;;  %v3333_v53 = vpop.f32.mrf.mxu0 }
 0x226   : > { %v4447_v63 = vrot.slane %v4229_v25, 4  ;;  %v4342_v3 = vadd.f32 %v4341_v39, %v4340_v4  ;;  %v4354_v24 = vadd.f32 %v4353_v57, %v4352_v21  ;;  %v4347_v49 = vrot.slane %v4346_v2, 2 }
 0x227   : > { %v4359_v32 = vrot.slane %v4358_v55, 2  ;;  %v4436_v43 = vadd.f32 %v4435_v52, %v4227_v1  ;;  %v4441_v38 = vrot.slane %v4228_v59, 4  ;;  %v4453_v26 = vrot.slane %v4230_v62, 4 }
 0x228   : > { %v4448_v47 = vadd.f32 %v4447_v63, %v4229_v25  ;;  %v4343_v35 = vrot.slane %v4342_v3, 1  ;;  %v4355_v19 = vrot.slane %v4354_v24, 1  ;;  %v4348_v14 = vadd.f32 %v4347_v49, %v4346_v2 }
 0x229   : > { %v4360_v46 = vadd.f32 %v4359_v32, %v4358_v55  ;;  %v4437_v15 = vrot.slane %v4436_v43, 2  ;;  %v4442_v6 = vadd.f32 %v4441_v38, %v4228_v59  ;;  %v4454_v61 = vadd.f32 %v4453_v26, %v4230_v62  ;;  %v3406_v55 = vpop.f32.mrf.mxu1  ;;  %v3335_v38 = vpop.f32.mrf.mxu0 }
 0x22a   : > { %v4449_v54 = vrot.slane %v4448_v47, 2  ;;  %v4344_v13 = vadd.f32 %v4343_v35, %v4342_v3  ;;  %v4356_v58 = vadd.f32 %v4355_v19, %v4354_v24  ;;  %v4349_v4 = vrot.slane %v4348_v14, 1 }
 0x22b   : > { %v4361_v21 = vrot.slane %v4360_v46, 1  ;;  %v4438_v39 = vadd.f32 %v4437_v15, %v4436_v43  ;;  %v4443_v52 = vrot.slane %v4442_v6, 2  ;;  %v4455_v1 = vrot.slane %v4454_v61, 2 }
 0x22c   : > { %v4450_v57 = vadd.f32 %v4449_v54, %v4448_v47  ;;  %v4350_v25 = vadd.f32 %v4349_v4, %v4348_v14  ;;  %v3903_v29 = vadd.f32 %v3331_v42, %v9374_v34  ;;  %v3905_v2 = vadd.f32 %v3404_v41, %v9382_v5  ;;  %v3408_v14 = vpop.f32.mrf.mxu1 }
 0x22d   : > { %v4362_v63 = vadd.f32 %v4361_v21, %v4360_v46  ;;  %v4439_v49 = vrot.slane %v4438_v39, 1  ;;  %v4444_v59 = vadd.f32 %v4443_v52, %v4442_v6  ;;  %v4456_v62 = vadd.f32 %v4455_v1, %v4454_v61  ;;  %v3337_v61 = vpop.f32.mrf.mxu0 }
 0x22e   : > { %v4451_v32 = vrot.slane %v4450_v57, 1  ;;  %v5107_v3 = vadd.f32 %v4350_v25, %v4344_v13  ;;  %v4115_v19 = vadd.f32 %v9338_v36, %v3903_v29  ;;  %v4117_v24 = vadd.f32 %v9342_v56, %v3905_v2 }
 0x22f   : > { %v3904_v43 = vadd.f32 %v3333_v53, %v9386_v10  ;;  %v4440_v47 = vadd.f32 %v4439_v49, %v4438_v39  ;;  %v4445_v46 = vrot.slane %v4444_v59, 1  ;;  %v4457_v35 = vrot.slane %v4456_v62, 1 }
 0x230   : > { %v4452_v26 = vadd.f32 %v4451_v32, %v4450_v57  ;;  %v5115_v34 = vadd.f32 %v5107_v3, %v4356_v58  ;;  %v4243_v42 = vmax.f32 %v4115_v19, 0.0  ;;  %v4245_v5 = vmax.f32 %v4117_v24, 0.0 }
 0x231   : > { %v4116_v41 = vadd.f32 %v9354_v51, %v3904_v43  ;;  %v4446_v15 = vadd.f32 %v4445_v46, %v4444_v59  ;;  %v4458_v54 = vadd.f32 %v4457_v35, %v4456_v62  ;;  %v3906_v6 = vadd.f32 %v3406_v55, %v9390_v12 }
 0x232   : > { %v3919_v29 = vadd.f32 %v3335_v38, %v9394_v20  ;;  %v9930_v13 = vadd.f32 %v5115_v34, %v4362_v63  ;;  %v4531_v10 = vrot.slane %v4243_v42, 4  ;;  %v4543_v53 = vrot.slane %v4245_v5, 4  ;;  %v3410_v38 = vpop.f32.mrf.mxu1 }
 0x233   : > { %v4244_v4 = vmax.f32 %v4116_v41, 0.0  ;;  %v5108_v21 = vadd.f32 %v4446_v15, %v4440_v47  ;;  %v4118_v58 = vadd.f32 %v9358_v16, %v3906_v6  ;;  %v3921_v57 = vadd.f32 %v3408_v14, %v9398_v7  ;;  %v3341_v6 = vpop.f32.mrf.mxu0 }
 0x234   : > { %v4131_v39 = vadd.f32 %v9338_v36, %v3919_v29  ;;  %v4532_v52 = vadd.f32 %v4531_v10, %v4243_v42  ;;  %v4544_v1 = vadd.f32 %v4543_v53, %v4245_v5  ;;  %v3920_v12 = vadd.f32 %v3337_v61, %v9402_v37  ;;  %v3414_v53 = vpop.f32.mrf.mxu1 }
 0x235   : > { %v4537_v25 = vrot.slane %v4244_v4, 4  ;;  %v5116_v2 = vadd.f32 %v5108_v21, %v4452_v26  ;;  %v4246_v20 = vmax.f32 %v4118_v58, 0.0  ;;  %v4133_v63 = vadd.f32 %v9342_v56, %v3921_v57 }
 0x236   : > { %v4259_v55 = vmax.f32 %v4131_v39, 0.0  ;;  %v4533_v49 = vrot.slane %v4532_v52, 2  ;;  %v4545_v32 = vrot.slane %v4544_v1, 2  ;;  %v4132_v62 = vadd.f32 %v9354_v51, %v3920_v12 }
 0x237   : > { %v4538_v59 = vadd.f32 %v4537_v25, %v4244_v4  ;;  %v9938_v3 = vadd.f32 %v5116_v2, %v4458_v54  ;;  %v4549_v19 = vrot.slane %v4246_v20, 4  ;;  %v4261_v24 = vmax.f32 %v4133_v63, 0.0  ;;  %v11204_v2 = vld [vmem:[#allocation182_spill] sm:$0xff] }
 0x238   : > { %v4627_v7 = vrot.slane %v4259_v55, 4  ;;  %v4534_v43 = vadd.f32 %v4533_v49, %v4532_v52  ;;  %v4546_v47 = vadd.f32 %v4545_v32, %v4544_v1  ;;  %v4260_v37 = vmax.f32 %v4132_v62, 0.0  ;;  %v3343_v49 = vpop.f32.mrf.mxu0 }
 0x239   : > { %v4539_v46 = vrot.slane %v4538_v59, 2  ;;  %v4550_v26 = vadd.f32 %v4549_v19, %v4246_v20  ;;  %v4639_v34 = vrot.slane %v4261_v24, 4  ;;  %v3922_v42 = vadd.f32 %v3410_v38, %v9406_v27  ;;  %v3416_v19 = vpop.f32.mrf.mxu1 }
 0x23a   : > { %v4628_v35 = vadd.f32 %v4627_v7, %v4259_v55  ;;  %v4535_v5 = vrot.slane %v4534_v43, 1  ;;  %v4547_v41 = vrot.slane %v4546_v47, 1  ;;  %v4633_v15 = vrot.slane %v4260_v37, 4  ;;  %v11205_v55 = vld [vmem:[#allocation183_spill] sm:$0xff] }
 0x23b   : > { %v4540_v14 = vadd.f32 %v4539_v46, %v4538_v59  ;;  %v4551_v29 = vrot.slane %v4550_v26, 2  ;;  %v4640_v61 = vadd.f32 %v4639_v34, %v4261_v24  ;;  %v4134_v10 = vadd.f32 %v9358_v16, %v3922_v42 }
 0x23c   : > { %v4629_v54 = vrot.slane %v4628_v35, 2  ;;  %v4536_v4 = vadd.f32 %v4535_v5, %v4534_v43  ;;  %v4548_v21 = vadd.f32 %v4547_v41, %v4546_v47  ;;  %v4634_v39 = vadd.f32 %v4633_v15, %v4260_v37 }
 0x23d   : > { %v4541_v58 = vrot.slane %v4540_v14, 1  ;;  %v4552_v57 = vadd.f32 %v4551_v29, %v4550_v26  ;;  %v4641_v1 = vrot.slane %v4640_v61, 2  ;;  %v4262_v25 = vmax.f32 %v4134_v10, 0.0  ;;  %v11206_v29 = vld [vmem:[#allocation184_spill] sm:$0xff] }
 0x23e   : > { %v4630_v52 = vadd.f32 %v4629_v54, %v4628_v35  ;;  %v4635_v12 = vrot.slane %v4634_v39, 2  ;;  %v3935_v20 = vadd.f32 %v3341_v6, %v11204_v2  ;;  %v3937_v63 = vadd.f32 %v3414_v53, %v11205_v55  ;;  %v3418_v53 = vpop.f32.mrf.mxu1  ;;  %v11209_v55 = vld [vmem:[#allocation187_spill] sm:$0xff] }
 0x23f   : > { %v4542_v27 = vadd.f32 %v4541_v58, %v4540_v14  ;;  %v4553_v32 = vrot.slane %v4552_v57, 1  ;;  %v4642_v62 = vadd.f32 %v4641_v1, %v4640_v61  ;;  %v4645_v38 = vrot.slane %v4262_v25, 4  ;;  %v3345_v14 = vpop.f32.mrf.mxu0  ;;  %v11207_v61 = vld [vmem:[#allocation185_spill] sm:$0xff] }
 0x240   : > { %v4631_v59 = vrot.slane %v4630_v52, 1  ;;  %v4636_v24 = vadd.f32 %v4635_v12, %v4634_v39  ;;  %v4147_v43 = vadd.f32 %v9338_v36, %v3935_v20  ;;  %v4149_v47 = vadd.f32 %v9342_v56, %v3937_v63 }
 0x241   : > { %v5109_v7 = vadd.f32 %v4542_v27, %v4536_v4  ;;  %v4554_v46 = vadd.f32 %v4553_v32, %v4552_v57  ;;  %v4643_v26 = vrot.slane %v4642_v62, 1  ;;  %v4646_v35 = vadd.f32 %v4645_v38, %v4262_v25  ;;  %v11208_v25 = vld [vmem:[#allocation186_spill] sm:$0xff]  ;;  %v3347_v38 = vpop.f32.mrf.mxu0 }
 0x242   : > { %v4632_v37 = vadd.f32 %v4631_v59, %v4630_v52  ;;  %v4637_v42 = vrot.slane %v4636_v24, 1  ;;  %v4275_v5 = vmax.f32 %v4147_v43, 0.0  ;;  %v4277_v41 = vmax.f32 %v4149_v47, 0.0 }
 0x243   : > { %v5117_v34 = vadd.f32 %v5109_v7, %v4548_v21  ;;  %v4644_v15 = vadd.f32 %v4643_v26, %v4642_v62  ;;  %v4647_v6 = vrot.slane %v4646_v35, 2  ;;  %v3936_v54 = vadd.f32 %v3343_v49, %v11206_v29 }
 0x244   : > { %v3938_v10 = vadd.f32 %v3416_v19, %v11207_v61  ;;  %v4638_v58 = vadd.f32 %v4637_v42, %v4636_v24  ;;  %v4723_v39 = vrot.slane %v4275_v5, 4  ;;  %v4735_v57 = vrot.slane %v4277_v41, 4 }
 0x245   : > { %v9948_v4 = vadd.f32 %v5117_v34, %v4554_v46  ;;  %v4648_v52 = vadd.f32 %v4647_v6, %v4646_v35  ;;  %v4148_v1 = vadd.f32 %v9354_v51, %v3936_v54  ;;  %v3951_v27 = vadd.f32 %v3345_v14, %v11208_v25  ;;  %v3351_v25 = vpop.f32.mrf.mxu0 }
 0x246   : > { %v4150_v21 = vadd.f32 %v9358_v16, %v3938_v10  ;;  %v5110_v12 = vadd.f32 %v4638_v58, %v4632_v37  ;;  %v4724_v2 = vadd.f32 %v4723_v39, %v4275_v5  ;;  %v4736_v20 = vadd.f32 %v4735_v57, %v4277_v41  ;;  %v3420_v37 = vpop.f32.mrf.mxu1  ;;  %v11210_v41 = vld [vmem:[#allocation188_spill] sm:$0xff] }
 0x247   : > { %v3953_v63 = vadd.f32 %v3418_v53, %v11209_v55  ;;  %v4649_v49 = vrot.slane %v4648_v52, 1  ;;  %v4276_v32 = vmax.f32 %v4148_v1, 0.0  ;;  %v4163_v62 = vadd.f32 %v9338_v36, %v3951_v27  ;;  %v11211_v1 = vld [vmem:[#allocation189_spill] sm:$0xff] }
 0x248   : > { %v4278_v59 = vmax.f32 %v4150_v21, 0.0  ;;  %v5118_v19 = vadd.f32 %v5110_v12, %v4644_v15  ;;  %v4725_v7 = vrot.slane %v4724_v2, 2  ;;  %v4737_v24 = vrot.slane %v4736_v20, 2  ;;  %v3424_v27 = vpop.f32.mrf.mxu1 }
 0x249   : > { %v4165_v43 = vadd.f32 %v9342_v56, %v3953_v63  ;;  %v4650_v47 = vadd.f32 %v4649_v49, %v4648_v52  ;;  %v4729_v46 = vrot.slane %v4276_v32, 4  ;;  %v4291_v35 = vmax.f32 %v4163_v62, 0.0 }
 0x24a   : > { %v4741_v26 = vrot.slane %v4278_v59, 4  ;;  %v4726_v34 = vadd.f32 %v4725_v7, %v4724_v2  ;;  %v4738_v42 = vadd.f32 %v4737_v24, %v4736_v20  ;;  %v3952_v14 = vadd.f32 %v3347_v38, %v11210_v41  ;;  %v11213_v24 = vld [vmem:[#allocation106_spill] sm:$0xff] }
 0x24b   : > { %v4293_v5 = vmax.f32 %v4165_v43, 0.0  ;;  %v9957_v6 = vadd.f32 %v5118_v19, %v4650_v47  ;;  %v4730_v29 = vadd.f32 %v4729_v46, %v4276_v32  ;;  %v4819_v61 = vrot.slane %v4291_v35, 4  ;;  %v11212_v19 = vld [vmem:[#allocation190_spill] sm:$0xff] }
 0x24c   : > { %v4742_v54 = vadd.f32 %v4741_v26, %v4278_v59  ;;  %v4727_v15 = vrot.slane %v4726_v34, 1  ;;  %v4739_v10 = vrot.slane %v4738_v42, 1  ;;  %v4164_v58 = vadd.f32 %v9354_v51, %v3952_v14 }
 0x24d   : > { %v4831_v53 = vrot.slane %v4293_v5, 4  ;;  %v4731_v39 = vrot.slane %v4730_v29, 2  ;;  %v4820_v52 = vadd.f32 %v4819_v61, %v4291_v35  ;;  %v3954_v21 = vadd.f32 %v3420_v37, %v11211_v1  ;;  %v3353_v37 = vpop.f32.mrf.mxu0 }
 0x24e   : > { %v4743_v57 = vrot.slane %v4742_v54, 2  ;;  %v4728_v12 = vadd.f32 %v4727_v15, %v4726_v34  ;;  %v4740_v2 = vadd.f32 %v4739_v10, %v4738_v42  ;;  %v4292_v55 = vmax.f32 %v4164_v58, 0.0  ;;  %v3426_v15 = vpop.f32.mrf.mxu1 }
 0x24f   : > { %v4832_v20 = vadd.f32 %v4831_v53, %v4293_v5  ;;  %v4732_v63 = vadd.f32 %v4731_v39, %v4730_v29  ;;  %v4821_v32 = vrot.slane %v4820_v52, 2  ;;  %v4166_v59 = vadd.f32 %v9358_v16, %v3954_v21  ;;  %v11214_v21 = vld [vmem:[#allocation4_spill] sm:$0xff] }
 0x250   : > { %v4744_v49 = vadd.f32 %v4743_v57, %v4742_v54  ;;  %v4825_v38 = vrot.slane %v4292_v55, 4  ;;  %v3967_v7 = vadd.f32 %v3351_v25, %v11212_v19  ;;  %v3969_v43 = vadd.f32 %v3424_v27, %v11213_v24  ;;  %v3355_v27 = vpop.f32.mrf.mxu0 }
 0x251   : > { %v4833_v62 = vrot.slane %v4832_v20, 2  ;;  %v4733_v47 = vrot.slane %v4732_v63, 1  ;;  %v4822_v26 = vadd.f32 %v4821_v32, %v4820_v52  ;;  %v4294_v35 = vmax.f32 %v4166_v59, 0.0 }
 0x252   : > { %v4745_v46 = vrot.slane %v4744_v49, 1  ;;  %v4826_v42 = vadd.f32 %v4825_v38, %v4292_v55  ;;  %v4179_v5 = vadd.f32 %v9338_v36, %v3967_v7  ;;  %v4181_v41 = vadd.f32 %v9342_v56, %v3969_v43  ;;  %v11215_v38 = vld [vmem:[#allocation107_spill] sm:$0xff]  ;;  %v3428_v7 = vpop.f32.mrf.mxu1 }
 0x253   : > { %v4834_v34 = vadd.f32 %v4833_v62, %v4832_v20  ;;  %v4734_v14 = vadd.f32 %v4733_v47, %v4732_v63  ;;  %v4823_v54 = vrot.slane %v4822_v26, 1  ;;  %v4837_v61 = vrot.slane %v4294_v35, 4 }
 0x254   : > { %v4746_v29 = vadd.f32 %v4745_v46, %v4744_v49  ;;  %v4827_v53 = vrot.slane %v4826_v42, 2  ;;  %v4307_v58 = vmax.f32 %v4179_v5, 0.0  ;;  %v4309_v39 = vmax.f32 %v4181_v41, 0.0 }
 0x255   : > { %v4835_v10 = vrot.slane %v4834_v34, 1  ;;  %v5111_v57 = vadd.f32 %v4734_v14, %v4728_v12  ;;  %v4824_v1 = vadd.f32 %v4823_v54, %v4822_v26  ;;  %v4838_v52 = vadd.f32 %v4837_v61, %v4294_v35  ;;  %v11216_v12 = vld [vmem:[#allocation5_spill] sm:$0xff] }
 0x256   : > { %v3968_v25 = vadd.f32 %v3353_v37, %v11214_v21  ;;  %v4828_v55 = vadd.f32 %v4827_v53, %v4826_v42  ;;  %v4915_v32 = vrot.slane %v4307_v58, 4  ;;  %v4927_v59 = vrot.slane %v4309_v39, 4  ;;  %v3357_v53 = vpop.f32.mrf.mxu0 }
 0x257   : > { %v4836_v20 = vadd.f32 %v4835_v10, %v4834_v34  ;;  %v5119_v62 = vadd.f32 %v5111_v57, %v4740_v2  ;;  %v4839_v63 = vrot.slane %v4838_v52, 2  ;;  %v3970_v19 = vadd.f32 %v3426_v15, %v11215_v38  ;;  %v11217_v15 = vld [vmem:[#allocation108_spill] sm:$0xff] }
 0x258   : > { %v4180_v49 = vadd.f32 %v9354_v51, %v3968_v25  ;;  %v4829_v24 = vrot.slane %v4828_v55, 1  ;;  %v4916_v43 = vadd.f32 %v4915_v32, %v4307_v58  ;;  %v4928_v47 = vadd.f32 %v4927_v59, %v4309_v39  ;;  %v3430_v58 = vpop.f32.mrf.mxu1 }
 0x259   : > { %v3983_v46 = vadd.f32 %v3355_v27, %v11216_v12  ;;  %v9970_v26 = vadd.f32 %v5119_v62, %v4746_v29  ;;  %v4840_v35 = vadd.f32 %v4839_v63, %v4838_v52  ;;  %v4182_v34 = vadd.f32 %v9358_v16, %v3970_v19  ;;  %v11218_v19 = vld [vmem:[#allocation6_spill] sm:$0xff] }
 0x25a   : > { %v4308_v37 = vmax.f32 %v4180_v49, 0.0  ;;  %v4830_v42 = vadd.f32 %v4829_v24, %v4828_v55  ;;  %v4917_v5 = vrot.slane %v4916_v43, 2  ;;  %v4929_v2 = vrot.slane %v4928_v47, 2  ;;  %v3467_v24 = vpop.f32.mrf.mxu0  ;;  %v3540_v12 = vpop.f32.mrf.mxu1 }
 0x25b   : > { %v4195_v41 = vadd.f32 %v9338_v36, %v3983_v46  ;;  %v4841_v14 = vrot.slane %v4840_v35, 1  ;;  %v4310_v61 = vmax.f32 %v4182_v34, 0.0  ;;  %v3985_v10 = vadd.f32 %v3428_v7, %v11217_v15 }
 0x25c   : > { %v4921_v54 = vrot.slane %v4308_v37, 4  ;;  %v5112_v39 = vadd.f32 %v4830_v42, %v4824_v1  ;;  %v4918_v57 = vadd.f32 %v4917_v5, %v4916_v43  ;;  %v4930_v29 = vadd.f32 %v4929_v2, %v4928_v47  ;;  %v11219_v42 = vld [vmem:[#allocation109_spill] sm:$0xff]  ;;  %v11220_v2 = vld [vmem:[#allocation7_spill] sm:$0xff] }
 0x25d   : > { %v4323_v21 = vmax.f32 %v4195_v41, 0.0  ;;  %v4842_v52 = vadd.f32 %v4841_v14, %v4840_v35  ;;  %v4933_v27 = vrot.slane %v4310_v61, 4  ;;  %v4197_v55 = vadd.f32 %v9342_v56, %v3985_v10  ;;  %v11221_v14 = vld [vmem:[#allocation110_spill] sm:$0xff] }
 0x25e   : > { %v4922_v25 = vadd.f32 %v4921_v54, %v4308_v37  ;;  %v5120_v32 = vadd.f32 %v5112_v39, %v4836_v20  ;;  %v4919_v59 = vrot.slane %v4918_v57, 1  ;;  %v4931_v62 = vrot.slane %v4930_v29, 1 }
 0x25f   : > { %v5011_v36 = vrot.slane %v4323_v21, 4  ;;  %v4934_v49 = vadd.f32 %v4933_v27, %v4310_v61  ;;  %v4325_v38 = vmax.f32 %v4197_v55, 0.0  ;;  %v3984_v7 = vadd.f32 %v3357_v53, %v11218_v19  ;;  %v3542_v19 = vpop.f32.mrf.mxu1 }
 0x260   : > { %v4923_v63 = vrot.slane %v4922_v25, 2  ;;  %v9977_v1 = vadd.f32 %v5120_v32, %v4842_v52  ;;  %v4920_v43 = vadd.f32 %v4919_v59, %v4918_v57  ;;  %v4932_v47 = vadd.f32 %v4931_v62, %v4930_v29  ;;  %v11222_v29 = vld [vmem:[#allocation133_spill] sm:$0xff]  ;;  %v11223_v52 = vld [vmem:[#allocation135_spill] sm:$0xff] }
 0x261   : > { %v5012_v46 = vadd.f32 %v5011_v36, %v4323_v21  ;;  %v4935_v37 = vrot.slane %v4934_v49, 2  ;;  %v5023_v34 = vrot.slane %v4325_v38, 4  ;;  %v4196_v56 = vadd.f32 %v9354_v51, %v3984_v7 }
 0x262   : > { %v4924_v35 = vadd.f32 %v4923_v63, %v4922_v25  ;;  %v3986_v5 = vadd.f32 %v3430_v58, %v11219_v42  ;;  %v3875_v41 = vadd.f32 %v3467_v24, %v11220_v2  ;;  %v3877_v54 = vadd.f32 %v3540_v12, %v11221_v14  ;;  %v3469_v63 = vpop.f32.mrf.mxu0  ;;  %v11225_v14 = vld [vmem:[#allocation111_spill] sm:$0xff] }
 0x263   : > { %v5013_v20 = vrot.slane %v5012_v46, 2  ;;  %v4936_v15 = vadd.f32 %v4935_v37, %v4934_v49  ;;  %v5024_v10 = vadd.f32 %v5023_v34, %v4325_v38  ;;  %v4324_v53 = vmax.f32 %v4196_v56, 0.0 }
 0x264   : > { %v4925_v61 = vrot.slane %v4924_v35, 1  ;;  %v4198_v57 = vadd.f32 %v9358_v16, %v3986_v5  ;;  %v4087_v21 = vadd.f32 %v11222_v29, %v3875_v41  ;;  %v4089_v25 = vadd.f32 %v11223_v52, %v3877_v54 }
 0x265   : > { %v5014_v39 = vadd.f32 %v5013_v20, %v5012_v46  ;;  %v4937_v51 = vrot.slane %v4936_v15, 1  ;;  %v5025_v55 = vrot.slane %v5024_v10, 2  ;;  %v5017_v32 = vrot.slane %v4324_v53, 4  ;;  %v11224_v20 = vld [vmem:[#allocation8_spill] sm:$0xff] }
 0x266   : > { %v4926_v27 = vadd.f32 %v4925_v61, %v4924_v35  ;;  %v4326_v59 = vmax.f32 %v4198_v57, 0.0  ;;  %v4215_v62 = vmax.f32 %v4087_v21, 0.0  ;;  %v4217_v36 = vmax.f32 %v4089_v25, 0.0  ;;  %v3471_v61 = vpop.f32.mrf.mxu0  ;;  %v3544_v57 = vpop.f32.mrf.mxu1 }
 0x267   : > { %v5015_v58 = vrot.slane %v5014_v39, 1  ;;  %v4938_v38 = vadd.f32 %v4937_v51, %v4936_v15  ;;  %v5026_v7 = vadd.f32 %v5025_v55, %v5024_v10  ;;  %v5018_v24 = vadd.f32 %v5017_v32, %v4324_v53  ;;  %v11226_v53 = vld [vmem:[#allocation137_spill] sm:$0xff] }
 0x268   : > { %v5113_v49 = vadd.f32 %v4926_v27, %v4920_v43  ;;  %v5029_v16 = vrot.slane %v4326_v59, 4  ;;  %v4363_v46 = vrot.slane %v4215_v62, 4  ;;  %v4375_v37 = vrot.slane %v4217_v36, 4  ;;  %v11227_v27 = vld [vmem:[#allocation139_spill] sm:$0xff] }
 0x269   : > { %v5016_v12 = vadd.f32 %v5015_v58, %v5014_v39  ;;  %v5027_v56 = vrot.slane %v5026_v7, 1  ;;  %v5019_v35 = vrot.slane %v5018_v24, 2  ;;  %v3876_v42 = vadd.f32 %v3469_v63, %v11224_v20  ;;  %v11228_v58 = vld [vmem:[#allocation9_spill] sm:$0xff] }
 0x26a   : > { %v5121_v34 = vadd.f32 %v5113_v49, %v4932_v47  ;;  %v5030_v5 = vadd.f32 %v5029_v16, %v4326_v59  ;;  %v4364_v2 = vadd.f32 %v4363_v46, %v4215_v62  ;;  %v4376_v41 = vadd.f32 %v4375_v37, %v4217_v36  ;;  %v11229_v62 = vld [vmem:[#allocation112_spill] sm:$0xff]  ;;  %v3473_v37 = vpop.f32.mrf.mxu0 }
 0x26b   : > { %v3878_v54 = vadd.f32 %v3542_v19, %v11225_v14  ;;  %v5028_v15 = vadd.f32 %v5027_v56, %v5026_v7  ;;  %v5020_v10 = vadd.f32 %v5019_v35, %v5018_v24  ;;  %v4088_v39 = vadd.f32 %v11226_v53, %v3876_v42  ;;  %v3546_v42 = vpop.f32.mrf.mxu1 }
 0x26c   : > { %v9988_v43 = vadd.f32 %v5121_v34, %v4938_v38  ;;  %v5031_v21 = vrot.slane %v5030_v5, 2  ;;  %v4365_v25 = vrot.slane %v4364_v2, 2  ;;  %v4377_v47 = vrot.slane %v4376_v41, 2 }
 0x26d   : > { %v4090_v51 = vadd.f32 %v11227_v27, %v3878_v54  ;;  %v5021_v55 = vrot.slane %v5020_v10, 1  ;;  %v4216_v32 = vmax.f32 %v4088_v39, 0.0  ;;  %v3891_v59 = vadd.f32 %v3471_v61, %v11228_v58 }
 0x26e   : > { %v3893_v36 = vadd.f32 %v3544_v57, %v11229_v62  ;;  %v5032_v63 = vadd.f32 %v5031_v21, %v5030_v5  ;;  %v4366_v19 = vadd.f32 %v4365_v25, %v4364_v2  ;;  %v4378_v49 = vadd.f32 %v4377_v47, %v4376_v41 }
 0x26f   : > { %v4218_v38 = vmax.f32 %v4090_v51, 0.0  ;;  %v5022_v16 = vadd.f32 %v5021_v55, %v5020_v10  ;;  %v4369_v7 = vrot.slane %v4216_v32, 4  ;;  %v4103_v24 = vadd.f32 %v11222_v29, %v3891_v59  ;;  %v3477_v51 = vpop.f32.mrf.mxu0  ;;  %v11230_v59 = vld [vmem:[#allocation10_spill] sm:$0xff] }
 0x270   : > { %v4105_v46 = vadd.f32 %v11223_v52, %v3893_v36  ;;  %v5033_v34 = vrot.slane %v5032_v63, 1  ;;  %v4367_v56 = vrot.slane %v4366_v19, 1  ;;  %v4379_v35 = vrot.slane %v4378_v49, 1  ;;  %v11231_v36 = vld [vmem:[#allocation113_spill] sm:$0xff] }
 0x271   : > { %v4381_v20 = vrot.slane %v4218_v38, 4  ;;  %v5114_v14 = vadd.f32 %v5022_v16, %v5016_v12  ;;  %v4370_v54 = vadd.f32 %v4369_v7, %v4216_v32  ;;  %v4231_v61 = vmax.f32 %v4103_v24, 0.0  ;;  %v3550_v12 = vpop.f32.mrf.mxu1  ;;  %v11232_v7 = vld [vmem:[#allocation11_spill] sm:$0xff] }
 0x272   : > { %v4233_v57 = vmax.f32 %v4105_v46, 0.0  ;;  %v5034_v5 = vadd.f32 %v5033_v34, %v5032_v63  ;;  %v4368_v2 = vadd.f32 %v4367_v56, %v4366_v19  ;;  %v4380_v41 = vadd.f32 %v4379_v35, %v4378_v49  ;;  %v11233_v56 = vld [vmem:[#allocation114_spill] sm:$0xff] }
 0x273   : > { %v4382_v39 = vadd.f32 %v4381_v20, %v4218_v38  ;;  %v5122_v10 = vadd.f32 %v5114_v14, %v5028_v15  ;;  %v4371_v21 = vrot.slane %v4370_v54, 2  ;;  %v4459_v25 = vrot.slane %v4231_v61, 4 }
 0x274   : > { %v4471_v47 = vrot.slane %v4233_v57, 4  ;;  %v5131_v55 = vadd.f32 %v9930_v13, %v4368_v2  ;;  %v3892_v62 = vadd.f32 %v3473_v37, %v11230_v59  ;;  %v3894_v45 = vadd.f32 %v3546_v42, %v11231_v36  ;;  %v3479_v2 = vpop.f32.mrf.mxu0 }
 0x275   : > { %v4383_v58 = vrot.slane %v4382_v39, 2  ;;  %v9999_v32 = vadd.f32 %v5122_v10, %v5034_v5  ;;  %v4372_v16 = vadd.f32 %v4371_v21, %v4370_v54  ;;  %v4460_v63 = vadd.f32 %v4459_v25, %v4231_v61  ;;  %v3552_v25 = vpop.f32.mrf.mxu1 }
 0x276   : > { %v4472_v19 = vadd.f32 %v4471_v47, %v4233_v57  ;;  %v4104_v15 = vadd.f32 %v11226_v53, %v3892_v62  ;;  %v4106_v38 = vadd.f32 %v11227_v27, %v3894_v45  ;;  %v3907_v24 = vadd.f32 %v3477_v51, %v11232_v7 }
 0x277   : > { %v4384_v49 = vadd.f32 %v4383_v58, %v4382_v39  ;;  %v4373_v46 = vrot.slane %v4372_v16, 1  ;;  %v4461_v13 = vrot.slane %v4460_v63, 2  ;;  %v3909_v37 = vadd.f32 %v3550_v12, %v11233_v56  ;;  %v3554_v56 = vpop.f32.mrf.mxu1 }
 0x278   : > { %v4473_v34 = vrot.slane %v4472_v19, 2  ;;  %v4232_v20 = vmax.f32 %v4104_v15, 0.0  ;;  %v4234_v42 = vmax.f32 %v4106_v38, 0.0  ;;  %v4119_v14 = vadd.f32 %v11222_v29, %v3907_v24  ;;  %v11234_v15 = vld [vmem:[#allocation12_spill] sm:$0xff] }
 0x279   : > { %v4385_v35 = vrot.slane %v4384_v49, 1  ;;  %v4374_v54 = vadd.f32 %v4373_v46, %v4372_v16  ;;  %v4462_v61 = vadd.f32 %v4461_v13, %v4460_v63  ;;  %v4121_v5 = vadd.f32 %v11223_v52, %v3909_v37 }
 0x27a   : > { %v4474_v57 = vadd.f32 %v4473_v34, %v4472_v19  ;;  %v4465_v45 = vrot.slane %v4232_v20, 4  ;;  %v4477_v10 = vrot.slane %v4234_v42, 4  ;;  %v4247_v21 = vmax.f32 %v4119_v14, 0.0  ;;  %v3481_v34 = vpop.f32.mrf.mxu0 }
 0x27b   : > { %v4386_v39 = vadd.f32 %v4385_v35, %v4384_v49  ;;  %v5139_v47 = vadd.f32 %v5131_v55, %v4374_v54  ;;  %v4463_v51 = vrot.slane %v4462_v61, 1  ;;  %v4249_v59 = vmax.f32 %v4121_v5, 0.0 }
 0x27c   : > { %v4475_v58 = vrot.slane %v4474_v57, 1  ;;  %v4466_v62 = vadd.f32 %v4465_v45, %v4232_v20  ;;  %v4478_v36 = vadd.f32 %v4477_v10, %v4234_v42  ;;  %v4555_v12 = vrot.slane %v4247_v21, 4  ;;  %v11235_v20 = vld [vmem:[#allocation13_spill] sm:$0xff]  ;;  %v11237_v10 = vld [vmem:[#allocation14_spill] sm:$0xff] }
 0x27d   : > { %v3908_v38 = vadd.f32 %v3479_v2, %v11234_v15  ;;  %v5147_v16 = vadd.f32 %v5139_v47, %v4380_v41  ;;  %v4464_v63 = vadd.f32 %v4463_v51, %v4462_v61  ;;  %v4567_v7 = vrot.slane %v4249_v59, 4  ;;  %v11236_v2 = vld [vmem:[#allocation115_spill] sm:$0xff] }
 0x27e   : > { %v4476_v19 = vadd.f32 %v4475_v58, %v4474_v57  ;;  %v4467_v24 = vrot.slane %v4466_v62, 2  ;;  %v4479_v46 = vrot.slane %v4478_v36, 2  ;;  %v4556_v49 = vadd.f32 %v4555_v12, %v4247_v21 }
 0x27f   : > { %v4120_v13 = vadd.f32 %v11226_v53, %v3908_v38  ;;  %v10009_v55 = vadd.f32 %v5147_v16, %v4386_v39  ;;  %v5132_v37 = vadd.f32 %v9938_v3, %v4464_v63  ;;  %v4568_v35 = vadd.f32 %v4567_v7, %v4249_v59 }
 0x280   : > { %v3910_v42 = vadd.f32 %v3552_v25, %v11235_v20  ;;  %v4468_v14 = vadd.f32 %v4467_v24, %v4466_v62  ;;  %v4480_v54 = vadd.f32 %v4479_v46, %v4478_v36  ;;  %v4557_v41 = vrot.slane %v4556_v49, 2  ;;  %v3483_v62 = vpop.f32.mrf.mxu0  ;;  %v11238_v20 = vld [vmem:[#allocation116_spill] sm:$0xff] }
 0x281   : > { %v4248_v61 = vmax.f32 %v4120_v13, 0.0  ;;  %v4569_v57 = vrot.slane %v4568_v35, 2  ;;  %v3923_v45 = vadd.f32 %v3481_v34, %v11236_v2  ;;  %v3925_v21 = vadd.f32 %v3554_v56, %v11237_v10  ;;  %v3556_v13 = vpop.f32.mrf.mxu1 }
 0x282   : > { %v4122_v5 = vadd.f32 %v11227_v27, %v3910_v42  ;;  %v4469_v47 = vrot.slane %v4468_v14, 1  ;;  %v4481_v51 = vrot.slane %v4480_v54, 1  ;;  %v4558_v39 = vadd.f32 %v4557_v41, %v4556_v49  ;;  %v3487_v2 = vpop.f32.mrf.mxu0 }
 0x283   : > { %v4561_v58 = vrot.slane %v4248_v61, 4  ;;  %v4570_v12 = vadd.f32 %v4569_v57, %v4568_v35  ;;  %v4135_v59 = vadd.f32 %v11222_v29, %v3923_v45  ;;  %v4137_v25 = vadd.f32 %v11223_v52, %v3925_v21 }
 0x284   : > { %v4250_v3 = vmax.f32 %v4122_v5, 0.0  ;;  %v4470_v36 = vadd.f32 %v4469_v47, %v4468_v14  ;;  %v4482_v15 = vadd.f32 %v4481_v51, %v4480_v54  ;;  %v4559_v38 = vrot.slane %v4558_v39, 1  ;;  %v11239_v51 = vld [vmem:[#allocation15_spill] sm:$0xff] }
 0x285   : > { %v4562_v16 = vadd.f32 %v4561_v58, %v4248_v61  ;;  %v4571_v63 = vrot.slane %v4570_v12, 1  ;;  %v4263_v24 = vmax.f32 %v4135_v59, 0.0  ;;  %v4265_v46 = vmax.f32 %v4137_v25, 0.0 }
 0x286   : > { %v4573_v7 = vrot.slane %v4250_v3, 4  ;;  %v5140_v34 = vadd.f32 %v5132_v37, %v4470_v36  ;;  %v4560_v56 = vadd.f32 %v4559_v38, %v4558_v39  ;;  %v3924_v35 = vadd.f32 %v3483_v62, %v11238_v20  ;;  %v3560_v39 = vpop.f32.mrf.mxu1 }
 0x287   : > { %v4563_v49 = vrot.slane %v4562_v16, 2  ;;  %v4572_v42 = vadd.f32 %v4571_v63, %v4570_v12  ;;  %v4651_v57 = vrot.slane %v4263_v24, 4  ;;  %v4663_v5 = vrot.slane %v4265_v46, 4 }
 0x288   : > { %v4574_v41 = vadd.f32 %v4573_v7, %v4250_v3  ;;  %v5148_v45 = vadd.f32 %v5140_v34, %v4476_v19  ;;  %v5133_v14 = vadd.f32 %v9948_v4, %v4560_v56  ;;  %v4136_v61 = vadd.f32 %v11226_v53, %v3924_v35  ;;  %v11240_v3 = vld [vmem:[#allocation117_spill] sm:$0xff]  ;;  %v11241_v7 = vld [vmem:[#allocation16_spill] sm:$0xff]  ;;  %v3489_v56 = vpop.f32.mrf.mxu0 }
 0x289   : > { %v4564_v54 = vadd.f32 %v4563_v49, %v4562_v16  ;;  %v4652_v21 = vadd.f32 %v4651_v57, %v4263_v24  ;;  %v4664_v47 = vadd.f32 %v4663_v5, %v4265_v46  ;;  %v3926_v37 = vadd.f32 %v3556_v13, %v11239_v51  ;;  %v3562_v57 = vpop.f32.mrf.mxu1 }
 0x28a   : > { %v4575_v10 = vrot.slane %v4574_v41, 2  ;;  %v10022_v58 = vadd.f32 %v5148_v45, %v4482_v15  ;;  %v4264_v12 = vmax.f32 %v4136_v61, 0.0  ;;  %v3939_v25 = vadd.f32 %v3487_v2, %v11240_v3 }
 0x28b   : > { %v4565_v59 = vrot.slane %v4564_v54, 1  ;;  %v4653_v36 = vrot.slane %v4652_v21, 2  ;;  %v4665_v19 = vrot.slane %v4664_v47, 2  ;;  %v4138_v4 = vadd.f32 %v11227_v27, %v3926_v37 }
 0x28c   : > { %v4576_v62 = vadd.f32 %v4575_v10, %v4574_v41  ;;  %v4657_v16 = vrot.slane %v4264_v12, 4  ;;  %v4151_v63 = vadd.f32 %v11222_v29, %v3939_v25  ;;  %v3941_v24 = vadd.f32 %v3560_v39, %v11241_v7  ;;  %v3491_v25 = vpop.f32.mrf.mxu0 }
 0x28d   : > { %v4566_v38 = vadd.f32 %v4565_v59, %v4564_v54  ;;  %v4654_v13 = vadd.f32 %v4653_v36, %v4652_v21  ;;  %v4666_v34 = vadd.f32 %v4665_v19, %v4664_v47  ;;  %v4266_v15 = vmax.f32 %v4138_v4, 0.0  ;;  %v11242_v47 = vld [vmem:[#allocation118_spill] sm:$0xff]  ;;  %v3564_v4 = vpop.f32.mrf.mxu1 }
 0x28e   : > { %v4577_v46 = vrot.slane %v4576_v62, 1  ;;  %v4658_v20 = vadd.f32 %v4657_v16, %v4264_v12  ;;  %v4279_v35 = vmax.f32 %v4151_v63, 0.0  ;;  %v4153_v41 = vadd.f32 %v11223_v52, %v3941_v24  ;;  %v11243_v16 = vld [vmem:[#allocation17_spill] sm:$0xff] }
 0x28f   : > { %v5141_v49 = vadd.f32 %v5133_v14, %v4566_v38  ;;  %v4655_v2 = vrot.slane %v4654_v13, 1  ;;  %v4667_v45 = vrot.slane %v4666_v34, 1  ;;  %v4669_v54 = vrot.slane %v4266_v15, 4 }
 0x290   : > { %v4578_v5 = vadd.f32 %v4577_v46, %v4576_v62  ;;  %v4659_v10 = vrot.slane %v4658_v20, 2  ;;  %v4747_v51 = vrot.slane %v4279_v35, 4  ;;  %v4281_v37 = vmax.f32 %v4153_v41, 0.0 }
 0x291   : > { %v5149_v61 = vadd.f32 %v5141_v49, %v4572_v42  ;;  %v4656_v39 = vadd.f32 %v4655_v2, %v4654_v13  ;;  %v4668_v59 = vadd.f32 %v4667_v45, %v4666_v34  ;;  %v4670_v21 = vadd.f32 %v4669_v54, %v4266_v15  ;;  %v11244_v13 = vld [vmem:[#allocation119_spill] sm:$0xff] }
 0x292   : > { %v3940_v3 = vadd.f32 %v3489_v56, %v11242_v47  ;;  %v4660_v12 = vadd.f32 %v4659_v10, %v4658_v20  ;;  %v4748_v36 = vadd.f32 %v4747_v51, %v4279_v35  ;;  %v4759_v19 = vrot.slane %v4281_v37, 4  ;;  %v11245_v20 = vld [vmem:[#allocation18_spill] sm:$0xff]  ;;  %v3493_v10 = vpop.f32.mrf.mxu0  ;;  %v3566_v51 = vpop.f32.mrf.mxu1 }
 0x293   : > { %v10030_v14 = vadd.f32 %v5149_v61, %v4578_v5  ;;  %v5134_v62 = vadd.f32 %v9957_v6, %v4656_v39  ;;  %v4671_v38 = vrot.slane %v4670_v21, 2  ;;  %v3942_v63 = vadd.f32 %v3562_v57, %v11243_v16 }
 0x294   : > { %v4152_v42 = vadd.f32 %v11226_v53, %v3940_v3  ;;  %v4661_v7 = vrot.slane %v4660_v12, 1  ;;  %v4749_v24 = vrot.slane %v4748_v36, 2  ;;  %v4760_v46 = vadd.f32 %v4759_v19, %v4281_v37 }
 0x295   : > { %v3955_v34 = vadd.f32 %v3491_v25, %v11244_v13  ;;  %v4672_v15 = vadd.f32 %v4671_v38, %v4670_v21  ;;  %v4154_v49 = vadd.f32 %v11227_v27, %v3942_v63  ;;  %v3957_v35 = vadd.f32 %v3564_v4, %v11245_v20 }
 0x296   : > { %v4280_v56 = vmax.f32 %v4152_v42, 0.0  ;;  %v4662_v41 = vadd.f32 %v4661_v7, %v4660_v12  ;;  %v4750_v5 = vadd.f32 %v4749_v24, %v4748_v36  ;;  %v4761_v2 = vrot.slane %v4760_v46, 2  ;;  %v11246_v24 = vld [vmem:[#allocation120_spill] sm:$0xff] }
 0x297   : > { %v4167_v6 = vadd.f32 %v11222_v29, %v3955_v34  ;;  %v4673_v45 = vrot.slane %v4672_v15, 1  ;;  %v4282_v61 = vmax.f32 %v4154_v49, 0.0  ;;  %v4169_v57 = vadd.f32 %v11223_v52, %v3957_v35  ;;  %v3497_v34 = vpop.f32.mrf.mxu0  ;;  %v3570_v49 = vpop.f32.mrf.mxu1 }
 0x298   : > { %v4753_v54 = vrot.slane %v4280_v56, 4  ;;  %v5142_v37 = vadd.f32 %v5134_v62, %v4662_v41  ;;  %v4751_v39 = vrot.slane %v4750_v5, 1  ;;  %v4762_v21 = vadd.f32 %v4761_v2, %v4760_v46  ;;  %v11247_v2 = vld [vmem:[#allocation19_spill] sm:$0xff] }
 0x299   : > { %v4295_v47 = vmax.f32 %v4167_v6, 0.0  ;;  %v4674_v3 = vadd.f32 %v4673_v45, %v4672_v15  ;;  %v4765_v19 = vrot.slane %v4282_v61, 4  ;;  %v4297_v4 = vmax.f32 %v4169_v57, 0.0  ;;  %v11248_v45 = vld [vmem:[#allocation121_spill] sm:$0xff] }
 0x29a   : > { %v4754_v25 = vadd.f32 %v4753_v54, %v4280_v56  ;;  %v5150_v12 = vadd.f32 %v5142_v37, %v4668_v59  ;;  %v4752_v36 = vadd.f32 %v4751_v39, %v4750_v5  ;;  %v4763_v38 = vrot.slane %v4762_v21, 1 }
 0x29b   : > { %v4843_v42 = vrot.slane %v4295_v47, 4  ;;  %v4766_v63 = vadd.f32 %v4765_v19, %v4282_v61  ;;  %v4855_v7 = vrot.slane %v4297_v4, 4  ;;  %v3956_v13 = vadd.f32 %v3493_v10, %v11246_v24  ;;  %v11249_v61 = vld [vmem:[#allocation20_spill] sm:$0xff]  ;;  %v3572_v24 = vpop.f32.mrf.mxu1 }
 0x29c   : > { %v4755_v16 = vrot.slane %v4754_v25, 2  ;;  %v10041_v20 = vadd.f32 %v5150_v12, %v4674_v3  ;;  %v5135_v62 = vadd.f32 %v9970_v26, %v4752_v36  ;;  %v4764_v46 = vadd.f32 %v4763_v38, %v4762_v21 }
 0x29d   : > { %v4844_v15 = vadd.f32 %v4843_v42, %v4295_v47  ;;  %v4767_v35 = vrot.slane %v4766_v63, 2  ;;  %v4856_v41 = vadd.f32 %v4855_v7, %v4297_v4  ;;  %v4168_v59 = vadd.f32 %v11226_v53, %v3956_v13 }
 0x29e   : > { %v4756_v56 = vadd.f32 %v4755_v16, %v4754_v25  ;;  %v3958_v6 = vadd.f32 %v3566_v51, %v11247_v2  ;;  %v3971_v54 = vadd.f32 %v3497_v34, %v11248_v45  ;;  %v3973_v57 = vadd.f32 %v3570_v49, %v11249_v61  ;;  %v3499_v51 = vpop.f32.mrf.mxu0  ;;  %v11250_v45 = vld [vmem:[#allocation122_spill] sm:$0xff] }
 0x29f   : > { %v4845_v5 = vrot.slane %v4844_v15, 2  ;;  %v4768_v37 = vadd.f32 %v4767_v35, %v4766_v63  ;;  %v4857_v39 = vrot.slane %v4856_v41, 2  ;;  %v4296_v3 = vmax.f32 %v4168_v59, 0.0 }
 0x2a0   : > { %v4757_v10 = vrot.slane %v4756_v56, 1  ;;  %v4170_v26 = vadd.f32 %v11227_v27, %v3958_v6  ;;  %v4183_v21 = vadd.f32 %v11222_v29, %v3971_v54  ;;  %v4185_v47 = vadd.f32 %v11223_v52, %v3973_v57  ;;  %v3501_v54 = vpop.f32.mrf.mxu0 }
 0x2a1   : > { %v4846_v19 = vadd.f32 %v4845_v5, %v4844_v15  ;;  %v4769_v4 = vrot.slane %v4768_v37, 1  ;;  %v4858_v12 = vadd.f32 %v4857_v39, %v4856_v41  ;;  %v4849_v36 = vrot.slane %v4296_v3, 4 }
 0x2a2   : > { %v4758_v25 = vadd.f32 %v4757_v10, %v4756_v56  ;;  %v4298_v42 = vmax.f32 %v4170_v26, 0.0  ;;  %v4311_v16 = vmax.f32 %v4183_v21, 0.0  ;;  %v4313_v7 = vmax.f32 %v4185_v47, 0.0  ;;  %v3574_v26 = vpop.f32.mrf.mxu1 }
 0x2a3   : > { %v4847_v38 = vrot.slane %v4846_v19, 1  ;;  %v4770_v13 = vadd.f32 %v4769_v4, %v4768_v37  ;;  %v4859_v34 = vrot.slane %v4858_v12, 1  ;;  %v4850_v49 = vadd.f32 %v4849_v36, %v4296_v3  ;;  %v11252_v4 = vld [vmem:[#allocation123_spill] sm:$0xff] }
 0x2a4   : > { %v5143_v63 = vadd.f32 %v5135_v62, %v4758_v25  ;;  %v4861_v35 = vrot.slane %v4298_v42, 4  ;;  %v4939_v59 = vrot.slane %v4311_v16, 4  ;;  %v4951_v5 = vrot.slane %v4313_v7, 4 }
 0x2a5   : > { %v4848_v15 = vadd.f32 %v4847_v38, %v4846_v19  ;;  %v4860_v6 = vadd.f32 %v4859_v34, %v4858_v12  ;;  %v4851_v56 = vrot.slane %v4850_v49, 2  ;;  %v3972_v41 = vadd.f32 %v3499_v51, %v11250_v45  ;;  %v11251_v19 = vld [vmem:[#allocation21_spill] sm:$0xff]  ;;  %v11253_v38 = vld [vmem:[#allocation22_spill] sm:$0xff] }
 0x2a6   : > { %v5151_v2 = vadd.f32 %v5143_v63, %v4764_v46  ;;  %v4862_v57 = vadd.f32 %v4861_v35, %v4298_v42  ;;  %v4940_v10 = vadd.f32 %v4939_v59, %v4311_v16  ;;  %v4952_v39 = vadd.f32 %v4951_v5, %v4313_v7  ;;  %v3503_v35 = vpop.f32.mrf.mxu0 }
 0x2a7   : > { %v5136_v61 = vadd.f32 %v9977_v1, %v4848_v15  ;;  %v4852_v37 = vadd.f32 %v4851_v56, %v4850_v49  ;;  %v4184_v3 = vadd.f32 %v11226_v53, %v3972_v41  ;;  %v3974_v21 = vadd.f32 %v3572_v24, %v11251_v19 }
 0x2a8   : > { %v10053_v62 = vadd.f32 %v5151_v2, %v4770_v13  ;;  %v4863_v47 = vrot.slane %v4862_v57, 2  ;;  %v4941_v46 = vrot.slane %v4940_v10, 2  ;;  %v4953_v25 = vrot.slane %v4952_v39, 2 }
 0x2a9   : > { %v3987_v12 = vadd.f32 %v3501_v54, %v11252_v4  ;;  %v4853_v36 = vrot.slane %v4852_v37, 1  ;;  %v4312_v51 = vmax.f32 %v4184_v3, 0.0  ;;  %v4186_v1 = vadd.f32 %v11227_v27, %v3974_v21  ;;  %v11254_v4 = vld [vmem:[#allocation124_spill] sm:$0xff] }
 0x2aa   : > { %v3989_v42 = vadd.f32 %v3574_v26, %v11253_v38  ;;  %v4864_v16 = vadd.f32 %v4863_v47, %v4862_v57  ;;  %v4942_v7 = vadd.f32 %v4941_v46, %v4940_v10  ;;  %v4954_v63 = vadd.f32 %v4953_v25, %v4952_v39  ;;  %v3576_v26 = vpop.f32.mrf.mxu1  ;;  %v3613_v46 = vpop.f32.mrf.mxu0 }
 0x2ab   : > { %v4199_v13 = vadd.f32 %v11222_v29, %v3987_v12  ;;  %v4854_v34 = vadd.f32 %v4853_v36, %v4852_v37  ;;  %v4945_v49 = vrot.slane %v4312_v51, 4  ;;  %v4314_v15 = vmax.f32 %v4186_v1, 0.0  ;;  %v11255_v36 = vld [vmem:[#allocation23_spill] sm:$0xff] }
 0x2ac   : > { %v4201_v24 = vadd.f32 %v11223_v52, %v3989_v42  ;;  %v4865_v59 = vrot.slane %v4864_v16, 1  ;;  %v4943_v5 = vrot.slane %v4942_v7, 1  ;;  %v4955_v2 = vrot.slane %v4954_v63, 1 }
 0x2ad   : > { %v4327_v56 = vmax.f32 %v4199_v13, 0.0  ;;  %v5144_v45 = vadd.f32 %v5136_v61, %v4854_v34  ;;  %v4946_v41 = vadd.f32 %v4945_v49, %v4312_v51  ;;  %v4957_v54 = vrot.slane %v4314_v15, 4  ;;  %v10068_v51 = vld [vmem:[%s10725_s2 + $0x8] sm:$0xff] }
 0x2ae   : > { %v4329_v3 = vmax.f32 %v4201_v24, 0.0  ;;  %v4866_v57 = vadd.f32 %v4865_v59, %v4864_v16  ;;  %v4944_v10 = vadd.f32 %v4943_v5, %v4942_v7  ;;  %v4956_v39 = vadd.f32 %v4955_v2, %v4954_v63  ;;  %v3686_v16 = vpop.f32.mrf.mxu1  ;;  %v11256_v13 = vld [vmem:[#allocation24_spill] sm:$0xff] }
 0x2af   : > { %v5035_v19 = vrot.slane %v4327_v56, 4  ;;  %v5152_v29 = vadd.f32 %v5144_v45, %v4860_v6  ;;  %v4947_v37 = vrot.slane %v4946_v41, 2  ;;  %v4958_v21 = vadd.f32 %v4957_v54, %v4314_v15  ;;  %v11258_v45 = vld [vmem:[#allocation126_spill] sm:$0xff] }
 0x2b0   : > { %v5047_v47 = vrot.slane %v4329_v3, 4  ;;  %v5137_v52 = vadd.f32 %v9988_v43, %v4944_v10  ;;  %v3988_v12 = vadd.f32 %v3503_v35, %v11254_v4  ;;  %v3990_v61 = vadd.f32 %v3576_v26, %v11255_v36  ;;  %v11257_v35 = vld [vmem:[#allocation177_spill] sm:$0xff] }
 0x2b1   : > { %v5036_v25 = vadd.f32 %v5035_v19, %v4327_v56  ;;  %v10070_v1 = vadd.f32 %v5152_v29, %v4866_v57  ;;  %v4948_v38 = vadd.f32 %v4947_v37, %v4946_v41  ;;  %v4959_v6 = vrot.slane %v4958_v21, 2  ;;  %v11259_v19 = vld [vmem:[#allocation178_spill] sm:$0xff]  ;;  %v3615_v37 = vpop.f32.mrf.mxu0 }
 0x2b2   : > { %v5048_v42 = vadd.f32 %v5047_v47, %v4329_v3  ;;  %v4200_v63 = vadd.f32 %v11226_v53, %v3988_v12  ;;  %v4202_v43 = vadd.f32 %v11227_v27, %v3990_v61  ;;  %v3879_v34 = vadd.f32 %v3613_v46, %v11256_v13 }
 0x2b3   : > { %v5037_v7 = vrot.slane %v5036_v25, 2  ;;  %v4949_v49 = vrot.slane %v4948_v38, 1  ;;  %v4960_v15 = vadd.f32 %v4959_v6, %v4958_v21  ;;  %v10077_v59 = vrot.slane %v10068_v51, %v11257_v35  ;;  %v3688_v21 = vpop.f32.mrf.mxu1 }
 0x2b4   : > { %v5049_v24 = vrot.slane %v5048_v42, 2  ;;  %v4328_v2 = vmax.f32 %v4200_v63, 0.0  ;;  %v4330_v56 = vmax.f32 %v4202_v43, 0.0  ;;  %v3881_v41 = vadd.f32 %v3686_v16, %v11258_v45 }
 0x2b5   : > { %v5038_v5 = vadd.f32 %v5037_v7, %v5036_v25  ;;  %v4950_v54 = vadd.f32 %v4949_v49, %v4948_v38  ;;  %v4961_v3 = vrot.slane %v4960_v15, 1  ;;  %v4091_v53 = vadd.f32 %v10077_v59, %v3879_v34  ;;  %v11260_v7 = vld [vmem:[#allocation25_spill] sm:$0xff] }
 0x2b6   : > { %v5050_v26 = vadd.f32 %v5049_v24, %v5048_v42  ;;  %v5041_v57 = vrot.slane %v4328_v2, 4  ;;  %v5053_v10 = vrot.slane %v4330_v56, 4  ;;  %v10083_v29 = vrot.slane %v10068_v51, %v11259_v19  ;;  %v3617_v24 = vpop.f32.mrf.mxu0 }
 0x2b7   : > { %v5039_v27 = vrot.slane %v5038_v5, 1  ;;  %v5145_v47 = vadd.f32 %v5137_v52, %v4950_v54  ;;  %v4962_v46 = vadd.f32 %v4961_v3, %v4960_v15  ;;  %v4219_v4 = vmax.f32 %v4091_v53, 0.0  ;;  %v3690_v52 = vpop.f32.mrf.mxu1  ;;  %v11263_v3 = vld [vmem:[#allocation180_spill] sm:$0xff] }
 0x2b8   : > { %v5051_v25 = vrot.slane %v5050_v26, 1  ;;  %v5042_v36 = vadd.f32 %v5041_v57, %v4328_v2  ;;  %v5054_v61 = vadd.f32 %v5053_v10, %v4330_v56  ;;  %v4093_v38 = vadd.f32 %v10083_v29, %v3881_v41  ;;  %v11262_v56 = vld [vmem:[#allocation26_spill] sm:$0xff]  ;;  %v11265_v10 = vld [vmem:[#allocation27_spill] sm:$0xff] }
 0x2b9   : > { %v5040_v12 = vadd.f32 %v5039_v27, %v5038_v5  ;;  %v5153_v6 = vadd.f32 %v5145_v47, %v4956_v39  ;;  %v4387_v16 = vrot.slane %v4219_v4, 4  ;;  %v3880_v63 = vadd.f32 %v3615_v37, %v11260_v7  ;;  %v11261_v5 = vld [vmem:[#allocation179_spill] sm:$0xff]  ;;  %v11264_v27 = vld [vmem:[#allocation128_spill] sm:$0xff] }
 0x2ba   : > { %v5052_v42 = vadd.f32 %v5051_v25, %v5050_v26  ;;  %v5043_v13 = vrot.slane %v5042_v36, 2  ;;  %v5055_v34 = vrot.slane %v5054_v61, 2  ;;  %v4221_v49 = vmax.f32 %v4093_v38, 0.0 }
 0x2bb   : > { %v5138_v43 = vadd.f32 %v9999_v32, %v5040_v12  ;;  %v10088_v15 = vadd.f32 %v5153_v6, %v4962_v46  ;;  %v4388_v35 = vadd.f32 %v4387_v16, %v4219_v4  ;;  %v10092_v2 = vrot.slane %v10068_v51, %v11261_v5 }
 0x2bc   : > { %v3882_v39 = vadd.f32 %v3688_v21, %v11262_v56  ;;  %v5044_v45 = vadd.f32 %v5043_v13, %v5042_v36  ;;  %v5056_v41 = vadd.f32 %v5055_v34, %v5054_v61  ;;  %v4399_v54 = vrot.slane %v4221_v49, 4  ;;  %v3619_v61 = vpop.f32.mrf.mxu0 }
 0x2bd   : > { %v10097_v32 = vrot.slane %v10068_v51, %v11263_v3  ;;  %v4389_v26 = vrot.slane %v4388_v35, 2  ;;  %v4092_v53 = vadd.f32 %v10092_v2, %v3880_v63  ;;  %v3895_v57 = vadd.f32 %v3617_v24, %v11264_v27 }
 0x2be   : > { %v3897_v19 = vadd.f32 %v3690_v52, %v11265_v10  ;;  %v5045_v37 = vrot.slane %v5044_v45, 1  ;;  %v5057_v47 = vrot.slane %v5056_v41, 1  ;;  %v4400_v46 = vadd.f32 %v4399_v54, %v4221_v49  ;;  %v3692_v52 = vpop.f32.mrf.mxu1 }
 0x2bf   : > { %v4094_v25 = vadd.f32 %v10097_v32, %v3882_v39  ;;  %v4390_v21 = vadd.f32 %v4389_v26, %v4388_v35  ;;  %v4220_v4 = vmax.f32 %v4092_v53, 0.0  ;;  %v4107_v12 = vadd.f32 %v10077_v59, %v3895_v57  ;;  %v11266_v39 = vld [vmem:[#allocation28_spill] sm:$0xff] }
 0x2c0   : > { %v4109_v36 = vadd.f32 %v10083_v29, %v3897_v19  ;;  %v5046_v38 = vadd.f32 %v5045_v37, %v5044_v45  ;;  %v5058_v6 = vadd.f32 %v5057_v47, %v5056_v41  ;;  %v4401_v16 = vrot.slane %v4400_v46, 2 }
 0x2c1   : > { %v4222_v7 = vmax.f32 %v4094_v25, 0.0  ;;  %v4391_v63 = vrot.slane %v4390_v21, 1  ;;  %v4393_v13 = vrot.slane %v4220_v4, 4  ;;  %v4235_v34 = vmax.f32 %v4107_v12, 0.0  ;;  %v3623_v25 = vpop.f32.mrf.mxu0 }
 0x2c2   : > { %v4237_v24 = vmax.f32 %v4109_v36, 0.0  ;;  %v5146_v5 = vadd.f32 %v5138_v43, %v5046_v38  ;;  %v4402_v49 = vadd.f32 %v4401_v16, %v4400_v46  ;;  %v3896_v35 = vadd.f32 %v3619_v61, %v11266_v39  ;;  %v3696_v43 = vpop.f32.mrf.mxu1 }
 0x2c3   : > { %v4405_v56 = vrot.slane %v4222_v7, 4  ;;  %v4392_v54 = vadd.f32 %v4391_v63, %v4390_v21  ;;  %v4394_v3 = vadd.f32 %v4393_v13, %v4220_v4  ;;  %v4483_v26 = vrot.slane %v4235_v34, 4  ;;  %v11268_v13 = vld [vmem:[#allocation29_spill] sm:$0xff] }
 0x2c4   : > { %v4495_v53 = vrot.slane %v4237_v24, 4  ;;  %v5154_v27 = vadd.f32 %v5146_v5, %v5052_v42  ;;  %v4403_v57 = vrot.slane %v4402_v49, 1  ;;  %v4108_v41 = vadd.f32 %v10092_v2, %v3896_v35  ;;  %v11267_v42 = vld [vmem:[#allocation130_spill] sm:$0xff] }
 0x2c5   : > { %v4406_v45 = vadd.f32 %v4405_v56, %v4222_v7  ;;  %v5163_v10 = vadd.f32 %v10009_v55, %v4392_v54  ;;  %v4395_v19 = vrot.slane %v4394_v3, 2  ;;  %v4484_v37 = vadd.f32 %v4483_v26, %v4235_v34  ;;  %v11269_v55 = vld [vmem:[#allocation30_spill] sm:$0xff]  ;;  %v3625_v26 = vpop.f32.mrf.mxu0 }
 0x2c6   : > { %v4496_v47 = vadd.f32 %v4495_v53, %v4237_v24  ;;  %v10108_v46 = vadd.f32 %v5154_v27, %v5058_v6  ;;  %v4404_v12 = vadd.f32 %v4403_v57, %v4402_v49  ;;  %v4236_v21 = vmax.f32 %v4108_v41, 0.0 }
 0x2c7   : > { %v4407_v36 = vrot.slane %v4406_v45, 2  ;;  %v4396_v4 = vadd.f32 %v4395_v19, %v4394_v3  ;;  %v4485_v61 = vrot.slane %v4484_v37, 2  ;;  %v3898_v16 = vadd.f32 %v3692_v52, %v11267_v42 }
 0x2c8   : > { %v4497_v38 = vrot.slane %v4496_v47, 2  ;;  %v4489_v63 = vrot.slane %v4236_v21, 4  ;;  %v3911_v5 = vadd.f32 %v3623_v25, %v11268_v13  ;;  %v3913_v56 = vadd.f32 %v3696_v43, %v11269_v55  ;;  %v3698_v43 = vpop.f32.mrf.mxu1  ;;  %v3627_v13 = vpop.f32.mrf.mxu0 }
 0x2c9   : > { %v4408_v7 = vadd.f32 %v4407_v36, %v4406_v45  ;;  %v4397_v34 = vrot.slane %v4396_v4, 1  ;;  %v4486_v24 = vadd.f32 %v4485_v61, %v4484_v37  ;;  %v4110_v6 = vadd.f32 %v10097_v32, %v3898_v16  ;;  %v11270_v16 = vld [vmem:[#allocation132_spill] sm:$0xff] }
 0x2ca   : > { %v4498_v39 = vadd.f32 %v4497_v38, %v4496_v47  ;;  %v4490_v49 = vadd.f32 %v4489_v63, %v4236_v21  ;;  %v4123_v54 = vadd.f32 %v10077_v59, %v3911_v5  ;;  %v4125_v3 = vadd.f32 %v10083_v29, %v3913_v56  ;;  %v11271_v56 = vld [vmem:[#allocation31_spill] sm:$0xff] }
 0x2cb   : > { %v4409_v35 = vrot.slane %v4408_v7, 1  ;;  %v4398_v53 = vadd.f32 %v4397_v34, %v4396_v4  ;;  %v4487_v52 = vrot.slane %v4486_v24, 1  ;;  %v4238_v57 = vmax.f32 %v4110_v6, 0.0 }
 0x2cc   : > { %v4499_v27 = vrot.slane %v4498_v39, 1  ;;  %v4491_v41 = vrot.slane %v4490_v49, 2  ;;  %v4251_v19 = vmax.f32 %v4123_v54, 0.0  ;;  %v4253_v25 = vmax.f32 %v4125_v3, 0.0  ;;  %v11272_v3 = vld [vmem:[#allocation32_spill] sm:$0xff] }
 0x2cd   : > { %v4410_v45 = vadd.f32 %v4409_v35, %v4408_v7  ;;  %v5171_v37 = vadd.f32 %v5163_v10, %v4398_v53  ;;  %v4488_v47 = vadd.f32 %v4487_v52, %v4486_v24  ;;  %v4501_v61 = vrot.slane %v4238_v57, 4  ;;  %v3700_v24 = vpop.f32.mrf.mxu1 }
 0x2ce   : > { %v4500_v36 = vadd.f32 %v4499_v27, %v4498_v39  ;;  %v4492_v38 = vadd.f32 %v4491_v41, %v4490_v49  ;;  %v4579_v21 = vrot.slane %v4251_v19, 4  ;;  %v4591_v42 = vrot.slane %v4253_v25, 4 }
 0x2cf   : > { %v3912_v63 = vadd.f32 %v3625_v26, %v11270_v16  ;;  %v5179_v5 = vadd.f32 %v5171_v37, %v4404_v12  ;;  %v5164_v4 = vadd.f32 %v10022_v58, %v4488_v47  ;;  %v4502_v55 = vadd.f32 %v4501_v61, %v4238_v57  ;;  %v3629_v61 = vpop.f32.mrf.mxu0 }
 0x2d0   : > { %v3914_v7 = vadd.f32 %v3698_v43, %v11271_v56  ;;  %v4493_v34 = vrot.slane %v4492_v38, 1  ;;  %v4580_v6 = vadd.f32 %v4579_v21, %v4251_v19  ;;  %v4592_v35 = vadd.f32 %v4591_v42, %v4253_v25  ;;  %v11273_v19 = vld [vmem:[#allocation134_spill] sm:$0xff] }
 0x2d1   : > { %v4124_v10 = vadd.f32 %v10092_v2, %v3912_v63  ;;  %v10120_v39 = vadd.f32 %v5179_v5, %v4410_v45  ;;  %v4503_v49 = vrot.slane %v4502_v55, 2  ;;  %v3927_v26 = vadd.f32 %v3627_v13, %v11272_v3  ;;  %v3633_v3 = vpop.f32.mrf.mxu0 }
 0x2d2   : > { %v4126_v54 = vadd.f32 %v10097_v32, %v3914_v7  ;;  %v4494_v53 = vadd.f32 %v4493_v34, %v4492_v38  ;;  %v4581_v12 = vrot.slane %v4580_v6, 2  ;;  %v4593_v52 = vrot.slane %v4592_v35, 2  ;;  %v3702_v38 = vpop.f32.mrf.mxu1 }
 0x2d3   : > { %v4252_v58 = vmax.f32 %v4124_v10, 0.0  ;;  %v4504_v27 = vadd.f32 %v4503_v49, %v4502_v55  ;;  %v4139_v41 = vadd.f32 %v10077_v59, %v3927_v26  ;;  %v3929_v25 = vadd.f32 %v3700_v24, %v11273_v19 }
 0x2d4   : > { %v4254_v57 = vmax.f32 %v4126_v54, 0.0  ;;  %v5172_v43 = vadd.f32 %v5164_v4, %v4494_v53  ;;  %v4582_v37 = vadd.f32 %v4581_v12, %v4580_v6  ;;  %v4594_v47 = vadd.f32 %v4593_v52, %v4592_v35  ;;  %v11274_v35 = vld [vmem:[#allocation33_spill] sm:$0xff] }
 0x2d5   : > { %v4585_v45 = vrot.slane %v4252_v58, 4  ;;  %v4505_v21 = vrot.slane %v4504_v27, 1  ;;  %v4267_v16 = vmax.f32 %v4139_v41, 0.0  ;;  %v4141_v63 = vadd.f32 %v10083_v29, %v3929_v25  ;;  %v3706_v41 = vpop.f32.mrf.mxu1 }
 0x2d6   : > { %v4597_v42 = vrot.slane %v4254_v57, 4  ;;  %v5180_v13 = vadd.f32 %v5172_v43, %v4500_v36  ;;  %v4583_v5 = vrot.slane %v4582_v37, 1  ;;  %v4595_v56 = vrot.slane %v4594_v47, 1 }
 0x2d7   : > { %v4586_v55 = vadd.f32 %v4585_v45, %v4252_v58  ;;  %v4506_v7 = vadd.f32 %v4505_v21, %v4504_v27  ;;  %v4675_v10 = vrot.slane %v4267_v16, 4  ;;  %v4269_v49 = vmax.f32 %v4141_v63, 0.0  ;;  %v11275_v27 = vld [vmem:[#allocation34_spill] sm:$0xff]  ;;  %v11277_v63 = vld [vmem:[#allocation35_spill] sm:$0xff] }
 0x2d8   : > { %v4598_v34 = vadd.f32 %v4597_v42, %v4254_v57  ;;  %v4584_v24 = vadd.f32 %v4583_v5, %v4582_v37  ;;  %v4596_v4 = vadd.f32 %v4595_v56, %v4594_v47  ;;  %v3928_v54 = vadd.f32 %v3629_v61, %v11274_v35  ;;  %v11276_v47 = vld [vmem:[#allocation136_spill] sm:$0xff] }
 0x2d9   : > { %v4587_v6 = vrot.slane %v4586_v55, 2  ;;  %v10128_v26 = vadd.f32 %v5180_v13, %v4506_v7  ;;  %v4676_v12 = vadd.f32 %v4675_v10, %v4267_v16  ;;  %v4687_v52 = vrot.slane %v4269_v49, 4 }
 0x2da   : > { %v4599_v53 = vrot.slane %v4598_v34, 2  ;;  %v5165_v36 = vadd.f32 %v10030_v14, %v4584_v24  ;;  %v4140_v58 = vadd.f32 %v10092_v2, %v3928_v54  ;;  %v3930_v57 = vadd.f32 %v3702_v38, %v11275_v27  ;;  %v3708_v54 = vpop.f32.mrf.mxu1 }
 0x2db   : > { %v4588_v19 = vadd.f32 %v4587_v6, %v4586_v55  ;;  %v4677_v43 = vrot.slane %v4676_v12, 2  ;;  %v4688_v37 = vadd.f32 %v4687_v52, %v4269_v49  ;;  %v3943_v45 = vadd.f32 %v3633_v3, %v11276_v47 }
 0x2dc   : > { %v4600_v25 = vadd.f32 %v4599_v53, %v4598_v34  ;;  %v4268_v21 = vmax.f32 %v4140_v58, 0.0  ;;  %v4142_v42 = vadd.f32 %v10097_v32, %v3930_v57  ;;  %v3945_v16 = vadd.f32 %v3706_v41, %v11277_v63  ;;  %v3635_v34 = vpop.f32.mrf.mxu0  ;;  %v11278_v57 = vld [vmem:[#allocation36_spill] sm:$0xff] }
 0x2dd   : > { %v4589_v61 = vrot.slane %v4588_v19, 1  ;;  %v4678_v5 = vadd.f32 %v4677_v43, %v4676_v12  ;;  %v4689_v56 = vrot.slane %v4688_v37, 2  ;;  %v4155_v14 = vadd.f32 %v10077_v59, %v3943_v45 }
 0x2de   : > { %v4601_v13 = vrot.slane %v4600_v25, 1  ;;  %v4681_v7 = vrot.slane %v4268_v21, 4  ;;  %v4270_v10 = vmax.f32 %v4142_v42, 0.0  ;;  %v4157_v38 = vadd.f32 %v10083_v29, %v3945_v16  ;;  %v3637_v42 = vpop.f32.mrf.mxu0 }
 0x2df   : > { %v4590_v55 = vadd.f32 %v4589_v61, %v4588_v19  ;;  %v4679_v24 = vrot.slane %v4678_v5, 1  ;;  %v4690_v6 = vadd.f32 %v4689_v56, %v4688_v37  ;;  %v4283_v35 = vmax.f32 %v4155_v14, 0.0 }
 0x2e0   : > { %v4602_v49 = vadd.f32 %v4601_v13, %v4600_v25  ;;  %v4682_v53 = vadd.f32 %v4681_v7, %v4268_v21  ;;  %v4693_v52 = vrot.slane %v4270_v10, 4  ;;  %v4285_v41 = vmax.f32 %v4157_v38, 0.0  ;;  %v11279_v7 = vld [vmem:[#allocation138_spill] sm:$0xff]  ;;  %v11280_v38 = vld [vmem:[#allocation37_spill] sm:$0xff] }
 0x2e1   : > { %v5173_v3 = vadd.f32 %v5165_v36, %v4590_v55  ;;  %v4680_v58 = vadd.f32 %v4679_v24, %v4678_v5  ;;  %v4691_v12 = vrot.slane %v4690_v6, 1  ;;  %v4771_v27 = vrot.slane %v4283_v35, 4  ;;  %v3710_v36 = vpop.f32.mrf.mxu1 }
 0x2e2   : > { %v3944_v43 = vadd.f32 %v3635_v34, %v11278_v57  ;;  %v4683_v47 = vrot.slane %v4682_v53, 2  ;;  %v4694_v45 = vadd.f32 %v4693_v52, %v4270_v10  ;;  %v4783_v61 = vrot.slane %v4285_v41, 4  ;;  %v3639_v57 = vpop.f32.mrf.mxu0 }
 0x2e3   : > { %v5181_v19 = vadd.f32 %v5173_v3, %v4596_v4  ;;  %v5166_v25 = vadd.f32 %v10041_v20, %v4680_v58  ;;  %v4692_v63 = vadd.f32 %v4691_v12, %v4690_v6  ;;  %v4772_v37 = vadd.f32 %v4771_v27, %v4283_v35  ;;  %v11281_v20 = vld [vmem:[#allocation38_spill] sm:$0xff] }
 0x2e4   : > { %v4156_v16 = vadd.f32 %v10092_v2, %v3944_v43  ;;  %v4684_v13 = vadd.f32 %v4683_v47, %v4682_v53  ;;  %v4695_v5 = vrot.slane %v4694_v45, 2  ;;  %v4784_v56 = vadd.f32 %v4783_v61, %v4285_v41 }
 0x2e5   : > { %v10141_v21 = vadd.f32 %v5181_v19, %v4602_v49  ;;  %v4773_v14 = vrot.slane %v4772_v37, 2  ;;  %v3946_v4 = vadd.f32 %v3708_v54, %v11279_v7  ;;  %v3959_v10 = vadd.f32 %v3637_v42, %v11280_v38 }
 0x2e6   : > { %v4284_v55 = vmax.f32 %v4156_v16, 0.0  ;;  %v4685_v34 = vrot.slane %v4684_v13, 1  ;;  %v4696_v24 = vadd.f32 %v4695_v5, %v4694_v45  ;;  %v4785_v3 = vrot.slane %v4784_v56, 2  ;;  %v3712_v45 = vpop.f32.mrf.mxu1 }
 0x2e7   : > { %v3961_v6 = vadd.f32 %v3710_v36, %v11281_v20  ;;  %v4774_v35 = vadd.f32 %v4773_v14, %v4772_v37  ;;  %v4158_v58 = vadd.f32 %v10097_v32, %v3946_v4  ;;  %v4171_v49 = vadd.f32 %v10077_v59, %v3959_v10 }
 0x2e8   : > { %v4777_v52 = vrot.slane %v4284_v55, 4  ;;  %v4686_v53 = vadd.f32 %v4685_v34, %v4684_v13  ;;  %v4697_v12 = vrot.slane %v4696_v24, 1  ;;  %v4786_v41 = vadd.f32 %v4785_v3, %v4784_v56  ;;  %v11282_v56 = vld [vmem:[#allocation140_spill] sm:$0xff]  ;;  %v3643_v34 = vpop.f32.mrf.mxu0 }
 0x2e9   : > { %v4173_v27 = vadd.f32 %v10083_v29, %v3961_v6  ;;  %v4775_v54 = vrot.slane %v4774_v35, 1  ;;  %v4286_v19 = vmax.f32 %v4158_v58, 0.0  ;;  %v4299_v47 = vmax.f32 %v4171_v49, 0.0  ;;  %v11283_v58 = vld [vmem:[#allocation39_spill] sm:$0xff] }
 0x2ea   : > { %v4778_v43 = vadd.f32 %v4777_v52, %v4284_v55  ;;  %v5174_v61 = vadd.f32 %v5166_v25, %v4686_v53  ;;  %v4698_v42 = vadd.f32 %v4697_v12, %v4696_v24  ;;  %v4787_v16 = vrot.slane %v4786_v41, 1  ;;  %v3716_v52 = vpop.f32.mrf.mxu1 }
 0x2eb   : > { %v4301_v37 = vmax.f32 %v4173_v27, 0.0  ;;  %v4776_v36 = vadd.f32 %v4775_v54, %v4774_v35  ;;  %v4789_v14 = vrot.slane %v4286_v19, 4  ;;  %v4867_v7 = vrot.slane %v4299_v47, 4 }
 0x2ec   : > { %v4779_v5 = vrot.slane %v4778_v43, 2  ;;  %v5182_v4 = vadd.f32 %v5174_v61, %v4692_v63  ;;  %v4788_v13 = vadd.f32 %v4787_v16, %v4786_v41  ;;  %v3960_v10 = vadd.f32 %v3639_v57, %v11282_v56  ;;  %v11284_v41 = vld [vmem:[#allocation141_spill] sm:$0xff] }
 0x2ed   : > { %v4879_v38 = vrot.slane %v4301_v37, 4  ;;  %v5167_v3 = vadd.f32 %v10053_v62, %v4776_v36  ;;  %v4790_v20 = vadd.f32 %v4789_v14, %v4286_v19  ;;  %v4868_v6 = vadd.f32 %v4867_v7, %v4299_v47  ;;  %v3645_v14 = vpop.f32.mrf.mxu0  ;;  %v3718_v7 = vpop.f32.mrf.mxu1 }
 0x2ee   : > { %v4780_v55 = vadd.f32 %v4779_v5, %v4778_v43  ;;  %v10151_v25 = vadd.f32 %v5182_v4, %v4698_v42  ;;  %v4172_v35 = vadd.f32 %v10092_v2, %v3960_v10  ;;  %v3962_v49 = vadd.f32 %v3712_v45, %v11283_v58  ;;  %v11285_v43 = vld [vmem:[#allocation40_spill] sm:$0xff] }
 0x2ef   : > { %v4880_v24 = vadd.f32 %v4879_v38, %v4301_v37  ;;  %v4791_v63 = vrot.slane %v4790_v20, 2  ;;  %v4869_v12 = vrot.slane %v4868_v6, 2  ;;  %v3975_v27 = vadd.f32 %v3643_v34, %v11284_v41  ;;  %v3647_v41 = vpop.f32.mrf.mxu0 }
 0x2f0   : > { %v4781_v53 = vrot.slane %v4780_v55, 1  ;;  %v4300_v54 = vmax.f32 %v4172_v35, 0.0  ;;  %v4174_v62 = vadd.f32 %v10097_v32, %v3962_v49  ;;  %v3977_v19 = vadd.f32 %v3716_v52, %v11285_v43  ;;  %v11286_v43 = vld [vmem:[#allocation142_spill] sm:$0xff] }
 0x2f1   : > { %v4881_v57 = vrot.slane %v4880_v24, 2  ;;  %v4792_v61 = vadd.f32 %v4791_v63, %v4790_v20  ;;  %v4870_v42 = vadd.f32 %v4869_v12, %v4868_v6  ;;  %v4187_v16 = vadd.f32 %v10077_v59, %v3975_v27  ;;  %v3720_v27 = vpop.f32.mrf.mxu1 }
 0x2f2   : > { %v4782_v47 = vadd.f32 %v4781_v53, %v4780_v55  ;;  %v4873_v36 = vrot.slane %v4300_v54, 4  ;;  %v4302_v5 = vmax.f32 %v4174_v62, 0.0  ;;  %v4189_v45 = vadd.f32 %v10083_v29, %v3977_v19 }
 0x2f3   : > { %v4882_v37 = vadd.f32 %v4881_v57, %v4880_v24  ;;  %v4793_v38 = vrot.slane %v4792_v61, 1  ;;  %v4871_v56 = vrot.slane %v4870_v42, 1  ;;  %v4315_v10 = vmax.f32 %v4187_v16, 0.0 }
 0x2f4   : > { %v5175_v4 = vadd.f32 %v5167_v3, %v4782_v47  ;;  %v4874_v35 = vadd.f32 %v4873_v36, %v4300_v54  ;;  %v4885_v58 = vrot.slane %v4302_v5, 4  ;;  %v4317_v52 = vmax.f32 %v4189_v45, 0.0 }
 0x2f5   : > { %v4883_v34 = vrot.slane %v4882_v37, 1  ;;  %v4794_v55 = vadd.f32 %v4793_v38, %v4792_v61  ;;  %v4872_v6 = vadd.f32 %v4871_v56, %v4870_v42  ;;  %v4963_v49 = vrot.slane %v4315_v10, 4  ;;  %v11287_v61 = vld [vmem:[#allocation41_spill] sm:$0xff] }
 0x2f6   : > { %v5183_v20 = vadd.f32 %v5175_v4, %v4788_v13  ;;  %v4875_v24 = vrot.slane %v4874_v35, 2  ;;  %v4886_v63 = vadd.f32 %v4885_v58, %v4302_v5  ;;  %v4975_v12 = vrot.slane %v4317_v52, 4 }
 0x2f7   : > { %v4884_v53 = vadd.f32 %v4883_v34, %v4882_v37  ;;  %v5168_v3 = vadd.f32 %v10070_v1, %v4872_v6  ;;  %v4964_v62 = vadd.f32 %v4963_v49, %v4315_v10  ;;  %v3976_v19 = vadd.f32 %v3645_v14, %v11286_v43 }
 0x2f8   : > { %v10160_v57 = vadd.f32 %v5183_v20, %v4794_v55  ;;  %v4876_v54 = vadd.f32 %v4875_v24, %v4874_v35  ;;  %v4887_v47 = vrot.slane %v4886_v63, 2  ;;  %v4976_v16 = vadd.f32 %v4975_v12, %v4317_v52  ;;  %v3649_v55 = vpop.f32.mrf.mxu0 }
 0x2f9   : > { %v3978_v13 = vadd.f32 %v3718_v7, %v11287_v61  ;;  %v4965_v42 = vrot.slane %v4964_v62, 2  ;;  %v4188_v37 = vadd.f32 %v10092_v2, %v3976_v19  ;;  %v3991_v36 = vadd.f32 %v3647_v41, %v9776_v18  ;;  %v3722_v41 = vpop.f32.mrf.mxu1 }
 0x2fa   : > { %v3993_v5 = vadd.f32 %v3720_v27, %v9780_v23  ;;  %v4877_v45 = vrot.slane %v4876_v54, 1  ;;  %v4888_v4 = vadd.f32 %v4887_v47, %v4886_v63  ;;  %v4977_v38 = vrot.slane %v4976_v16, 2 }
 0x2fb   : > { %v4190_v1 = vadd.f32 %v10097_v32, %v3978_v13  ;;  %v4966_v56 = vadd.f32 %v4965_v42, %v4964_v62  ;;  %v4316_v10 = vmax.f32 %v4188_v37, 0.0  ;;  %v4203_v14 = vadd.f32 %v10077_v59, %v3991_v36 }
 0x2fc   : > { %v4205_v34 = vadd.f32 %v10083_v29, %v3993_v5  ;;  %v4878_v35 = vadd.f32 %v4877_v45, %v4876_v54  ;;  %v4889_v7 = vrot.slane %v4888_v4, 1  ;;  %v4978_v58 = vadd.f32 %v4977_v38, %v4976_v16  ;;  %v3759_v16 = vpop.f32.mrf.mxu0 }
 0x2fd   : > { %v4318_v52 = vmax.f32 %v4190_v1, 0.0  ;;  %v4967_v20 = vrot.slane %v4966_v56, 1  ;;  %v4969_v18 = vrot.slane %v4316_v10, 4  ;;  %v4331_v6 = vmax.f32 %v4203_v14, 0.0  ;;  %v11288_v14 = vld [vmem:[#allocation125_spill] sm:$0xff] }
 0x2fe   : > { %v4333_v23 = vmax.f32 %v4205_v34, 0.0  ;;  %v5176_v49 = vadd.f32 %v5168_v3, %v4878_v35  ;;  %v4890_v24 = vadd.f32 %v4889_v7, %v4888_v4  ;;  %v4979_v63 = vrot.slane %v4978_v58, 1  ;;  %v3832_v4 = vpop.f32.mrf.mxu1 }
 0x2ff   : > { %v4981_v12 = vrot.slane %v4318_v52, 4  ;;  %v4968_v27 = vadd.f32 %v4967_v20, %v4966_v56  ;;  %v4970_v62 = vadd.f32 %v4969_v18, %v4316_v10  ;;  %v5059_v43 = vrot.slane %v4331_v6, 4 }
 0x300   : > { %v5071_v59 = vrot.slane %v4333_v23, 4  ;;  %v5184_v19 = vadd.f32 %v5176_v49, %v4884_v53  ;;  %v4980_v29 = vadd.f32 %v4979_v63, %v4978_v58  ;;  %v3992_v47 = vadd.f32 %v3649_v55, %v9784_v17  ;;  %v3761_v49 = vpop.f32.mrf.mxu0 }
 0x301   : > { %v4982_v54 = vadd.f32 %v4981_v12, %v4318_v52  ;;  %v5169_v61 = vadd.f32 %v10088_v15, %v4968_v27  ;;  %v4971_v13 = vrot.slane %v4970_v62, 2  ;;  %v5060_v42 = vadd.f32 %v5059_v43, %v4331_v6  ;;  %v3834_v27 = vpop.f32.mrf.mxu1 }
 0x302   : > { %v5072_v37 = vadd.f32 %v5071_v59, %v4333_v23  ;;  %v10173_v3 = vadd.f32 %v5184_v19, %v4890_v24  ;;  %v4204_v5 = vadd.f32 %v10092_v2, %v3992_v47  ;;  %v3994_v45 = vadd.f32 %v3722_v41, %v9788_v11  ;;  %v11289_v23 = vld [vmem:[#allocation127_spill] sm:$0xff] }
 0x303   : > { %v4983_v36 = vrot.slane %v4982_v54, 2  ;;  %v4972_v38 = vadd.f32 %v4971_v13, %v4970_v62  ;;  %v5061_v53 = vrot.slane %v5060_v42, 2  ;;  %v3883_v56 = vadd.f32 %v3759_v16, %v9792_v9 }
 0x304   : > { %v5073_v1 = vrot.slane %v5072_v37, 2  ;;  %v4332_v10 = vmax.f32 %v4204_v5, 0.0  ;;  %v4206_v15 = vadd.f32 %v10097_v32, %v3994_v45  ;;  %v10181_v34 = vrot.slane %v10068_v51, %v11288_v14  ;;  %v3763_v45 = vpop.f32.mrf.mxu0 }
 0x305   : > { %v4984_v17 = vadd.f32 %v4983_v36, %v4982_v54  ;;  %v4973_v35 = vrot.slane %v4972_v38, 1  ;;  %v5062_v7 = vadd.f32 %v5061_v53, %v5060_v42  ;;  %v3885_v2 = vadd.f32 %v3832_v4, %v9798_v40  ;;  %v11290_v36 = vld [vmem:[#allocation129_spill] sm:$0xff] }
 0x306   : > { %v5074_v58 = vadd.f32 %v5073_v1, %v5072_v37  ;;  %v5065_v52 = vrot.slane %v4332_v10, 4  ;;  %v4334_v55 = vmax.f32 %v4206_v15, 0.0  ;;  %v4095_v20 = vadd.f32 %v10181_v34, %v3883_v56  ;;  %v3836_v1 = vpop.f32.mrf.mxu1 }
 0x307   : > { %v4985_v11 = vrot.slane %v4984_v17, 1  ;;  %v4974_v18 = vadd.f32 %v4973_v35, %v4972_v38  ;;  %v5063_v9 = vrot.slane %v5062_v7, 1  ;;  %v10187_v32 = vrot.slane %v10068_v51, %v11289_v23  ;;  %v3765_v23 = vpop.f32.mrf.mxu0 }
 0x308   : > { %v5075_v6 = vrot.slane %v5074_v58, 1  ;;  %v5066_v63 = vadd.f32 %v5065_v52, %v4332_v10  ;;  %v5077_v12 = vrot.slane %v4334_v55, 4  ;;  %v4223_v41 = vmax.f32 %v4095_v20, 0.0 }
 0x309   : > { %v4986_v24 = vadd.f32 %v4985_v11, %v4984_v17  ;;  %v5177_v62 = vadd.f32 %v5169_v61, %v4974_v18  ;;  %v5064_v40 = vadd.f32 %v5063_v9, %v5062_v7  ;;  %v4097_v59 = vadd.f32 %v10187_v32, %v3885_v2 }
 0x30a   : > { %v5076_v43 = vadd.f32 %v5075_v6, %v5074_v58  ;;  %v5067_v19 = vrot.slane %v5066_v63, 2  ;;  %v5078_v54 = vadd.f32 %v5077_v12, %v4334_v55  ;;  %v4411_v47 = vrot.slane %v4223_v41, 4 }
 0x30b   : > { %v3884_v16 = vadd.f32 %v3761_v49, %v9802_v22  ;;  %v5185_v13 = vadd.f32 %v5177_v62, %v4980_v29  ;;  %v5170_v42 = vadd.f32 %v10108_v46, %v5064_v40  ;;  %v4225_v37 = vmax.f32 %v4097_v59, 0.0  ;;  %v11291_v29 = vld [vmem:[#allocation131_spill] sm:$0xff] }
 0x30c   : > { %v10194_v5 = vrot.slane %v10068_v51, %v11290_v36  ;;  %v5068_v4 = vadd.f32 %v5067_v19, %v5066_v63  ;;  %v5079_v61 = vrot.slane %v5078_v54, 2  ;;  %v4412_v38 = vadd.f32 %v4411_v47, %v4223_v41  ;;  %v11292_v47 = vld [vmem:[#allocation103_spill] sm:$0xff] }
 0x30d   : > { %v3886_v53 = vadd.f32 %v3834_v27, %v9806_v31  ;;  %v10197_v56 = vadd.f32 %v5185_v13, %v4986_v24  ;;  %v4423_v17 = vrot.slane %v4225_v37, 4  ;;  %v10202_v46 = vrot.slane %v10068_v51, %v11291_v29 }
 0x30e   : > { %v4096_v22 = vadd.f32 %v10194_v5, %v3884_v16  ;;  %v5069_v10 = vrot.slane %v5068_v4, 1  ;;  %v5080_v15 = vadd.f32 %v5079_v61, %v5078_v54  ;;  %v4413_v14 = vrot.slane %v4412_v38, 2  ;;  %v11293_v16 = vld [vmem:[#allocation143_spill] sm:$0xff] }
 0x30f   : > { %v3899_v35 = vadd.f32 %v3763_v45, %v9810_v8  ;;  %v4424_v7 = vadd.f32 %v4423_v17, %v4225_v37  ;;  %v4098_v2 = vadd.f32 %v10202_v46, %v3886_v53  ;;  %v3901_v31 = vadd.f32 %v3836_v1, %v9814_v44  ;;  %v3838_v44 = vpop.f32.mrf.mxu1  ;;  %v3769_v53 = vpop.f32.mrf.mxu0 }
 0x310   : > { %v4224_v58 = vmax.f32 %v4096_v22, 0.0  ;;  %v5070_v11 = vadd.f32 %v5069_v10, %v5068_v4  ;;  %v5081_v52 = vrot.slane %v5080_v15, 1  ;;  %v4414_v55 = vadd.f32 %v4413_v14, %v4412_v38 }
 0x311   : > { %v4111_v20 = vadd.f32 %v10181_v34, %v3899_v35  ;;  %v4425_v18 = vrot.slane %v4424_v7, 2  ;;  %v4226_v51 = vmax.f32 %v4098_v2, 0.0  ;;  %v4113_v6 = vadd.f32 %v10187_v32, %v3901_v31  ;;  %v3842_v29 = vpop.f32.mrf.mxu1  ;;  %v11295_v2 = vld [vmem:[#allocation172_spill] sm:$0xff] }
 0x312   : > { %v4417_v9 = vrot.slane %v4224_v58, 4  ;;  %v5178_v49 = vadd.f32 %v5170_v42, %v5070_v11  ;;  %v5082_v24 = vadd.f32 %v5081_v52, %v5080_v15  ;;  %v4415_v8 = vrot.slane %v4414_v55, 1 }
 0x313   : > { %v4239_v63 = vmax.f32 %v4111_v20, 0.0  ;;  %v4426_v12 = vadd.f32 %v4425_v18, %v4424_v7  ;;  %v4429_v27 = vrot.slane %v4226_v51, 4  ;;  %v4241_v62 = vmax.f32 %v4113_v6, 0.0 }
 0x314   : > { %v4418_v41 = vadd.f32 %v4417_v9, %v4224_v58  ;;  %v5186_v40 = vadd.f32 %v5178_v49, %v5076_v43  ;;  %v4416_v59 = vadd.f32 %v4415_v8, %v4414_v55  ;;  %v3900_v54 = vadd.f32 %v3765_v23, %v9818_v48  ;;  %v11294_v43 = vld [vmem:[#allocation104_spill] sm:$0xff] }
 0x315   : > { %v4507_v19 = vrot.slane %v4239_v63, 4  ;;  %v10212_v13 = vadd.f32 %v11293_v16, %v11292_v47  ;;  %v4430_v36 = vadd.f32 %v4429_v27, %v4226_v51  ;;  %v4519_v42 = vrot.slane %v4241_v62, 4 }
 0x316   : > { %v4419_v37 = vrot.slane %v4418_v41, 2  ;;  %v10214_v45 = vadd.f32 %v5186_v40, %v5082_v24  ;;  %v5195_v4 = vadd.f32 %v10120_v39, %v4416_v59  ;;  %v4112_v38 = vadd.f32 %v10194_v5, %v3900_v54  ;;  %v3771_v24 = vpop.f32.mrf.mxu0 }
 0x317   : > { %v4508_v61 = vadd.f32 %v4507_v19, %v4239_v63  ;;  %v10220_v1 = vadd.f32 %v9828_v28, %v11294_v43  ;;  %v4431_v17 = vrot.slane %v4430_v36, 2  ;;  %v4520_v22 = vadd.f32 %v4519_v42, %v4241_v62  ;;  %v3844_v62 = vpop.f32.mrf.mxu1  ;;  %v11296_v43 = vld [vmem:[#allocation144_spill] sm:$0xff] }
 0x318   : > { %v4420_v48 = vadd.f32 %v4419_v37, %v4418_v41  ;;  %v4427_v10 = vrot.slane %v4426_v12, 1  ;;  %v4240_v14 = vmax.f32 %v4112_v38, 0.0  ;;  %v3902_v35 = vadd.f32 %v3838_v44, %v9822_v50  ;;  %v3773_v38 = vpop.f32.mrf.mxu0 }
 0x319   : > { %v4509_v15 = vrot.slane %v4508_v61, 2  ;;  %v4432_v58 = vadd.f32 %v4431_v17, %v4430_v36  ;;  %v4521_v39 = vrot.slane %v4520_v22, 2  ;;  %v3915_v31 = vadd.f32 %v3769_v53, %v11295_v2  ;;  %v3846_v17 = vpop.f32.mrf.mxu1 }
 0x31a   : > { %v4421_v7 = vrot.slane %v4420_v48, 1  ;;  %v4513_v52 = vrot.slane %v4240_v14, 4  ;;  %v4114_v55 = vadd.f32 %v10202_v46, %v3902_v35  ;;  %v3917_v28 = vadd.f32 %v3842_v29, %v9834_v60 }
 0x31b   : > { %v4510_v11 = vadd.f32 %v4509_v15, %v4508_v61  ;;  %v4433_v18 = vrot.slane %v4432_v58, 1  ;;  %v4522_v9 = vadd.f32 %v4521_v39, %v4520_v22  ;;  %v4127_v51 = vadd.f32 %v10181_v34, %v3915_v31 }
 0x31c   : > { %v4422_v20 = vadd.f32 %v4421_v7, %v4420_v48  ;;  %v4514_v23 = vadd.f32 %v4513_v52, %v4240_v14  ;;  %v4242_v49 = vmax.f32 %v4114_v55, 0.0  ;;  %v4129_v50 = vadd.f32 %v10187_v32, %v3917_v28 }
 0x31d   : > { %v4511_v6 = vrot.slane %v4510_v11, 1  ;;  %v4428_v8 = vadd.f32 %v4427_v10, %v4426_v12  ;;  %v4523_v41 = vrot.slane %v4522_v9, 1  ;;  %v4255_v27 = vmax.f32 %v4127_v51, 0.0 }
 0x31e   : > { %v5203_v63 = vadd.f32 %v5195_v4, %v4422_v20  ;;  %v4515_v40 = vrot.slane %v4514_v23, 2  ;;  %v4525_v59 = vrot.slane %v4242_v49, 4  ;;  %v4257_v60 = vmax.f32 %v4129_v50, 0.0 }
 0x31f   : > { %v4512_v44 = vadd.f32 %v4511_v6, %v4510_v11  ;;  %v4434_v19 = vadd.f32 %v4433_v18, %v4432_v58  ;;  %v4603_v47 = vrot.slane %v4255_v27, 4  ;;  %v3916_v16 = vadd.f32 %v3771_v24, %v9838_v33 }
 0x320   : > { %v5211_v54 = vadd.f32 %v5203_v63, %v4428_v8  ;;  %v4516_v36 = vadd.f32 %v4515_v40, %v4514_v23  ;;  %v4526_v42 = vadd.f32 %v4525_v59, %v4242_v49  ;;  %v4615_v61 = vrot.slane %v4257_v60, 4  ;;  %v11297_v40 = vld [vmem:[#allocation105_spill] sm:$0xff]  ;;  %v11298_v59 = vld [vmem:[#allocation42_spill] sm:$0xff] }
 0x321   : > { %v5196_v37 = vadd.f32 %v10128_v26, %v4512_v44  ;;  %v4604_v4 = vadd.f32 %v4603_v47, %v4255_v27  ;;  %v4128_v53 = vadd.f32 %v10194_v5, %v3916_v16  ;;  %v3918_v48 = vadd.f32 %v3844_v62, %v11296_v43  ;;  %v11299_v47 = vld [vmem:[#allocation43_spill] sm:$0xff] }
 0x322   : > { %v5219_v12 = vadd.f32 %v5211_v54, %v4434_v19  ;;  %v4524_v22 = vadd.f32 %v4523_v41, %v4522_v9  ;;  %v4517_v29 = vrot.slane %v4516_v36, 1  ;;  %v4527_v10 = vrot.slane %v4526_v42, 2 }
 0x323   : > { %v4616_v15 = vadd.f32 %v4615_v61, %v4257_v60  ;;  %v4605_v14 = vrot.slane %v4604_v4, 2  ;;  %v4256_v33 = vmax.f32 %v4128_v53, 0.0  ;;  %v4130_v26 = vadd.f32 %v10202_v46, %v3918_v48  ;;  %v11300_v48 = vld [vmem:[#allocation145_spill] sm:$0xff] }
 0x324   : > { %v3931_v35 = vadd.f32 %v3773_v38, %v9846_v0  ;;  %v4518_v7 = vadd.f32 %v4517_v29, %v4516_v36  ;;  %v4528_v58 = vadd.f32 %v4527_v10, %v4526_v42  ;;  %v3933_v2 = vadd.f32 %v3846_v17, %v9850_v30  ;;  %v3775_v0 = vpop.f32.mrf.mxu0  ;;  %v3848_v30 = vpop.f32.mrf.mxu1 }
 0x325   : > { %v4617_v39 = vrot.slane %v4616_v15, 2  ;;  %v4606_v31 = vadd.f32 %v4605_v14, %v4604_v4  ;;  %v4609_v11 = vrot.slane %v4256_v33, 4  ;;  %v4258_v52 = vmax.f32 %v4130_v26, 0.0 }
 0x326   : > { %v4143_v55 = vadd.f32 %v10181_v34, %v3931_v35  ;;  %v5204_v28 = vadd.f32 %v5196_v37, %v4518_v7  ;;  %v4529_v20 = vrot.slane %v4528_v58, 1  ;;  %v4145_v9 = vadd.f32 %v10187_v32, %v3933_v2  ;;  %v3779_v38 = vpop.f32.mrf.mxu0  ;;  %v11301_v35 = vld [vmem:[#allocation44_spill] sm:$0xff] }
 0x327   : > { %v4618_v18 = vadd.f32 %v4617_v39, %v4616_v15  ;;  %v4607_v51 = vrot.slane %v4606_v31, 1  ;;  %v4610_v6 = vadd.f32 %v4609_v11, %v4256_v33  ;;  %v4621_v23 = vrot.slane %v4258_v52, 4 }
 0x328   : > { %v4271_v49 = vmax.f32 %v4143_v55, 0.0  ;;  %v4530_v50 = vadd.f32 %v4529_v20, %v4528_v58  ;;  %v5212_v24 = vadd.f32 %v5204_v28, %v4524_v22  ;;  %v4273_v63 = vmax.f32 %v4145_v9, 0.0  ;;  %v3852_v22 = vpop.f32.mrf.mxu1  ;;  %v3781_v20 = vpop.f32.mrf.mxu0 }
 0x329   : > { %v4619_v8 = vrot.slane %v4618_v18, 1  ;;  %v4608_v41 = vadd.f32 %v4607_v51, %v4606_v31  ;;  %v4611_v27 = vrot.slane %v4610_v6, 2  ;;  %v4622_v62 = vadd.f32 %v4621_v23, %v4258_v52 }
 0x32a   : > { %v4699_v44 = vrot.slane %v4271_v49, 4  ;;  %v10239_v60 = vadd.f32 %v11298_v59, %v11297_v40  ;;  %v5220_v19 = vadd.f32 %v5212_v24, %v4530_v50  ;;  %v4711_v54 = vrot.slane %v4273_v63, 4  ;;  %v3854_v24 = vpop.f32.mrf.mxu1 }
 0x32b   : > { %v3932_v16 = vadd.f32 %v3775_v0, %v11299_v47  ;;  %v5197_v37 = vadd.f32 %v10141_v21, %v4608_v41  ;;  %v4612_v36 = vadd.f32 %v4611_v27, %v4610_v6  ;;  %v4623_v42 = vrot.slane %v4622_v62, 2  ;;  %v11303_v41 = vld [vmem:[#allocation45_spill] sm:$0xff] }
 0x32c   : > { %v4700_v61 = vadd.f32 %v4699_v44, %v4271_v49  ;;  %v5237_v4 = vsel %vm5236_vm8, %v5220_v19, %v5219_v12  ;;  %v4712_v53 = vadd.f32 %v4711_v54, %v4273_v63  ;;  %v3934_v17 = vadd.f32 %v3848_v30, %v11300_v48  ;;  %v11302_v12 = vld [vmem:[#allocation146_spill] sm:$0xff] }
 0x32d   : > { %v4144_v43 = vadd.f32 %v10194_v5, %v3932_v16  ;;  %v4620_v29 = vadd.f32 %v4619_v8, %v4618_v18  ;;  %v4613_v10 = vrot.slane %v4612_v36, 1  ;;  %v4624_v15 = vadd.f32 %v4623_v42, %v4622_v62  ;;  %v11304_v42 = vld [vmem:[#allocation147_spill] sm:$0xff] }
 0x32e   : > { %v4701_v14 = vrot.slane %v4700_v61, 2  ;;  %v4713_v33 = vrot.slane %v4712_v53, 2  ;;  %v4146_v21 = vadd.f32 %v10202_v46, %v3934_v17  ;;  %v3947_v7 = vadd.f32 %v3779_v38, %v11301_v35  ;;  %v3783_v38 = vpop.f32.mrf.mxu0  ;;  %v11306_v35 = vld [vmem:[#allocation148_spill] sm:$0xff] }
 0x32f   : > { %v4272_v26 = vmax.f32 %v4144_v43, 0.0  ;;  %v4614_v58 = vadd.f32 %v4613_v10, %v4612_v36  ;;  %v4625_v39 = vrot.slane %v4624_v15, 1  ;;  %v3949_v31 = vadd.f32 %v3852_v22, %v11302_v12 }
 0x330   : > { %v4702_v2 = vadd.f32 %v4701_v14, %v4700_v61  ;;  %v4714_v11 = vadd.f32 %v4713_v33, %v4712_v53  ;;  %v4274_v55 = vmax.f32 %v4146_v21, 0.0  ;;  %v4159_v28 = vadd.f32 %v10181_v34, %v3947_v7  ;;  %v3856_v53 = vpop.f32.mrf.mxu1 }
 0x331   : > { %v4705_v52 = vrot.slane %v4272_v26, 4  ;;  %v5205_v18 = vadd.f32 %v5197_v37, %v4614_v58  ;;  %v4626_v9 = vadd.f32 %v4625_v39, %v4624_v15  ;;  %v4161_v6 = vadd.f32 %v10187_v32, %v3949_v31 }
 0x332   : > { %v4703_v51 = vrot.slane %v4702_v2, 1  ;;  %v4715_v23 = vrot.slane %v4714_v11, 1  ;;  %v4717_v0 = vrot.slane %v4274_v55, 4  ;;  %v4287_v50 = vmax.f32 %v4159_v28, 0.0 }
 0x333   : > { %v4706_v49 = vadd.f32 %v4705_v52, %v4272_v26  ;;  %v5213_v8 = vadd.f32 %v5205_v18, %v4620_v29  ;;  %v4289_v30 = vmax.f32 %v4161_v6, 0.0  ;;  %v3948_v27 = vadd.f32 %v3781_v20, %v11303_v41  ;;  %v11305_v26 = vld [vmem:[#allocation46_spill] sm:$0xff] }
 0x334   : > { %v4704_v63 = vadd.f32 %v4703_v51, %v4702_v2  ;;  %v4718_v44 = vadd.f32 %v4717_v0, %v4274_v55  ;;  %v4795_v40 = vrot.slane %v4287_v50, 4  ;;  %v3950_v61 = vadd.f32 %v3854_v24, %v11304_v42  ;;  %v3785_v55 = vpop.f32.mrf.mxu0  ;;  %v3858_v0 = vpop.f32.mrf.mxu1 }
 0x335   : > { %v4707_v62 = vrot.slane %v4706_v49, 2  ;;  %v5221_v59 = vadd.f32 %v5213_v8, %v4626_v9  ;;  %v4807_v54 = vrot.slane %v4289_v30, 4  ;;  %v4160_v47 = vadd.f32 %v10194_v5, %v3948_v27 }
 0x336   : > { %v5198_v19 = vadd.f32 %v10151_v25, %v4704_v63  ;;  %v4719_v37 = vrot.slane %v4718_v44, 2  ;;  %v4796_v36 = vadd.f32 %v4795_v40, %v4287_v50  ;;  %v4716_v48 = vadd.f32 %v4715_v23, %v4714_v11  ;;  %v11307_v63 = vld [vmem:[#allocation47_spill] sm:$0xff]  ;;  %v3789_v42 = vpop.f32.mrf.mxu0 }
 0x337   : > { %v4708_v16 = vadd.f32 %v4707_v62, %v4706_v49  ;;  %v5239_v43 = vsel %vm5238_vm9, %v5221_v59, %v5237_v4  ;;  %v4808_v17 = vadd.f32 %v4807_v54, %v4289_v30  ;;  %v4288_v22 = vmax.f32 %v4160_v47, 0.0 }
 0x338   : > { %v4720_v10 = vadd.f32 %v4719_v37, %v4718_v44  ;;  %v4797_v15 = vrot.slane %v4796_v36, 2  ;;  %v4162_v14 = vadd.f32 %v10202_v46, %v3950_v61  ;;  %v3963_v21 = vadd.f32 %v3783_v38, %v11305_v26  ;;  %v11308_v37 = vld [vmem:[#allocation149_spill] sm:$0xff]  ;;  %v3862_v61 = vpop.f32.mrf.mxu1  ;;  %v11310_v26 = vld [vmem:[#allocation150_spill] sm:$0xff] }
 0x339   : > { %v4709_v29 = vrot.slane %v4708_v16, 1  ;;  %v4809_v25 = vrot.slane %v4808_v17, 2  ;;  %v4801_v33 = vrot.slane %v4288_v22, 4  ;;  %v3965_v7 = vadd.f32 %v3856_v53, %v11306_v35 }
 0x33a   : > { %v4721_v39 = vrot.slane %v4720_v10, 1  ;;  %v4798_v2 = vadd.f32 %v4797_v15, %v4796_v36  ;;  %v4290_v12 = vmax.f32 %v4162_v14, 0.0  ;;  %v4175_v11 = vadd.f32 %v10181_v34, %v3963_v21 }
 0x33b   : > { %v4710_v58 = vadd.f32 %v4709_v29, %v4708_v16  ;;  %v4810_v31 = vadd.f32 %v4809_v25, %v4808_v17  ;;  %v4802_v4 = vadd.f32 %v4801_v33, %v4288_v22  ;;  %v4177_v52 = vadd.f32 %v10187_v32, %v3965_v7  ;;  %v11309_v25 = vld [vmem:[#allocation48_spill] sm:$0xff] }
 0x33c   : > { %v4722_v20 = vadd.f32 %v4721_v39, %v4720_v10  ;;  %v4799_v18 = vrot.slane %v4798_v2, 1  ;;  %v4813_v9 = vrot.slane %v4290_v12, 4  ;;  %v4303_v23 = vmax.f32 %v4175_v11, 0.0 }
 0x33d   : > { %v5206_v28 = vadd.f32 %v5198_v19, %v4710_v58  ;;  %v4811_v51 = vrot.slane %v4810_v31, 1  ;;  %v4803_v6 = vrot.slane %v4802_v4, 2  ;;  %v4305_v49 = vmax.f32 %v4177_v52, 0.0 }
 0x33e   : > { %v4800_v24 = vadd.f32 %v4799_v18, %v4798_v2  ;;  %v4814_v8 = vadd.f32 %v4813_v9, %v4290_v12  ;;  %v3964_v30 = vadd.f32 %v3785_v55, %v11307_v63  ;;  %v4891_v27 = vrot.slane %v4303_v23, 4  ;;  %v3791_v2 = vpop.f32.mrf.mxu0  ;;  %v11311_v9 = vld [vmem:[#allocation49_spill] sm:$0xff] }
 0x33f   : > { %v5214_v50 = vadd.f32 %v5206_v28, %v4716_v48  ;;  %v4804_v41 = vadd.f32 %v4803_v6, %v4802_v4  ;;  %v4903_v62 = vrot.slane %v4305_v49, 4  ;;  %v3966_v36 = vadd.f32 %v3858_v0, %v11308_v37  ;;  %v3864_v6 = vpop.f32.mrf.mxu1 }
 0x340   : > { %v5199_v40 = vadd.f32 %v10160_v57, %v4800_v24  ;;  %v4815_v59 = vrot.slane %v4814_v8, 2  ;;  %v4176_v19 = vadd.f32 %v10194_v5, %v3964_v30  ;;  %v4892_v47 = vadd.f32 %v4891_v27, %v4303_v23 }
 0x341   : > { %v5222_v44 = vadd.f32 %v5214_v50, %v4722_v20  ;;  %v4805_v54 = vrot.slane %v4804_v41, 1  ;;  %v4904_v16 = vadd.f32 %v4903_v62, %v4305_v49  ;;  %v4812_v53 = vadd.f32 %v4811_v51, %v4810_v31  ;;  %v3866_v37 = vpop.f32.mrf.mxu1 }
 0x342   : > { %v4816_v48 = vadd.f32 %v4815_v59, %v4814_v8  ;;  %v4304_v17 = vmax.f32 %v4176_v19, 0.0  ;;  %v4893_v29 = vrot.slane %v4892_v47, 2  ;;  %v4178_v15 = vadd.f32 %v10202_v46, %v3966_v36 }
 0x343   : > { %v5241_v38 = vsel %vm5240_vm10, %v5222_v44, %v5239_v43  ;;  %v4806_v22 = vadd.f32 %v4805_v54, %v4804_v41  ;;  %v4905_v10 = vrot.slane %v4904_v16, 2  ;;  %v3979_v33 = vadd.f32 %v3789_v42, %v11309_v25  ;;  %v3793_v41 = vpop.f32.mrf.mxu0 }
 0x344   : > { %v4817_v57 = vrot.slane %v4816_v48, 1  ;;  %v4897_v14 = vrot.slane %v4304_v17, 4  ;;  %v3981_v21 = vadd.f32 %v3862_v61, %v11310_v26  ;;  %v4894_v7 = vadd.f32 %v4893_v29, %v4892_v47 }
 0x345   : > { %v5207_v35 = vadd.f32 %v5199_v40, %v4806_v22  ;;  %v4906_v58 = vadd.f32 %v4905_v10, %v4904_v16  ;;  %v4306_v39 = vmax.f32 %v4178_v15, 0.0  ;;  %v4191_v12 = vadd.f32 %v10181_v34, %v3979_v33  ;;  %v11312_v40 = vld [vmem:[#allocation151_spill] sm:$0xff] }
 0x346   : > { %v4898_v43 = vadd.f32 %v4897_v14, %v4304_v17  ;;  %v4193_v31 = vadd.f32 %v10187_v32, %v3981_v21  ;;  %v4818_v4 = vadd.f32 %v4817_v57, %v4816_v48  ;;  %v4895_v52 = vrot.slane %v4894_v7, 1  ;;  %v3795_v21 = vpop.f32.mrf.mxu0 }
 0x347   : > { %v5215_v11 = vadd.f32 %v5207_v35, %v4812_v53  ;;  %v4909_v55 = vrot.slane %v4306_v39, 4  ;;  %v4319_v20 = vmax.f32 %v4191_v12, 0.0  ;;  %v3980_v51 = vadd.f32 %v3791_v2, %v11311_v9  ;;  %v11313_v53 = vld [vmem:[#allocation50_spill] sm:$0xff] }
 0x348   : > { %v4899_v28 = vrot.slane %v4898_v43, 2  ;;  %v4321_v18 = vmax.f32 %v4193_v31, 0.0  ;;  %v4896_v49 = vadd.f32 %v4895_v52, %v4894_v7  ;;  %v4907_v0 = vrot.slane %v4906_v58, 1 }
 0x349   : > { %v5223_v23 = vadd.f32 %v5215_v11, %v4818_v4  ;;  %v4910_v50 = vadd.f32 %v4909_v55, %v4306_v39  ;;  %v4987_v8 = vrot.slane %v4319_v20, 4  ;;  %v4192_v30 = vadd.f32 %v10194_v5, %v3980_v51 }
 0x34a   : > { %v4900_v24 = vadd.f32 %v4899_v28, %v4898_v43  ;;  %v4999_v63 = vrot.slane %v4321_v18, 4  ;;  %v5200_v62 = vadd.f32 %v10173_v3, %v4896_v49  ;;  %v3982_v59 = vadd.f32 %v3864_v6, %v11312_v40 }
 0x34b   : > { %v5243_v27 = vsel %vm5242_vm11, %v5223_v23, %v5241_v38  ;;  %v4911_v44 = vrot.slane %v4910_v50, 2  ;;  %v4988_v54 = vadd.f32 %v4987_v8, %v4319_v20  ;;  %v4320_v16 = vmax.f32 %v4192_v30, 0.0 }
 0x34c   : > { %v4901_v19 = vrot.slane %v4900_v24, 1  ;;  %v5000_v47 = vadd.f32 %v4999_v63, %v4321_v18  ;;  %v4908_v36 = vadd.f32 %v4907_v0, %v4906_v58  ;;  %v4194_v61 = vadd.f32 %v10202_v46, %v3982_v59 }
 0x34d   : > { %v4912_v42 = vadd.f32 %v4911_v44, %v4910_v50  ;;  %v3995_v48 = vadd.f32 %v3793_v41, %v11313_v53  ;;  %v4989_v22 = vrot.slane %v4988_v54, 2  ;;  %v4993_v38 = vrot.slane %v4320_v16, 4 }
 0x34e   : > { %v4902_v17 = vadd.f32 %v4901_v19, %v4900_v24  ;;  %v5001_v29 = vrot.slane %v5000_v47, 2  ;;  %v4322_v3 = vmax.f32 %v4194_v61, 0.0  ;;  %v3997_v57 = vadd.f32 %v3866_v37, %v10212_v13  ;;  %v3868_v13 = vpop.f32.mrf.mxu1 }
 0x34f   : > { %v4913_v10 = vrot.slane %v4912_v42, 1  ;;  %v4207_v15 = vadd.f32 %v10181_v34, %v3995_v48  ;;  %v4990_v25 = vadd.f32 %v4989_v22, %v4988_v54  ;;  %v4994_v26 = vadd.f32 %v4993_v38, %v4320_v16 }
 0x350   : > { %v5208_v14 = vadd.f32 %v5200_v62, %v4902_v17  ;;  %v5002_v33 = vadd.f32 %v5001_v29, %v5000_v47  ;;  %v5005_v35 = vrot.slane %v4322_v3, 4  ;;  %v4209_v58 = vadd.f32 %v10187_v32, %v3997_v57 }
 0x351   : > { %v4335_v7 = vmax.f32 %v4207_v15, 0.0  ;;  %v4914_v39 = vadd.f32 %v4913_v10, %v4912_v42  ;;  %v4991_v43 = vrot.slane %v4990_v25, 1  ;;  %v4995_v12 = vrot.slane %v4994_v26, 2 }
 0x352   : > { %v5216_v2 = vadd.f32 %v5208_v14, %v4908_v36  ;;  %v5006_v31 = vadd.f32 %v5005_v35, %v4322_v3  ;;  %v4337_v11 = vmax.f32 %v4209_v58, 0.0  ;;  %v3996_v34 = vadd.f32 %v3795_v21, %v10220_v1 }
 0x353   : > { %v5083_v4 = vrot.slane %v4335_v7, 4  ;;  %v4992_v55 = vadd.f32 %v4991_v43, %v4990_v25  ;;  %v5003_v28 = vrot.slane %v5002_v33, 1  ;;  %v4996_v20 = vadd.f32 %v4995_v12, %v4994_v26  ;;  %v5227_v26 = vld [vmem:[#allocation2] sm:$0xff] }
 0x354   : > { %v5224_v52 = vadd.f32 %v5216_v2, %v4914_v39  ;;  %v5007_v18 = vrot.slane %v5006_v31, 2  ;;  %v5095_v51 = vrot.slane %v4337_v11, 4  ;;  %v4208_v6 = vadd.f32 %v10194_v5, %v3996_v34 }
 0x355   : > { %v5084_v9 = vadd.f32 %v5083_v4, %v4335_v7  ;;  %v5201_v23 = vadd.f32 %v10197_v56, %v4992_v55  ;;  %v4997_v49 = vrot.slane %v4996_v20, 1  ;;  %v3998_v0 = vadd.f32 %v3868_v13, %v10239_v60 }
 0x356   : > { %v5245_v32 = vsel %vm5244_vm12, %v5224_v52, %v5243_v27  ;;  %v5008_v50 = vadd.f32 %v5007_v18, %v5006_v31  ;;  %v5096_v1 = vadd.f32 %v5095_v51, %v4337_v11  ;;  %v4336_v8 = vmax.f32 %v4208_v6, 0.0 }
 0x357   : > { %v5085_v24 = vrot.slane %v5084_v9, 2  ;;  %v4998_v63 = vadd.f32 %v4997_v49, %v4996_v20  ;;  %v4210_v30 = vadd.f32 %v10202_v46, %v3998_v0  ;;  %v5004_v59 = vadd.f32 %v5003_v28, %v5002_v33 }
 0x358   : > { %v5009_v41 = vrot.slane %v5008_v50, 1  ;;  %v5097_v44 = vrot.slane %v5096_v1, 2  ;;  %v5089_v40 = vrot.slane %v4336_v8, 4 }
 0x359   : > { %v5086_v62 = vadd.f32 %v5085_v24, %v5084_v9  ;;  %v5209_v5 = vadd.f32 %v5201_v23, %v4998_v63  ;;  %v4338_v19 = vmax.f32 %v4210_v30, 0.0 }
 0x35a   : > { %v5090_v54 = vadd.f32 %v5089_v40, %v4336_v8  ;;  %v5010_v56 = vadd.f32 %v5009_v41, %v5008_v50  ;;  %v5098_v37 = vadd.f32 %v5097_v44, %v5096_v1 }
 0x35b   : > { %v5087_v27 = vrot.slane %v5086_v62, 1  ;;  %v5217_v47 = vadd.f32 %v5209_v5, %v5004_v59  ;;  %v5101_v16 = vrot.slane %v4338_v19, 4 }
 0x35c   : > { %v5091_v36 = vrot.slane %v5090_v54, 2  ;;  %v5099_v22 = vrot.slane %v5098_v37, 1 }
 0x35d   : > { %v5088_v60 = vadd.f32 %v5087_v27, %v5086_v62  ;;  %v5225_v42 = vadd.f32 %v5217_v47, %v5010_v56  ;;  %v5102_v61 = vadd.f32 %v5101_v16, %v4338_v19 }
 0x35e   : > { %v5092_v53 = vadd.f32 %v5091_v36, %v5090_v54  ;;  %v5100_v15 = vadd.f32 %v5099_v22, %v5098_v37 }
 0x35f   : > { %v5202_v46 = vadd.f32 %v10214_v45, %v5088_v60  ;;  %v5247_v48 = vsel %vm5246_vm13, %v5225_v42, %v5245_v32  ;;  %v5103_v17 = vrot.slane %v5102_v61, 2 }
 0x360   : > { %v5093_v29 = vrot.slane %v5092_v53, 1 }
 0x361   : > { %v5104_v38 = vadd.f32 %v5103_v17, %v5102_v61 }
 0x362   : > { %v5094_v10 = vadd.f32 %v5093_v29, %v5092_v53 }
 0x363   : > { %v5105_v3 = vrot.slane %v5104_v38, 1 }
 0x364   : > { %v5210_v57 = vadd.f32 %v5202_v46, %v5094_v10 }
 0x365   : > { %v5106_v14 = vadd.f32 %v5105_v3, %v5104_v38 }
 0x366   : > { %v5218_v25 = vadd.f32 %v5210_v57, %v5100_v15 }
 0x368   : > { %v5226_v33 = vadd.f32 %v5218_v25, %v5106_v14 }
 0x369   : > { %5256 = sbr.rel (%p7147_p10) target bundleno = 1350 (0x546), region = 97 }
 0x36a   : > { %v5249_v21 = vsel %vm5248_vm14, %v5226_v33, %v5247_v48 }
 0x36b   : > { %v5251_v35 = vadd.f32 %v5249_v21, %v5227_v26 }
 0x36d   : > { %5252 = vst [vmem:[#allocation2] sm:$0xff] %v5251_v35 }
 0x36e   : > { %v5316_v45 = vld [vmem:[%s10726_s3 + $0x1c0] sm:$0xff]  ;;  %v5317_v58 = vld [vmem:[%s10726_s3 + $0x1c8] sm:$0xff]  ;;  %v7578_v4 = vmov 0   ;;  %v5318_v26 = vld [vmem:[%s10726_s3 + $0x1d0] sm:$0xff] }
 0x36f   : > { %v5320_v7 = vld [vmem:[%s10726_s3 + $0x1e0] sm:$0xff]  ;;  %v5321_v2 = vld [vmem:[%s10726_s3 + $0x1e8] sm:$0xff]  ;;  %5718 = vmatprep.mubr.bf16.mxu0 %v7578_v4  ;;  %5759 = vmatprep.mubr.bf16.mxu1 %v7578_v4 }
 0x370   : > { %v7205_v39 = vcombine.high %v5316_v45, %v5320_v7  ;;  %v7204_v43 = vcombine.low %v5316_v45, %v5320_v7  ;;  %v5308_v12 = vld [vmem:[%s10726_s3 + $0x180] sm:$0xff]  ;;  %v7207_v11 = vcombine.high %v5317_v58, %v5321_v2  ;;  %v7206_v34 = vcombine.low %v5317_v58, %v5321_v2  ;;  %v5309_v52 = vld [vmem:[%s10726_s3 + $0x188] sm:$0xff]  ;;  %v5322_v45 = vld [vmem:[%s10726_s3 + $0x1f0] sm:$0xff] }
 0x371   : > { %v5312_v31 = vld [vmem:[%s10726_s3 + $0x1a0] sm:$0xff]  ;;  %v5313_v55 = vld [vmem:[%s10726_s3 + $0x1a8] sm:$0xff]  ;;  %v5319_v58 = vld [vmem:[%s10726_s3 + $0x1d8] sm:$0xff] }
 0x372   : > { %v7197_v13 = vcombine.high %v5308_v12, %v5312_v31  ;;  %v5300_v28 = vld [vmem:[%s10726_s3 + $0x140] sm:$0xff]  ;;  %5686 = vmatprep.subr.bf16.mxu0 %v7205_v39  ;;  %v7199_v20 = vcombine.high %v5309_v52, %v5313_v55  ;;  %v5301_v9 = vld [vmem:[%s10726_s3 + $0x148] sm:$0xff]  ;;  %5727 = vmatprep.subr.bf16.mxu1 %v7207_v11  ;;  %v7196_v6 = vcombine.low %v5308_v12, %v5312_v31  ;;  %v5323_v2 = vld [vmem:[%s10726_s3 + $0x1f8] sm:$0xff] }
 0x373   : > { %v5304_v18 = vld [vmem:[%s10726_s3 + $0x160] sm:$0xff]  ;;  %v5305_v51 = vld [vmem:[%s10726_s3 + $0x168] sm:$0xff]  ;;  %5687 = vmatpush1.bf16.msra.mxu0 %v7204_v43  ;;  %5728 = vmatpush1.bf16.msra.mxu1 %v7206_v34  ;;  %v7198_v32 = vcombine.low %v5309_v52, %v5313_v55  ;;  %v5310_v12 = vld [vmem:[%s10726_s3 + $0x190] sm:$0xff]  ;;  %v7209_v11 = vcombine.high %v5318_v26, %v5322_v45 }
 0x374   : > { %5688 = vmatprep.subr.bf16.mxu0 %v7197_v13  ;;  %v7189_v23 = vcombine.high %v5300_v28, %v5304_v18  ;;  %5729 = vmatprep.subr.bf16.mxu1 %v7199_v20  ;;  %v7191_v49 = vcombine.high %v5301_v9, %v5305_v51  ;;  %v5292_v0 = vld [vmem:[%s10726_s3 + $0x100] sm:$0xff]  ;;  %v5293_v24 = vld [vmem:[%s10726_s3 + $0x108] sm:$0xff]  ;;  %v7188_v8 = vcombine.low %v5300_v28, %v5304_v18  ;;  %v5314_v34 = vld [vmem:[%s10726_s3 + $0x1b0] sm:$0xff] }
 0x375   : > { %v5296_v50 = vld [vmem:[%s10726_s3 + $0x120] sm:$0xff]  ;;  %v5297_v1 = vld [vmem:[%s10726_s3 + $0x128] sm:$0xff]  ;;  %v7190_v63 = vcombine.low %v5301_v9, %v5305_v51  ;;  %v7211_v13 = vcombine.high %v5319_v58, %v5323_v2  ;;  %v5311_v52 = vld [vmem:[%s10726_s3 + $0x198] sm:$0xff]  ;;  %v7208_v20 = vcombine.low %v5318_v26, %v5322_v45  ;;  %v7210_v9 = vcombine.low %v5319_v58, %v5323_v2 }
 0x376   : > { %v7181_v30 = vcombine.high %v5292_v0, %v5296_v50  ;;  %v7183_v41 = vcombine.high %v5293_v24, %v5297_v1  ;;  %v5284_v62 = vld [vmem:[%s10726_s3 + $0xc0] sm:$0xff]  ;;  %v5285_v40 = vld [vmem:[%s10726_s3 + $0xc8] sm:$0xff]  ;;  %v7180_v5 = vcombine.low %v5292_v0, %v5296_v50  ;;  %v7182_v19 = vcombine.low %v5293_v24, %v5297_v1  ;;  %v5315_v28 = vld [vmem:[%s10726_s3 + $0x1b8] sm:$0xff] }
 0x377   : > { %5689 = vmatpush1.bf16.msra.mxu0 %v7196_v6  ;;  %5730 = vmatpush1.bf16.msra.mxu1 %v7198_v32  ;;  %v5288_v44 = vld [vmem:[%s10726_s3 + $0xe0] sm:$0xff]  ;;  %v5289_v59 = vld [vmem:[%s10726_s3 + $0xe8] sm:$0xff]  ;;  %v5302_v18 = vld [vmem:[%s10726_s3 + $0x150] sm:$0xff]  ;;  %v7201_v51 = vcombine.high %v5310_v12, %v5314_v34  ;;  %v7203_v32 = vcombine.high %v5311_v52, %v5315_v28  ;;  %v7200_v0 = vcombine.low %v5310_v12, %v5314_v34 }
 0x378   : > { %5690 = vmatprep.subr.bf16.mxu0 %v7189_v23  ;;  %5731 = vmatprep.subr.bf16.mxu1 %v7191_v49  ;;  %v7173_v27 = vcombine.high %v5284_v62, %v5288_v44  ;;  %v7175_v54 = vcombine.high %v5285_v40, %v5289_v59  ;;  %v5276_v56 = vld [vmem:[%s10726_s3 + $0x80] sm:$0xff]  ;;  %v5277_v16 = vld [vmem:[%s10726_s3 + $0x88] sm:$0xff]  ;;  %v7172_v37 = vcombine.low %v5284_v62, %v5288_v44  ;;  %v5306_v6 = vld [vmem:[%s10726_s3 + $0x170] sm:$0xff] }
 0x379   : > { %v5280_v47 = vld [vmem:[%s10726_s3 + $0xa0] sm:$0xff]  ;;  %v5281_v60 = vld [vmem:[%s10726_s3 + $0xa8] sm:$0xff]  ;;  %v7174_v36 = vcombine.low %v5285_v40, %v5289_v59  ;;  %v5303_v23 = vld [vmem:[%s10726_s3 + $0x158] sm:$0xff]  ;;  %v7202_v24 = vcombine.low %v5311_v52, %v5315_v28  ;;  %v7193_v1 = vcombine.high %v5302_v18, %v5306_v6  ;;  %v7192_v62 = vcombine.low %v5302_v18, %v5306_v6 }
 0x37a   : > { %v7165_v42 = vcombine.high %v5276_v56, %v5280_v47  ;;  %v7167_v61 = vcombine.high %v5277_v16, %v5281_v60  ;;  %v5268_v46 = vld [vmem:[%s10726_s3 + $0x40] sm:$0xff]  ;;  %v5269_v48 = vld [vmem:[%s10726_s3 + $0x48] sm:$0xff]  ;;  %v7164_v22 = vcombine.low %v5276_v56, %v5280_v47  ;;  %v7166_v38 = vcombine.low %v5277_v16, %v5281_v60  ;;  %v5307_v49 = vld [vmem:[%s10726_s3 + $0x178] sm:$0xff] }
 0x37b   : > { %5691 = vmatpush1.bf16.msra.mxu0 %v7188_v8  ;;  %5732 = vmatpush1.bf16.msra.mxu1 %v7190_v63  ;;  %v5272_v53 = vld [vmem:[%s10726_s3 + $0x60] sm:$0xff]  ;;  %v5273_v17 = vld [vmem:[%s10726_s3 + $0x68] sm:$0xff]  ;;  %v5294_v50 = vld [vmem:[%s10726_s3 + $0x110] sm:$0xff]  ;;  %v7195_v63 = vcombine.high %v5303_v23, %v5307_v49  ;;  %v7194_v40 = vcombine.low %v5303_v23, %v5307_v49 }
 0x37c   : > { %5692 = vmatprep.subr.bf16.mxu0 %v7181_v30  ;;  %5733 = vmatprep.subr.bf16.mxu1 %v7183_v41  ;;  %v5260_v29 = vld [vmem:[%s10726_s3] sm:$0xff]  ;;  %v7157_v10 = vcombine.high %v5268_v46, %v5272_v53  ;;  %v5261_v15 = vld [vmem:[%s10726_s3 + $0x8] sm:$0xff]  ;;  %v7159_v57 = vcombine.high %v5269_v48, %v5273_v17  ;;  %v7156_v33 = vcombine.low %v5268_v46, %v5272_v53  ;;  %v5298_v8 = vld [vmem:[%s10726_s3 + $0x130] sm:$0xff] }
 0x37d   : > { %v5264_v3 = vld [vmem:[%s10726_s3 + $0x20] sm:$0xff]  ;;  %v5265_v14 = vld [vmem:[%s10726_s3 + $0x28] sm:$0xff]  ;;  %v7158_v21 = vcombine.low %v5269_v48, %v5273_v17  ;;  %v5295_v30 = vld [vmem:[%s10726_s3 + $0x118] sm:$0xff]  ;;  %v7185_v59 = vcombine.high %v5294_v50, %v5298_v8 }
 0x37e   : > { %v5257_v25 = vld [vmem:[#allocation2] sm:$0xff]  ;;  %v7149_v35 = vcombine.high %v5260_v29, %v5264_v3  ;;  %v7151_v7 = vcombine.high %v5261_v15, %v5265_v14  ;;  %v7148_v43 = vcombine.low %v5260_v29, %v5264_v3  ;;  %v7150_v31 = vcombine.low %v5261_v15, %v5265_v14  ;;  %v5299_v41 = vld [vmem:[%s10726_s3 + $0x138] sm:$0xff]  ;;  %v5286_v44 = vld [vmem:[%s10726_s3 + $0xd0] sm:$0xff] }
 0x37f   : > { %5693 = vmatpush1.bf16.msra.mxu0 %v7180_v5  ;;  %5734 = vmatpush1.bf16.msra.mxu1 %v7182_v19  ;;  %v5258_v39 = vmul.f32 0.00390625, %v5257_v25  ;;  %v5290_v5 = vld [vmem:[%s10726_s3 + $0xf0] sm:$0xff]  ;;  %v7187_v19 = vcombine.high %v5295_v30, %v5299_v41  ;;  %v7186_v16 = vcombine.low %v5295_v30, %v5299_v41  ;;  %v5275_v29 = vld [vmem:[%s10726_s3 + $0x78] sm:$0xff]  ;;  %v7480_v28 = vld [vmem:[%s10728_s5 + $0x68] sm:$0xff]  }
 0x380   : > { %5694 = vmatprep.subr.bf16.mxu0 %v7173_v27  ;;  %5735 = vmatprep.subr.bf16.mxu1 %v7175_v54  ;;  %v5291_v27 = vld [vmem:[%s10726_s3 + $0xf8] sm:$0xff]  ;;  %v7184_v54 = vcombine.low %v5294_v50, %v5298_v8  ;;  %v5278_v56 = vld [vmem:[%s10726_s3 + $0x90] sm:$0xff]  ;;  %v7177_v60 = vcombine.high %v5286_v44, %v5290_v5  ;;  %v7482_v18 = vld [vmem:[%s10728_s5 + $0x28] sm:$0xff]  }
 0x381   : > { %v10406_v55 = vpack.c.bf16 %v5258_v39, %v5258_v39  ;;  %v5282_v47 = vld [vmem:[%s10726_s3 + $0xb0] sm:$0xff]  ;;  %v5263_v25 = vld [vmem:[%s10726_s3 + $0x18] sm:$0xff]  ;;  %v7486_v6 = vld [vmem:[%s10728_s5 + $0x20] sm:$0xff]  }
 0x382   : > { %v5270_v46 = vld [vmem:[%s10726_s3 + $0x50] sm:$0xff]  ;;  %v7169_v17 = vcombine.high %v5278_v56, %v5282_v47  ;;  %v7472_v58 = vld [vmem:[%s10728_s5 + $0x78] sm:$0xff]   ;;  %v7496_v30 = vld [vmem:[%s10728_s5 + $0x48] sm:$0xff]  }
 0x383   : > { %5695 = vmatpush1.bf16.msra.mxu0 %v7172_v37  ;;  %5736 = vmatpush1.bf16.msra.mxu1 %v7174_v36  ;;  %v5279_v37 = vld [vmem:[%s10726_s3 + $0x98] sm:$0xff]  ;;  %v5274_v53 = vld [vmem:[%s10726_s3 + $0x70] sm:$0xff]  ;;  %v7497_v41 = vld [vmem:[%s10728_s5 + $0xc8] sm:$0xff]  }
 0x384   : > { %5696 = vmatprep.subr.bf16.mxu0 %v7165_v42  ;;  %5737 = vmatprep.subr.bf16.mxu1 %v7167_v61  ;;  %v5283_v36 = vld [vmem:[%s10726_s3 + $0xb8] sm:$0xff]  ;;  %v7176_v61 = vcombine.low %v5286_v44, %v5290_v5  ;;  %v5262_v3 = vld [vmem:[%s10726_s3 + $0x10] sm:$0xff]  ;;  %v7161_v14 = vcombine.high %v5270_v46, %v5274_v53  ;;  %v7499_v44 = vld [vmem:[%s10728_s5 + $0x88] sm:$0xff]  }
 0x385   : > { %v5266_v15 = vld [vmem:[%s10726_s3 + $0x30] sm:$0xff]  ;;  %v7473_v2 = vld [vmem:[%s10728_s5 + $0xf8] sm:$0xff]   ;;  %v7502_v5 = vld [vmem:[%s10728_s5] sm:$0xff]  }
 0x386   : > { %v7153_v45 = vcombine.high %v5262_v3, %v5266_v15  ;;  %v7152_v39 = vcombine.low %v5262_v3, %v5266_v15  ;;  %v7474_v12 = vld [vmem:[%s10728_s5 + $0x38] sm:$0xff]   ;;  %v7477_v34 = vld [vmem:[%s10728_s5 + $0xf0] sm:$0xff]  }
 0x387   : > { %5697 = vmatpush1.bf16.msra.mxu0 %v7164_v22  ;;  %5738 = vmatpush1.bf16.msra.mxu1 %v7166_v38  ;;  %v5271_v22 = vld [vmem:[%s10726_s3 + $0x58] sm:$0xff]  ;;  %v7171_v38 = vcombine.high %v5279_v37, %v5283_v36  ;;  %v7479_v52 = vld [vmem:[%s10728_s5 + $0xb0] sm:$0xff]  }
 0x388   : > { %5698 = vmatprep.subr.bf16.mxu0 %v7157_v10  ;;  %5739 = vmatprep.subr.bf16.mxu1 %v7159_v57  ;;  %v7168_v10 = vcombine.low %v5278_v56, %v5282_v47  ;;  %v7170_v57 = vcombine.low %v5279_v37, %v5283_v36  ;;  %v7163_v26 = vcombine.high %v5271_v22, %v5275_v29  ;;  %v7488_v23 = vld [vmem:[%s10728_s5 + $0x58] sm:$0xff]   ;;  %v7494_v8 = vld [vmem:[%s10728_s5 + $0x10] sm:$0xff]   ;;  %v11316_v37 = vld [vmem:[#allocation179_spill] sm:$0xff] }
 0x389   : > { %v7489_v49 = vld [vmem:[%s10728_s5 + $0xd8] sm:$0xff]   ;;  %v11314_v56 = vld [vmem:[#allocation177_spill] sm:$0xff] }
 0x38a   : > { %v7491_v50 = vld [vmem:[%s10728_s5 + $0x98] sm:$0xff]  }
 0x38b   : > { %5699 = vmatpush1.bf16.msra.mxu0 %v7156_v33  ;;  %5740 = vmatpush1.bf16.msra.mxu1 %v7158_v21  ;;  %v5267_v33 = vld [vmem:[%s10726_s3 + $0x38] sm:$0xff]  ;;  %v7160_v21 = vcombine.low %v5270_v46, %v5274_v53 }
 0x38c   : > { %5700 = vmatprep.subr.bf16.mxu0 %v7149_v35  ;;  %5741 = vmatprep.subr.bf16.mxu1 %v7151_v7  ;;  %v7162_v35 = vcombine.low %v5271_v22, %v5275_v29  ;;  %v7155_v7 = vcombine.high %v5263_v25, %v5267_v33 }
 0x38f   : > { %5701 = vmatpush1.bf16.msra.mxu0 %v7148_v43  ;;  %5742 = vmatpush1.bf16.msra.mxu1 %v7150_v31  ;;  %v7154_v43 = vcombine.low %v5263_v25, %v5267_v33  ;;  %v7475_v31 = vld [vmem:[%s10728_s5 + $0xb8] sm:$0xff]  }
 0x390   : > { %5768 = vmatprep.subr.bf16.mxu0 %v7209_v11  ;;  %5809 = vmatprep.subr.bf16.mxu1 %v7211_v13  ;;  %v7476_v11 = vld [vmem:[%s10728_s5 + $0x70] sm:$0xff]  }
 0x391   : > { %v7478_v13 = vld [vmem:[%s10728_s5 + $0x30] sm:$0xff]  }
 0x392   : > { %5719 = vmatmul.mubr.bf16.vlgmr.msra.gmra.mxu0 %v10406_v55  ;;  %5760 = vmatmul.mubr.bf16.vlgmr.msra.gmra.mxu1 %v10406_v55 }
 0x393   : > { %5769 = vmatpush1.bf16.msra.mxu0 %v7208_v20  ;;  %5810 = vmatpush1.bf16.msra.mxu1 %v7210_v9  ;;  %v7481_v20 = vld [vmem:[%s10728_s5 + $0xe8] sm:$0xff]  }
 0x394   : > { %5770 = vmatprep.subr.bf16.mxu0 %v7201_v51  ;;  %5811 = vmatprep.subr.bf16.mxu1 %v7203_v32  ;;  %v7483_v9 = vld [vmem:[%s10728_s5 + $0xa8] sm:$0xff]   ;;  %v7485_v51 = vld [vmem:[%s10728_s5 + $0xe0] sm:$0xff]  }
 0x395   : > { %5800 = vmatprep.mubr.bf16.mxu0 %v7578_v4  ;;  %5841 = vmatprep.mubr.bf16.mxu1 %v7578_v4  ;;  %v5287_v4 = vld [vmem:[%s10726_s3 + $0xd8] sm:$0xff]  ;;  %v7487_v32 = vld [vmem:[%s10728_s5 + $0xa0] sm:$0xff]  }
 0x396   : > { %v7179_v42 = vcombine.high %v5287_v4, %v5291_v27  ;;  %v7178_v48 = vcombine.low %v5287_v4, %v5291_v27  ;;  %v7504_v4 = vld [vmem:[%s10728_s5 + $0x178] sm:$0xff]  }
 0x397   : > { %5771 = vmatpush1.bf16.msra.mxu0 %v7200_v0  ;;  %5812 = vmatpush1.bf16.msra.mxu1 %v7202_v24  ;;  %v7490_v0 = vld [vmem:[%s10728_s5 + $0x18] sm:$0xff]   ;;  %v7492_v24 = vld [vmem:[%s10728_s5 + $0x50] sm:$0xff]  }
 0x398   : > { %5772 = vmatprep.subr.bf16.mxu0 %v7193_v1  ;;  %5813 = vmatprep.subr.bf16.mxu1 %v7195_v63  ;;  %v7493_v1 = vld [vmem:[%s10728_s5 + $0xd0] sm:$0xff]   ;;  %v7505_v27 = vld [vmem:[%s10728_s5 + $0x1f8] sm:$0xff]  }
 0x399   : > { %v7495_v63 = vld [vmem:[%s10728_s5 + $0x90] sm:$0xff]  }
 0x39b   : > { %5773 = vmatpush1.bf16.msra.mxu0 %v7192_v62  ;;  %5814 = vmatpush1.bf16.msra.mxu1 %v7194_v40  ;;  %v7498_v62 = vld [vmem:[%s10728_s5 + $0x8] sm:$0xff]   ;;  %v7500_v40 = vld [vmem:[%s10728_s5 + $0x40] sm:$0xff]  }
 0x39c   : > { %5774 = vmatprep.subr.bf16.mxu0 %v7185_v59  ;;  %5815 = vmatprep.subr.bf16.mxu1 %v7187_v19  ;;  %v7501_v59 = vld [vmem:[%s10728_s5 + $0xc0] sm:$0xff]  }
 0x39d   : > { %v7503_v19 = vld [vmem:[%s10728_s5 + $0x80] sm:$0xff]  }
 0x39f   : > { %5775 = vmatpush1.bf16.msra.mxu0 %v7184_v54  ;;  %5816 = vmatpush1.bf16.msra.mxu1 %v7186_v16  ;;  %v10594_v54 = vld [vmem:[%s10727_s4] sm:$0xff]  ;;  %v11315_v16 = vld [vmem:[#allocation178_spill] sm:$0xff] }
 0x3a0   : > { %5776 = vmatprep.subr.bf16.mxu0 %v7177_v60  ;;  %5817 = vmatprep.subr.bf16.mxu1 %v7179_v42  ;;  %v5329_v47 = vrot.slane %v10594_v54, %v11314_v56  ;;  %v5337_v60 = vrot.slane %v10594_v54, %v11315_v16  ;;  %v5333_v36 = vrot.slane %v10594_v54, %v11316_v37  ;;  %v7532_v56 = vld [vmem:[%s10728_s5 + $0x140] sm:$0xff]  }
 0x3a3   : > { %5777 = vmatpush1.bf16.msra.mxu0 %v7176_v61  ;;  %5818 = vmatpush1.bf16.msra.mxu1 %v7178_v48  ;;  %v11317_v61 = vld [vmem:[#allocation180_spill] sm:$0xff] }
 0x3a4   : > { %5778 = vmatprep.subr.bf16.mxu0 %v7169_v17  ;;  %5819 = vmatprep.subr.bf16.mxu1 %v7171_v38  ;;  %v5341_v46 = vrot.slane %v10594_v54, %v11317_v61  ;;  %v7534_v61 = vld [vmem:[%s10728_s5 + $0x100] sm:$0xff]  }
 0x3a7   : > { %5779 = vmatpush1.bf16.msra.mxu0 %v7168_v10  ;;  %5820 = vmatpush1.bf16.msra.mxu1 %v7170_v57 }
 0x3a8   : > { %5780 = vmatprep.subr.bf16.mxu0 %v7161_v14  ;;  %5821 = vmatprep.subr.bf16.mxu1 %v7163_v26 }
 0x3ab   : > { %5781 = vmatpush1.bf16.msra.mxu0 %v7160_v21  ;;  %5822 = vmatpush1.bf16.msra.mxu1 %v7162_v35 }
 0x3ac   : > { %5782 = vmatprep.subr.bf16.mxu0 %v7153_v45  ;;  %5823 = vmatprep.subr.bf16.mxu1 %v7155_v7  ;;  %v7506_v7 = vld [vmem:[%s10728_s5 + $0x138] sm:$0xff]  }
 0x3af   : > { %5783 = vmatpush1.bf16.msra.mxu0 %v7152_v39  ;;  %5824 = vmatpush1.bf16.msra.mxu1 %v7154_v43  ;;  %v7508_v43 = vld [vmem:[%s10728_s5 + $0x170] sm:$0xff]  }
 0x3b0   : > { %7281 = vmatprep.subr.bf16.mxu0 %v7472_v58  ;;  %7303 = vmatprep.subr.bf16.mxu1 %v7473_v2  ;;  %v7507_v2 = vld [vmem:[%s10728_s5 + $0x1b8] sm:$0xff]  }
 0x3b2   : > { %5801 = vmatmul.mubr.bf16.vlgmr.msra.gmra.mxu0 %v10406_v55  ;;  %5842 = vmatmul.mubr.bf16.vlgmr.msra.gmra.mxu1 %v10406_v55  ;;  %v7484_v55 = vld [vmem:[%s10728_s5 + $0x60] sm:$0xff]  }
 0x3b3   : > { %7282 = vmatpush3.bf16.msra.mxu0 %v7474_v12  ;;  %7304 = vmatpush3.bf16.msra.mxu1 %v7475_v31  ;;  %v7509_v12 = vld [vmem:[%s10728_s5 + $0x1f0] sm:$0xff]  }
 0x3b4   : > { %7283 = vmatprep.subr.bf16.mxu0 %v7476_v11  ;;  %7305 = vmatprep.subr.bf16.mxu1 %v7477_v34  ;;  %v7510_v31 = vld [vmem:[%s10728_s5 + $0x130] sm:$0xff]   ;;  %v7512_v34 = vld [vmem:[%s10728_s5 + $0x168] sm:$0xff]  }
 0x3b5   : > { %v7511_v11 = vld [vmem:[%s10728_s5 + $0x1b0] sm:$0xff]  }
 0x3b7   : > { %7284 = vmatpush3.bf16.msra.mxu0 %v7478_v13  ;;  %7306 = vmatpush3.bf16.msra.mxu1 %v7479_v52  ;;  %v7513_v13 = vld [vmem:[%s10728_s5 + $0x1e8] sm:$0xff]  }
 0x3b8   : > { %7285 = vmatprep.subr.bf16.mxu0 %v7480_v28  ;;  %7307 = vmatprep.subr.bf16.mxu1 %v7481_v20  ;;  %v7514_v52 = vld [vmem:[%s10728_s5 + $0x128] sm:$0xff]   ;;  %v7516_v20 = vld [vmem:[%s10728_s5 + $0x160] sm:$0xff]  }
 0x3b9   : > { %v7515_v28 = vld [vmem:[%s10728_s5 + $0x1a8] sm:$0xff]  }
 0x3bb   : > { %7286 = vmatpush3.bf16.msra.mxu0 %v7482_v18  ;;  %7308 = vmatpush3.bf16.msra.mxu1 %v7483_v9  ;;  %v7517_v18 = vld [vmem:[%s10728_s5 + $0x1e0] sm:$0xff]  }
 0x3bc   : > { %7287 = vmatprep.subr.bf16.mxu0 %v7484_v55  ;;  %7309 = vmatprep.subr.bf16.mxu1 %v7485_v51  ;;  %v7518_v9 = vld [vmem:[%s10728_s5 + $0x120] sm:$0xff]   ;;  %v7520_v51 = vld [vmem:[%s10728_s5 + $0x158] sm:$0xff]  }
 0x3bd   : > { %v7519_v55 = vld [vmem:[%s10728_s5 + $0x1a0] sm:$0xff]  }
 0x3bf   : > { %7288 = vmatpush3.bf16.msra.mxu0 %v7486_v6  ;;  %7310 = vmatpush3.bf16.msra.mxu1 %v7487_v32  ;;  %v7521_v6 = vld [vmem:[%s10728_s5 + $0x1d8] sm:$0xff]  }
 0x3c0   : > { %7289 = vmatprep.subr.bf16.mxu0 %v7488_v23  ;;  %7311 = vmatprep.subr.bf16.mxu1 %v7489_v49  ;;  %v7522_v32 = vld [vmem:[%s10728_s5 + $0x118] sm:$0xff]   ;;  %v7524_v49 = vld [vmem:[%s10728_s5 + $0x150] sm:$0xff]  }
 0x3c1   : > { %v7523_v23 = vld [vmem:[%s10728_s5 + $0x198] sm:$0xff]  }
 0x3c3   : > { %7290 = vmatpush3.bf16.msra.mxu0 %v7490_v0  ;;  %7312 = vmatpush3.bf16.msra.mxu1 %v7491_v50  ;;  %v7525_v0 = vld [vmem:[%s10728_s5 + $0x1d0] sm:$0xff]  }
 0x3c4   : > { %7291 = vmatprep.subr.bf16.mxu0 %v7492_v24  ;;  %7313 = vmatprep.subr.bf16.mxu1 %v7493_v1  ;;  %v7526_v50 = vld [vmem:[%s10728_s5 + $0x110] sm:$0xff]   ;;  %v7528_v1 = vld [vmem:[%s10728_s5 + $0x148] sm:$0xff]  }
 0x3c5   : > { %v7527_v24 = vld [vmem:[%s10728_s5 + $0x190] sm:$0xff]  }
 0x3c7   : > { %7292 = vmatpush3.bf16.msra.mxu0 %v7494_v8  ;;  %7314 = vmatpush3.bf16.msra.mxu1 %v7495_v63  ;;  %v11318_v8 = vld [vmem:[#allocation125_spill] sm:$0xff] }
 0x3c8   : > { %7293 = vmatprep.subr.bf16.mxu0 %v7496_v30  ;;  %7315 = vmatprep.subr.bf16.mxu1 %v7497_v41  ;;  %v5345_v63 = vrot.slane %v10594_v54, %v11318_v8  ;;  %v7529_v30 = vld [vmem:[%s10728_s5 + $0x1c8] sm:$0xff]   ;;  %v11319_v41 = vld [vmem:[#allocation127_spill] sm:$0xff] }
 0x3cb   : > { %7294 = vmatpush3.bf16.msra.mxu0 %v7498_v62  ;;  %7316 = vmatpush3.bf16.msra.mxu1 %v7499_v44  ;;  %v5353_v62 = vrot.slane %v10594_v54, %v11319_v41  ;;  %v11320_v44 = vld [vmem:[#allocation129_spill] sm:$0xff] }
 0x3cc   : > { %7295 = vmatprep.subr.bf16.mxu0 %v7500_v40  ;;  %7317 = vmatprep.subr.bf16.mxu1 %v7501_v59  ;;  %v5349_v40 = vrot.slane %v10594_v54, %v11320_v44  ;;  %v7530_v59 = vld [vmem:[%s10728_s5 + $0x108] sm:$0xff]  }
 0x3cf   : > { %7296 = vmatpush3.bf16.msra.mxu0 %v7502_v5  ;;  %7318 = vmatpush3.bf16.msra.mxu1 %v7503_v19  ;;  %v11321_v19 = vld [vmem:[#allocation131_spill] sm:$0xff] }
 0x3d0   : > { %7325 = vmatprep.subr.bf16.mxu0 %v7504_v4  ;;  %7347 = vmatprep.subr.bf16.mxu1 %v7505_v27  ;;  %v5357_v4 = vrot.slane %v10594_v54, %v11321_v19  ;;  %v7531_v27 = vld [vmem:[%s10728_s5 + $0x188] sm:$0xff]  }
 0x452   : > { %v5720_v42 = vpop.f32.mrf.mxu0  ;;  %v5761_v48 = vpop.f32.mrf.mxu1 }
 0x453   : > { %v5721_v53 = vadd.f32 %v5720_v42, %v5329_v47  ;;  %v5762_v17 = vadd.f32 %v5761_v48, %v5337_v60  ;;  %v7533_v60 = vld [vmem:[%s10728_s5 + $0x1c0] sm:$0xff]  }
 0x454   : > { %v5722_v22 = vpop.f32.mrf.mxu0  ;;  %v5763_v38 = vpop.f32.mrf.mxu1 }
 0x455   : > { %v5723_v29 = vadd.f32 %v5722_v22, %v5333_v36  ;;  %v5850_v10 = vmax.f32 %v5721_v53, 0.0  ;;  %v5852_v3 = vmax.f32 %v5762_v17, 0.0  ;;  %v5764_v15 = vadd.f32 %v5763_v38, %v5341_v46  ;;  %v7535_v22 = vld [vmem:[%s10728_s5 + $0x180] sm:$0xff]  }
 0x456   : > { %v5724_v57 = vpop.f32.mrf.mxu0  ;;  %v5765_v25 = vpop.f32.mrf.mxu1 }
 0x457   : > { %v5851_v14 = vmax.f32 %v5723_v29, 0.0  ;;  %v5853_v33 = vmax.f32 %v5764_v15, 0.0  ;;  %v5860_v21 = vpack.c.bf16 %v5852_v3, %v5852_v3  ;;  %v5858_v58 = vpack.c.bf16 %v5850_v10, %v5850_v10 }
 0x458   : > { %v5725_v26 = vpop.f32.mrf.mxu0  ;;  %v5766_v45 = vpop.f32.mrf.mxu1 }
 0x459   : > { %v5859_v35 = vpack.c.bf16 %v5851_v14, %v5851_v14  ;;  %v5861_v39 = vpack.c.bf16 %v5853_v33, %v5853_v33 }
 0x45b   : > { %6417 = vmatprep.mubr.bf16.mxu0 %v5859_v35  ;;  %6457 = vmatprep.mubr.bf16.mxu1 %v5861_v39 }
 0x45c   : > { %6418 = vmatmul.mubr.bf16.vlgmr.msra.gmra.mxu0 %v5858_v58  ;;  %6458 = vmatmul.mubr.bf16.vlgmr.msra.gmra.mxu1 %v5860_v21 }
 0x45d   : > { %7326 = vmatpush3.bf16.msra.mxu0 %v7506_v7  ;;  %7348 = vmatpush3.bf16.msra.mxu1 %v7507_v2 }
 0x45e   : > { %7327 = vmatprep.subr.bf16.mxu0 %v7508_v43  ;;  %7349 = vmatprep.subr.bf16.mxu1 %v7509_v12  ;;  %v7212_v12 = vld [vmem:[%s10729_s6] ss:$0 sm:$0xff] }
 0x461   : > { %7328 = vmatpush3.bf16.msra.mxu0 %v7510_v31  ;;  %7350 = vmatpush3.bf16.msra.mxu1 %v7511_v11 }
 0x462   : > { %7329 = vmatprep.subr.bf16.mxu0 %v7512_v34  ;;  %7351 = vmatprep.subr.bf16.mxu1 %v7513_v13 }
 0x465   : > { %7330 = vmatpush3.bf16.msra.mxu0 %v7514_v52  ;;  %7352 = vmatpush3.bf16.msra.mxu1 %v7515_v28 }
 0x466   : > { %7331 = vmatprep.subr.bf16.mxu0 %v7516_v20  ;;  %7353 = vmatprep.subr.bf16.mxu1 %v7517_v18 }
 0x469   : > { %7332 = vmatpush3.bf16.msra.mxu0 %v7518_v9  ;;  %7354 = vmatpush3.bf16.msra.mxu1 %v7519_v55 }
 0x46a   : > { %7333 = vmatprep.subr.bf16.mxu0 %v7520_v51  ;;  %7355 = vmatprep.subr.bf16.mxu1 %v7521_v6 }
 0x46d   : > { %7334 = vmatpush3.bf16.msra.mxu0 %v7522_v32  ;;  %7356 = vmatpush3.bf16.msra.mxu1 %v7523_v23 }
 0x46e   : > { %7335 = vmatprep.subr.bf16.mxu0 %v7524_v49  ;;  %7357 = vmatprep.subr.bf16.mxu1 %v7525_v0 }
 0x471   : > { %7336 = vmatpush3.bf16.msra.mxu0 %v7526_v50  ;;  %7358 = vmatpush3.bf16.msra.mxu1 %v7527_v24 }
 0x472   : > { %v5802_v5 = vpop.f32.mrf.mxu0  ;;  %7337 = vmatprep.subr.bf16.mxu0 %v7528_v1  ;;  %v5843_v16 = vpop.f32.mrf.mxu1  ;;  %7359 = vmatprep.subr.bf16.mxu1 %v7529_v30 }
 0x473   : > { %v5803_v47 = vadd.f32 %v5802_v5, %v5345_v63  ;;  %v5844_v37 = vadd.f32 %v5843_v16, %v5353_v62 }
 0x474   : > { %v5804_v36 = vpop.f32.mrf.mxu0  ;;  %v5845_v54 = vpop.f32.mrf.mxu1 }
 0x475   : > { %v5805_v42 = vadd.f32 %v5804_v36, %v5349_v40  ;;  %7338 = vmatpush3.bf16.msra.mxu0 %v7530_v59  ;;  %v5854_v46 = vmax.f32 %v5803_v47, 0.0  ;;  %v5856_v53 = vmax.f32 %v5844_v37, 0.0  ;;  %v5846_v48 = vadd.f32 %v5845_v54, %v5357_v4  ;;  %7360 = vmatpush3.bf16.msra.mxu1 %v7531_v27 }
 0x476   : > { %v5806_v17 = vpop.f32.mrf.mxu0  ;;  %7339 = vmatprep.subr.bf16.mxu0 %v7532_v56  ;;  %v5847_v38 = vpop.f32.mrf.mxu1  ;;  %7361 = vmatprep.subr.bf16.mxu1 %v7533_v60 }
 0x477   : > { %v5855_v29 = vmax.f32 %v5805_v42, 0.0  ;;  %v5857_v10 = vmax.f32 %v5846_v48, 0.0  ;;  %v5864_v15 = vpack.c.bf16 %v5856_v53, %v5856_v53  ;;  %v5862_v25 = vpack.c.bf16 %v5854_v46, %v5854_v46 }
 0x478   : > { %v5807_v3 = vpop.f32.mrf.mxu0  ;;  %v5848_v14 = vpop.f32.mrf.mxu1 }
 0x479   : > { %v5863_v57 = vpack.c.bf16 %v5855_v29, %v5855_v29  ;;  %7340 = vmatpush3.bf16.msra.mxu0 %v7534_v61  ;;  %v5865_v33 = vpack.c.bf16 %v5857_v10, %v5857_v10  ;;  %7362 = vmatpush3.bf16.msra.mxu1 %v7535_v22 }
 0x47b   : > { %6497 = vmatprep.mubr.bf16.mxu0 %v5863_v57  ;;  %6537 = vmatprep.mubr.bf16.mxu1 %v5865_v33 }
 0x47c   : > { %6498 = vmatmul.mubr.bf16.vlgmr.msra.gmra.mxu0 %v5862_v25  ;;  %6538 = vmatmul.mubr.bf16.vlgmr.msra.gmra.mxu1 %v5864_v15 }
 0x51c   : > { %v7297_v26 = vpop.f32.mrf.mxu0  ;;  %v7319_v21 = vpop.f32.mrf.mxu1 }
 0x51e   : > { %v7298_v35 = vpop.f32.mrf.mxu0  ;;  %v7320_v45 = vpop.f32.mrf.mxu1 }
 0x51f   : > { %v7299_v43 = vadd.f32 %v7298_v35, %v7297_v26  ;;  %v7321_v34 = vadd.f32 %v7320_v45, %v7319_v21 }
 0x520   : > { %v7300_v7 = vpop.f32.mrf.mxu0  ;;  %v7322_v58 = vpop.f32.mrf.mxu1 }
 0x521   : > { %v6420_v31 = vadd.f32 %v7299_v43, %v7212_v12 }
 0x522   : > { %v7301_v39 = vpop.f32.mrf.mxu0  ;;  %v7323_v2 = vpop.f32.mrf.mxu1 }
 0x523   : > { %v6460_v28 = vadd.f32 %v7321_v34, %v6420_v31 }
 0x53c   : > { %v7341_v11 = vpop.f32.mrf.mxu0  ;;  %v7363_v13 = vpop.f32.mrf.mxu1 }
 0x53e   : > { %v7342_v52 = vpop.f32.mrf.mxu0  ;;  %v7364_v18 = vpop.f32.mrf.mxu1 }
 0x53f   : > { %v7343_v20 = vadd.f32 %v7342_v52, %v7341_v11  ;;  %v7365_v51 = vadd.f32 %v7364_v18, %v7363_v13 }
 0x540   : > { %v7344_v9 = vpop.f32.mrf.mxu0  ;;  %v7366_v6 = vpop.f32.mrf.mxu1 }
 0x541   : > { %v6500_v55 = vadd.f32 %v7343_v20, %v6460_v28 }
 0x542   : > { %v7345_v32 = vpop.f32.mrf.mxu0  ;;  %v7367_v49 = vpop.f32.mrf.mxu1 }
 0x543   : > { %v6540_v23 = vadd.f32 %v7365_v51, %v6500_v55 }
 0x545   : > { %6545 = vst [vmem:[%s10730_s7] sm:$0xff] %v6540_v23 }
 0x546 PF: > { %s17_s28 = sadd.s32 1, %s7574_s28   ;;  %s11322_s24 = smov %s7562_s25 }
 0x547   : > { %p14_p11 = scmp.ge.s32.totalorder %s17_s28, 4   ;;  %s11323_s25 = smov %s7654_s9 }
 0x548   : > { %s11324_s26 = smov %s7570_s27  ;;  %s11325_s27 = smov %s11327_s29 }
 0x549   :  { %16 = sbr.rel (!%p14_p11) target bundleno = 3 (0x3), region = 134 }

</bundles_post_ra>
